<compile_context>
chip_gen: v6e
topology: v6e:2x2x1
jax: 0.10.0
libtpu: 0.0.40
codegen_flags: <defaults>
</compile_context>

<pallas_src>
import jax
import jax.numpy as jnp
from jax.experimental import pallas as pl
from jax.experimental.pallas import tpu as pltpu


# Layer sizes implied by the PyTorch __init__:
#   Linear(5,128) ReLU, Linear(128,256) ReLU, 6 x [Linear(256,256) ReLU],
#   Linear(256,128) ReLU, Linear(128,1)
LAYER_DIMS = [(5, 128), (128, 256)] + [(256, 256)] * 6 + [(256, 128), (128, 1)]
NUM_LAYERS = len(LAYER_DIMS)          # 10
NUM_MXU_LAYERS = NUM_LAYERS - 1       # last Linear(128,1) is done on the VPU/XLU
IN_PAD = 8                            # pad 5 input features to one full sublane group


def _mlp_kernel(xT_ref, *refs):
    """Whole forward pass for one batch tile; all weights resident in VMEM.

    Layout: activations are (features, tile_b) -> batch on lanes.
    refs = (w0, b0, ..., w8, b8, w_last_col, b_last, out_ref)
      wi          : (out_i, in_i) bf16   (PyTorch nn.Linear layout)
      bi          : (out_i, 1)    f32
      w_last_col  : (128, 1)      f32
      b_last      : (1, 1)        f32
      out_ref     : (1, tile_b)   f32    (lane-dense output block)
    """
    out_ref = refs[-1]
    b_last_ref = refs[-2]
    w_last_ref = refs[-3]
    param_refs = refs[:-3]

    h = xT_ref[...]  # (IN_PAD, tile_b) f32
    for li in range(NUM_MXU_LAYERS):
        w = param_refs[2 * li][...]        # (out, in)  bf16
        b = param_refs[2 * li + 1][...]    # (out, 1)   f32
        # bf16 x bf16 on the MXU, f32 accumulation; bias + ReLU in f32 on the VPU.
        h = jnp.dot(w, h.astype(jnp.bfloat16), preferred_element_type=jnp.float32)
        h = jnp.maximum(h + b, 0.0)

    # Final Linear(128, 1): N=1 matmul would waste an MXU push -> VPU multiply +
    # cross-sublane (XLU) reduction instead.  Result (1, tile_b) is lane-dense.
    out = jnp.sum(h * w_last_ref[...], axis=0, keepdims=True) + b_last_ref[...]
    out_ref[...] = out.astype(out_ref.dtype)


def _prepare_kernel_params(params):
    """Convert PyTorch-layout params [(W(out,in), b(out,)), ...] into kernel operands."""
    kparams = []
    for li, (w, b) in enumerate(params[:-1]):
        dout, din = w.shape
        if li == 0:
            w = jnp.pad(w, ((0, 0), (0, IN_PAD - din)))  # zero columns: exact math
        kparams.append(w.astype(jnp.bfloat16))
        kparams.append(b.reshape(dout, 1).astype(jnp.float32))
    w_last, b_last = params[-1]                           # (1, 128), (1,)
    kparams.append(w_last.reshape(-1, 1).astype(jnp.float32))  # (128, 1)
    kparams.append(b_last.reshape(1, 1).astype(jnp.float32))   # (1, 1)
    return kparams


def snodas_forward(x, params, *, tile_b=512):
    """x: (B, 5) float32. params: [(W, b)] in PyTorch layout (W=(out,in), b=(out,)).

    tile_b is the lane (batch) tile width; keep it a multiple of 128.  On v7x pick it
    so that ceil(B / tile_b) >= 2 so both TensorCores get work.
    """
    B, in_dim = x.shape
    assert in_dim == LAYER_DIMS[0][0]

    tile_b = max(128, (tile_b // 128) * 128)
    num_tiles = pl.cdiv(B, tile_b)
    B_pad = num_tiles * tile_b

    # Feature-major, zero-padded input: (IN_PAD, B_pad).
    xT = jnp.pad(x.astype(jnp.float32), ((0, B_pad - B), (0, IN_PAD - in_dim))).T

    kparams = _prepare_kernel_params(params)

    x_spec = pl.BlockSpec((IN_PAD, tile_b), lambda i: (0, i))
    # Weights/biases: full-array blocks, constant block index -> stay VMEM-resident.
    # (Optionally pipeline_mode=pl.Buffered(1) on these if VMEM ever gets tight on v7x.)
    param_specs = [pl.BlockSpec(p.shape, lambda i: (0, 0)) for p in kparams]
    out_spec = pl.BlockSpec((1, tile_b), lambda i: (0, i))

    out = pl.pallas_call(
        _mlp_kernel,
        out_shape=jax.ShapeDtypeStruct((1, B_pad), jnp.float32),
        grid_spec=pltpu.PrefetchScalarGridSpec(
            num_scalar_prefetch=0,
            grid=(num_tiles,),
            in_specs=[x_spec] + param_specs,
            out_specs=out_spec,
        ),
        compiler_params=pltpu.CompilerParams(
            dimension_semantics=("parallel",),
        ),
    )(xT, *kparams)

    return out[0, :B].reshape(B, 1)


def init_params(key):
    """PyTorch nn.Linear default init: U(-1/sqrt(fan_in), 1/sqrt(fan_in)); PyTorch layout."""
    params = []
    for (din, dout) in LAYER_DIMS:
        key, kw, kb = jax.random.split(key, 3)
        bound = 1.0 / (din ** 0.5)
        w = jax.random.uniform(kw, (dout, din), jnp.float32, -bound, bound)
        b = jax.random.uniform(kb, (dout,), jnp.float32, -bound, bound)
        params.append((w, b))
    return params


def reference_forward(x, params):
    """Pure-JAX reference mirroring the kernel arithmetic (bf16 matmuls, f32 accumulate)."""
    h = x.astype(jnp.float32)
    for li, (w, b) in enumerate(params):
        if li < NUM_LAYERS - 1:
            h = jnp.dot(h.astype(jnp.bfloat16), w.T.astype(jnp.bfloat16),
                        preferred_element_type=jnp.float32) + b
            h = jnp.maximum(h, 0.0)
        else:
            h = jnp.dot(h, w.T, preferred_element_type=jnp.float32) + b
    return h


# TODO(synk): load_model() (torch.load checkpoint I/O) has no in-kernel equivalent;
# weights are generated in-script.

if __name__ == "__main__":
    key = jax.random.PRNGKey(0)
    key, kx = jax.random.split(key)

    # Small smoke test: B deliberately NOT a multiple of tile_b to exercise batch padding;
    # tile_b=128 keeps shapes small while still giving a grid of 3 steps.
    B = 300
    x = jax.random.normal(kx, (B, 5), jnp.float32)
    params = init_params(key)

    out = snodas_forward(x, params, tile_b=128)
    out = jax.block_until_ready(out)

    ref = reference_forward(x, params)
    assert out.shape == (B, 1)
    assert jnp.allclose(out, ref, atol=3e-3, rtol=3e-2), "Pallas output mismatch vs reference"

    print("KERNEL_OK")
</pallas_src>

<mosaic_0001>
module attributes {stable_mosaic.version = 11 : i64} {
  func.func @_mlp_kernel(%arg0: i32, %arg1: memref<8x128xf32, #tpu.memory_space<vmem>>, %arg2: memref<128x8xbf16, #tpu.memory_space<vmem>>, %arg3: memref<128x1xf32, #tpu.memory_space<vmem>>, %arg4: memref<256x128xbf16, #tpu.memory_space<vmem>>, %arg5: memref<256x1xf32, #tpu.memory_space<vmem>>, %arg6: memref<256x256xbf16, #tpu.memory_space<vmem>>, %arg7: memref<256x1xf32, #tpu.memory_space<vmem>>, %arg8: memref<256x256xbf16, #tpu.memory_space<vmem>>, %arg9: memref<256x1xf32, #tpu.memory_space<vmem>>, %arg10: memref<256x256xbf16, #tpu.memory_space<vmem>>, %arg11: memref<256x1xf32, #tpu.memory_space<vmem>>, %arg12: memref<256x256xbf16, #tpu.memory_space<vmem>>, %arg13: memref<256x1xf32, #tpu.memory_space<vmem>>, %arg14: memref<256x256xbf16, #tpu.memory_space<vmem>>, %arg15: memref<256x1xf32, #tpu.memory_space<vmem>>, %arg16: memref<256x256xbf16, #tpu.memory_space<vmem>>, %arg17: memref<256x1xf32, #tpu.memory_space<vmem>>, %arg18: memref<128x256xbf16, #tpu.memory_space<vmem>>, %arg19: memref<128x1xf32, #tpu.memory_space<vmem>>, %arg20: memref<128x1xf32, #tpu.memory_space<vmem>>, %arg21: memref<1x1xf32, #tpu.memory_space<vmem>>, %arg22: memref<1x128xf32, #tpu.memory_space<vmem>>) attributes {dimension_semantics = [#tpu.dimension_semantics<parallel>], iteration_bounds = array<i64: 3>, scalar_prefetch = 0 : i64, scratch_operands = 0 : i64, tpu.core_type = #tpu.core_type<tc>, window_params = [{transform_indices = @transform_0, window_bounds = array<i64: 8, 128>}, {pipeline_mode = #tpu.pipeline_mode<synchronous>, transform_indices = @transform_1, window_bounds = array<i64: 128, 8>}, {pipeline_mode = #tpu.pipeline_mode<synchronous>, transform_indices = @transform_2, window_bounds = array<i64: 128, 1>}, {pipeline_mode = #tpu.pipeline_mode<synchronous>, transform_indices = @transform_3, window_bounds = array<i64: 256, 128>}, {pipeline_mode = #tpu.pipeline_mode<synchronous>, transform_indices = @transform_4, window_bounds = array<i64: 256, 1>}, {pipeline_mode = #tpu.pipeline_mode<synchronous>, transform_indices = @transform_5, window_bounds = array<i64: 256, 256>}, {pipeline_mode = #tpu.pipeline_mode<synchronous>, transform_indices = @transform_6, window_bounds = array<i64: 256, 1>}, {pipeline_mode = #tpu.pipeline_mode<synchronous>, transform_indices = @transform_7, window_bounds = array<i64: 256, 256>}, {pipeline_mode = #tpu.pipeline_mode<synchronous>, transform_indices = @transform_8, window_bounds = array<i64: 256, 1>}, {pipeline_mode = #tpu.pipeline_mode<synchronous>, transform_indices = @transform_9, window_bounds = array<i64: 256, 256>}, {pipeline_mode = #tpu.pipeline_mode<synchronous>, transform_indices = @transform_10, window_bounds = array<i64: 256, 1>}, {pipeline_mode = #tpu.pipeline_mode<synchronous>, transform_indices = @transform_11, window_bounds = array<i64: 256, 256>}, {pipeline_mode = #tpu.pipeline_mode<synchronous>, transform_indices = @transform_12, window_bounds = array<i64: 256, 1>}, {pipeline_mode = #tpu.pipeline_mode<synchronous>, transform_indices = @transform_13, window_bounds = array<i64: 256, 256>}, {pipeline_mode = #tpu.pipeline_mode<synchronous>, transform_indices = @transform_14, window_bounds = array<i64: 256, 1>}, {pipeline_mode = #tpu.pipeline_mode<synchronous>, transform_indices = @transform_15, window_bounds = array<i64: 256, 256>}, {pipeline_mode = #tpu.pipeline_mode<synchronous>, transform_indices = @transform_16, window_bounds = array<i64: 256, 1>}, {pipeline_mode = #tpu.pipeline_mode<synchronous>, transform_indices = @transform_17, window_bounds = array<i64: 128, 256>}, {pipeline_mode = #tpu.pipeline_mode<synchronous>, transform_indices = @transform_18, window_bounds = array<i64: 128, 1>}, {pipeline_mode = #tpu.pipeline_mode<synchronous>, transform_indices = @transform_19, window_bounds = array<i64: 128, 1>}, {pipeline_mode = #tpu.pipeline_mode<synchronous>, transform_indices = @transform_20, window_bounds = array<i64: 1, 1>}, {transform_indices = @transform_21, window_bounds = array<i64: 1, 128>}]} {
    %c0 = arith.constant 0 : index
    %c0_0 = arith.constant 0 : index
    %0 = vector.load %arg1[%c0, %c0_0] : memref<8x128xf32, #tpu.memory_space<vmem>>, vector<8x128xf32>
    %c0_1 = arith.constant 0 : index
    %c0_2 = arith.constant 0 : index
    %1 = vector.load %arg2[%c0_1, %c0_2] : memref<128x8xbf16, #tpu.memory_space<vmem>>, vector<128x8xbf16>
    %c0_3 = arith.constant 0 : index
    %c0_4 = arith.constant 0 : index
    %2 = vector.load %arg3[%c0_3, %c0_4] : memref<128x1xf32, #tpu.memory_space<vmem>>, vector<128x1xf32>
    %3 = arith.truncf %0 : vector<8x128xf32> to vector<8x128xbf16>
    %cst = arith.constant dense<0.000000e+00> : vector<128x128xf32>
    %4 = tpu.matmul %1, %3, %cst {dimension_numbers = #tpu.dot_dimension_numbers<[1], [0], [0], [1], [0, 0, 1, 1], [], []>} : vector<128x8xbf16>, vector<8x128xbf16>, vector<128x128xf32> -> vector<128x128xf32>
    %5 = vector.broadcast %2 : vector<128x1xf32> to vector<128x128xf32>
    %6 = arith.addf %4, %5 : vector<128x128xf32>
    %cst_5 = arith.constant 0.000000e+00 : f32
    %7 = vector.broadcast %cst_5 : f32 to vector<128x128xf32>
    %8 = arith.maximumf %6, %7 : vector<128x128xf32>
    %c0_6 = arith.constant 0 : index
    %c0_7 = arith.constant 0 : index
    %9 = vector.load %arg4[%c0_6, %c0_7] : memref<256x128xbf16, #tpu.memory_space<vmem>>, vector<256x128xbf16>
    %c0_8 = arith.constant 0 : index
    %c0_9 = arith.constant 0 : index
    %10 = vector.load %arg5[%c0_8, %c0_9] : memref<256x1xf32, #tpu.memory_space<vmem>>, vector<256x1xf32>
    %11 = arith.truncf %8 : vector<128x128xf32> to vector<128x128xbf16>
    %cst_10 = arith.constant dense<0.000000e+00> : vector<256x128xf32>
    %12 = tpu.matmul %9, %11, %cst_10 {dimension_numbers = #tpu.dot_dimension_numbers<[1], [0], [0], [1], [0, 0, 1, 1], [], []>} : vector<256x128xbf16>, vector<128x128xbf16>, vector<256x128xf32> -> vector<256x128xf32>
    %13 = vector.broadcast %10 : vector<256x1xf32> to vector<256x128xf32>
    %14 = arith.addf %12, %13 : vector<256x128xf32>
    %cst_11 = arith.constant 0.000000e+00 : f32
    %15 = vector.broadcast %cst_11 : f32 to vector<256x128xf32>
    %16 = arith.maximumf %14, %15 : vector<256x128xf32>
    %c0_12 = arith.constant 0 : index
    %c0_13 = arith.constant 0 : index
    %17 = vector.load %arg6[%c0_12, %c0_13] : memref<256x256xbf16, #tpu.memory_space<vmem>>, vector<256x256xbf16>
    %c0_14 = arith.constant 0 : index
    %c0_15 = arith.constant 0 : index
    %18 = vector.load %arg7[%c0_14, %c0_15] : memref<256x1xf32, #tpu.memory_space<vmem>>, vector<256x1xf32>
    %19 = arith.truncf %16 : vector<256x128xf32> to vector<256x128xbf16>
    %cst_16 = arith.constant dense<0.000000e+00> : vector<256x128xf32>
    %20 = tpu.matmul %17, %19, %cst_16 {dimension_numbers = #tpu.dot_dimension_numbers<[1], [0], [0], [1], [0, 0, 1, 1], [], []>} : vector<256x256xbf16>, vector<256x128xbf16>, vector<256x128xf32> -> vector<256x128xf32>
    %21 = vector.broadcast %18 : vector<256x1xf32> to vector<256x128xf32>
    %22 = arith.addf %20, %21 : vector<256x128xf32>
    %cst_17 = arith.constant 0.000000e+00 : f32
    %23 = vector.broadcast %cst_17 : f32 to vector<256x128xf32>
    %24 = arith.maximumf %22, %23 : vector<256x128xf32>
    %c0_18 = arith.constant 0 : index
    %c0_19 = arith.constant 0 : index
    %25 = vector.load %arg8[%c0_18, %c0_19] : memref<256x256xbf16, #tpu.memory_space<vmem>>, vector<256x256xbf16>
    %c0_20 = arith.constant 0 : index
    %c0_21 = arith.constant 0 : index
    %26 = vector.load %arg9[%c0_20, %c0_21] : memref<256x1xf32, #tpu.memory_space<vmem>>, vector<256x1xf32>
    %27 = arith.truncf %24 : vector<256x128xf32> to vector<256x128xbf16>
    %cst_22 = arith.constant dense<0.000000e+00> : vector<256x128xf32>
    %28 = tpu.matmul %25, %27, %cst_22 {dimension_numbers = #tpu.dot_dimension_numbers<[1], [0], [0], [1], [0, 0, 1, 1], [], []>} : vector<256x256xbf16>, vector<256x128xbf16>, vector<256x128xf32> -> vector<256x128xf32>
    %29 = vector.broadcast %26 : vector<256x1xf32> to vector<256x128xf32>
    %30 = arith.addf %28, %29 : vector<256x128xf32>
    %cst_23 = arith.constant 0.000000e+00 : f32
    %31 = vector.broadcast %cst_23 : f32 to vector<256x128xf32>
    %32 = arith.maximumf %30, %31 : vector<256x128xf32>
    %c0_24 = arith.constant 0 : index
    %c0_25 = arith.constant 0 : index
    %33 = vector.load %arg10[%c0_24, %c0_25] : memref<256x256xbf16, #tpu.memory_space<vmem>>, vector<256x256xbf16>
    %c0_26 = arith.constant 0 : index
    %c0_27 = arith.constant 0 : index
    %34 = vector.load %arg11[%c0_26, %c0_27] : memref<256x1xf32, #tpu.memory_space<vmem>>, vector<256x1xf32>
    %35 = arith.truncf %32 : vector<256x128xf32> to vector<256x128xbf16>
    %cst_28 = arith.constant dense<0.000000e+00> : vector<256x128xf32>
    %36 = tpu.matmul %33, %35, %cst_28 {dimension_numbers = #tpu.dot_dimension_numbers<[1], [0], [0], [1], [0, 0, 1, 1], [], []>} : vector<256x256xbf16>, vector<256x128xbf16>, vector<256x128xf32> -> vector<256x128xf32>
    %37 = vector.broadcast %34 : vector<256x1xf32> to vector<256x128xf32>
    %38 = arith.addf %36, %37 : vector<256x128xf32>
    %cst_29 = arith.constant 0.000000e+00 : f32
    %39 = vector.broadcast %cst_29 : f32 to vector<256x128xf32>
    %40 = arith.maximumf %38, %39 : vector<256x128xf32>
    %c0_30 = arith.constant 0 : index
    %c0_31 = arith.constant 0 : index
    %41 = vector.load %arg12[%c0_30, %c0_31] : memref<256x256xbf16, #tpu.memory_space<vmem>>, vector<256x256xbf16>
    %c0_32 = arith.constant 0 : index
    %c0_33 = arith.constant 0 : index
    %42 = vector.load %arg13[%c0_32, %c0_33] : memref<256x1xf32, #tpu.memory_space<vmem>>, vector<256x1xf32>
    %43 = arith.truncf %40 : vector<256x128xf32> to vector<256x128xbf16>
    %cst_34 = arith.constant dense<0.000000e+00> : vector<256x128xf32>
    %44 = tpu.matmul %41, %43, %cst_34 {dimension_numbers = #tpu.dot_dimension_numbers<[1], [0], [0], [1], [0, 0, 1, 1], [], []>} : vector<256x256xbf16>, vector<256x128xbf16>, vector<256x128xf32> -> vector<256x128xf32>
    %45 = vector.broadcast %42 : vector<256x1xf32> to vector<256x128xf32>
    %46 = arith.addf %44, %45 : vector<256x128xf32>
    %cst_35 = arith.constant 0.000000e+00 : f32
    %47 = vector.broadcast %cst_35 : f32 to vector<256x128xf32>
    %48 = arith.maximumf %46, %47 : vector<256x128xf32>
    %c0_36 = arith.constant 0 : index
    %c0_37 = arith.constant 0 : index
    %49 = vector.load %arg14[%c0_36, %c0_37] : memref<256x256xbf16, #tpu.memory_space<vmem>>, vector<256x256xbf16>
    %c0_38 = arith.constant 0 : index
    %c0_39 = arith.constant 0 : index
    %50 = vector.load %arg15[%c0_38, %c0_39] : memref<256x1xf32, #tpu.memory_space<vmem>>, vector<256x1xf32>
    %51 = arith.truncf %48 : vector<256x128xf32> to vector<256x128xbf16>
    %cst_40 = arith.constant dense<0.000000e+00> : vector<256x128xf32>
    %52 = tpu.matmul %49, %51, %cst_40 {dimension_numbers = #tpu.dot_dimension_numbers<[1], [0], [0], [1], [0, 0, 1, 1], [], []>} : vector<256x256xbf16>, vector<256x128xbf16>, vector<256x128xf32> -> vector<256x128xf32>
    %53 = vector.broadcast %50 : vector<256x1xf32> to vector<256x128xf32>
    %54 = arith.addf %52, %53 : vector<256x128xf32>
    %cst_41 = arith.constant 0.000000e+00 : f32
    %55 = vector.broadcast %cst_41 : f32 to vector<256x128xf32>
    %56 = arith.maximumf %54, %55 : vector<256x128xf32>
    %c0_42 = arith.constant 0 : index
    %c0_43 = arith.constant 0 : index
    %57 = vector.load %arg16[%c0_42, %c0_43] : memref<256x256xbf16, #tpu.memory_space<vmem>>, vector<256x256xbf16>
    %c0_44 = arith.constant 0 : index
    %c0_45 = arith.constant 0 : index
    %58 = vector.load %arg17[%c0_44, %c0_45] : memref<256x1xf32, #tpu.memory_space<vmem>>, vector<256x1xf32>
    %59 = arith.truncf %56 : vector<256x128xf32> to vector<256x128xbf16>
    %cst_46 = arith.constant dense<0.000000e+00> : vector<256x128xf32>
    %60 = tpu.matmul %57, %59, %cst_46 {dimension_numbers = #tpu.dot_dimension_numbers<[1], [0], [0], [1], [0, 0, 1, 1], [], []>} : vector<256x256xbf16>, vector<256x128xbf16>, vector<256x128xf32> -> vector<256x128xf32>
    %61 = vector.broadcast %58 : vector<256x1xf32> to vector<256x128xf32>
    %62 = arith.addf %60, %61 : vector<256x128xf32>
    %cst_47 = arith.constant 0.000000e+00 : f32
    %63 = vector.broadcast %cst_47 : f32 to vector<256x128xf32>
    %64 = arith.maximumf %62, %63 : vector<256x128xf32>
    %c0_48 = arith.constant 0 : index
    %c0_49 = arith.constant 0 : index
    %65 = vector.load %arg18[%c0_48, %c0_49] : memref<128x256xbf16, #tpu.memory_space<vmem>>, vector<128x256xbf16>
    %c0_50 = arith.constant 0 : index
    %c0_51 = arith.constant 0 : index
    %66 = vector.load %arg19[%c0_50, %c0_51] : memref<128x1xf32, #tpu.memory_space<vmem>>, vector<128x1xf32>
    %67 = arith.truncf %64 : vector<256x128xf32> to vector<256x128xbf16>
    %cst_52 = arith.constant dense<0.000000e+00> : vector<128x128xf32>
    %68 = tpu.matmul %65, %67, %cst_52 {dimension_numbers = #tpu.dot_dimension_numbers<[1], [0], [0], [1], [0, 0, 1, 1], [], []>} : vector<128x256xbf16>, vector<256x128xbf16>, vector<128x128xf32> -> vector<128x128xf32>
    %69 = vector.broadcast %66 : vector<128x1xf32> to vector<128x128xf32>
    %70 = arith.addf %68, %69 : vector<128x128xf32>
    %cst_53 = arith.constant 0.000000e+00 : f32
    %71 = vector.broadcast %cst_53 : f32 to vector<128x128xf32>
    %72 = arith.maximumf %70, %71 : vector<128x128xf32>
    %c0_54 = arith.constant 0 : index
    %c0_55 = arith.constant 0 : index
    %73 = vector.load %arg20[%c0_54, %c0_55] : memref<128x1xf32, #tpu.memory_space<vmem>>, vector<128x1xf32>
    %74 = vector.broadcast %73 : vector<128x1xf32> to vector<128x128xf32>
    %75 = arith.mulf %72, %74 : vector<128x128xf32>
    %cst_56 = arith.constant dense<0.000000e+00> : vector<128xf32>
    %76 = vector.multi_reduction <add>, %75, %cst_56 [0] : vector<128x128xf32> to vector<128xf32>
    %77 = vector.shape_cast %76 : vector<128xf32> to vector<1x128xf32>
    %c0_57 = arith.constant 0 : index
    %c0_58 = arith.constant 0 : index
    %78 = vector.load %arg21[%c0_57, %c0_58] : memref<1x1xf32, #tpu.memory_space<vmem>>, vector<1x1xf32>
    %79 = vector.broadcast %78 : vector<1x1xf32> to vector<1x128xf32>
    %80 = arith.addf %77, %79 : vector<1x128xf32>
    %c0_59 = arith.constant 0 : index
    %c0_60 = arith.constant 0 : index
    %81 = vector.load %arg22[%c0_59, %c0_60] : memref<1x128xf32, #tpu.memory_space<vmem>>, vector<1x128xf32>
    tpu.vector_store %arg22[%c0_59, %c0_60], %80 {strides = array<i32>} : memref<1x128xf32, #tpu.memory_space<vmem>>, vector<1x128xf32>,
    return
  }
  func.func @transform_0(%arg0: i32) -> (i32, i32) {
    %c0_i32 = arith.constant 0 : i32
    %c0_i32_0 = arith.constant 0 : i32
    return %c0_i32, %arg0 : i32, i32
  }
  func.func @transform_1(%arg0: i32) -> (i32, i32) {
    %c0_i32 = arith.constant 0 : i32
    %c0_i32_0 = arith.constant 0 : i32
    %c0_i32_1 = arith.constant 0 : i32
    return %c0_i32, %c0_i32_0 : i32, i32
  }
  func.func @transform_2(%arg0: i32) -> (i32, i32) {
    %c0_i32 = arith.constant 0 : i32
    %c0_i32_0 = arith.constant 0 : i32
    %c0_i32_1 = arith.constant 0 : i32
    return %c0_i32, %c0_i32_0 : i32, i32
  }
  func.func @transform_3(%arg0: i32) -> (i32, i32) {
    %c0_i32 = arith.constant 0 : i32
    %c0_i32_0 = arith.constant 0 : i32
    %c0_i32_1 = arith.constant 0 : i32
    return %c0_i32, %c0_i32_0 : i32, i32
  }
  func.func @transform_4(%arg0: i32) -> (i32, i32) {
    %c0_i32 = arith.constant 0 : i32
    %c0_i32_0 = arith.constant 0 : i32
    %c0_i32_1 = arith.constant 0 : i32
    return %c0_i32, %c0_i32_0 : i32, i32
  }
  func.func @transform_5(%arg0: i32) -> (i32, i32) {
    %c0_i32 = arith.constant 0 : i32
    %c0_i32_0 = arith.constant 0 : i32
    %c0_i32_1 = arith.constant 0 : i32
    return %c0_i32, %c0_i32_0 : i32, i32
  }
  func.func @transform_6(%arg0: i32) -> (i32, i32) {
    %c0_i32 = arith.constant 0 : i32
    %c0_i32_0 = arith.constant 0 : i32
    %c0_i32_1 = arith.constant 0 : i32
    return %c0_i32, %c0_i32_0 : i32, i32
  }
  func.func @transform_7(%arg0: i32) -> (i32, i32) {
    %c0_i32 = arith.constant 0 : i32
    %c0_i32_0 = arith.constant 0 : i32
    %c0_i32_1 = arith.constant 0 : i32
    return %c0_i32, %c0_i32_0 : i32, i32
  }
  func.func @transform_8(%arg0: i32) -> (i32, i32) {
    %c0_i32 = arith.constant 0 : i32
    %c0_i32_0 = arith.constant 0 : i32
    %c0_i32_1 = arith.constant 0 : i32
    return %c0_i32, %c0_i32_0 : i32, i32
  }
  func.func @transform_9(%arg0: i32) -> (i32, i32) {
    %c0_i32 = arith.constant 0 : i32
    %c0_i32_0 = arith.constant 0 : i32
    %c0_i32_1 = arith.constant 0 : i32
    return %c0_i32, %c0_i32_0 : i32, i32
  }
  func.func @transform_10(%arg0: i32) -> (i32, i32) {
    %c0_i32 = arith.constant 0 : i32
    %c0_i32_0 = arith.constant 0 : i32
    %c0_i32_1 = arith.constant 0 : i32
    return %c0_i32, %c0_i32_0 : i32, i32
  }
  func.func @transform_11(%arg0: i32) -> (i32, i32) {
    %c0_i32 = arith.constant 0 : i32
    %c0_i32_0 = arith.constant 0 : i32
    %c0_i32_1 = arith.constant 0 : i32
    return %c0_i32, %c0_i32_0 : i32, i32
  }
  func.func @transform_12(%arg0: i32) -> (i32, i32) {
    %c0_i32 = arith.constant 0 : i32
    %c0_i32_0 = arith.constant 0 : i32
    %c0_i32_1 = arith.constant 0 : i32
    return %c0_i32, %c0_i32_0 : i32, i32
  }
  func.func @transform_13(%arg0: i32) -> (i32, i32) {
    %c0_i32 = arith.constant 0 : i32
    %c0_i32_0 = arith.constant 0 : i32
    %c0_i32_1 = arith.constant 0 : i32
    return %c0_i32, %c0_i32_0 : i32, i32
  }
  func.func @transform_14(%arg0: i32) -> (i32, i32) {
    %c0_i32 = arith.constant 0 : i32
    %c0_i32_0 = arith.constant 0 : i32
    %c0_i32_1 = arith.constant 0 : i32
    return %c0_i32, %c0_i32_0 : i32, i32
  }
  func.func @transform_15(%arg0: i32) -> (i32, i32) {
    %c0_i32 = arith.constant 0 : i32
    %c0_i32_0 = arith.constant 0 : i32
    %c0_i32_1 = arith.constant 0 : i32
    return %c0_i32, %c0_i32_0 : i32, i32
  }
  func.func @transform_16(%arg0: i32) -> (i32, i32) {
    %c0_i32 = arith.constant 0 : i32
    %c0_i32_0 = arith.constant 0 : i32
    %c0_i32_1 = arith.constant 0 : i32
    return %c0_i32, %c0_i32_0 : i32, i32
  }
  func.func @transform_17(%arg0: i32) -> (i32, i32) {
    %c0_i32 = arith.constant 0 : i32
    %c0_i32_0 = arith.constant 0 : i32
    %c0_i32_1 = arith.constant 0 : i32
    return %c0_i32, %c0_i32_0 : i32, i32
  }
  func.func @transform_18(%arg0: i32) -> (i32, i32) {
    %c0_i32 = arith.constant 0 : i32
    %c0_i32_0 = arith.constant 0 : i32
    %c0_i32_1 = arith.constant 0 : i32
    return %c0_i32, %c0_i32_0 : i32, i32
  }
  func.func @transform_19(%arg0: i32) -> (i32, i32) {
    %c0_i32 = arith.constant 0 : i32
    %c0_i32_0 = arith.constant 0 : i32
    %c0_i32_1 = arith.constant 0 : i32
    return %c0_i32, %c0_i32_0 : i32, i32
  }
  func.func @transform_20(%arg0: i32) -> (i32, i32) {
    %c0_i32 = arith.constant 0 : i32
    %c0_i32_0 = arith.constant 0 : i32
    %c0_i32_1 = arith.constant 0 : i32
    return %c0_i32, %c0_i32_0 : i32, i32
  }
  func.func @transform_21(%arg0: i32) -> (i32, i32) {
    %c0_i32 = arith.constant 0 : i32
    %c0_i32_0 = arith.constant 0 : i32
    return %c0_i32, %arg0 : i32, i32
  }
}

</mosaic_0001>

<bundles_post_ra>
// kernel: tpu_custom_call.1
= control target key start
LH: loop header
LB: loop body
LE: loop exit
PB: predicated region body
PF: predicated region fallthrough
CT: control target
= control target key end

     0   :  { %s9757_s0 = inlined_call_operand.vmem [shape: f32[8,384], index: 0, kind: input, shape index: {}]   ;;  %s9758_s1 = inlined_call_operand.vmem [shape: bf16[128,8], index: 1, kind: input, shape index: {}]   ;;  %s9759_s2 = inlined_call_operand.vmem [shape: f32[128,1], index: 2, kind: input, shape index: {}]   ;;  %s9760_s3 = inlined_call_operand.vmem [shape: bf16[256,128], index: 3, kind: input, shape index: {}]   ;;  %s9761_s4 = inlined_call_operand.vmem [shape: f32[256,1], index: 4, kind: input, shape index: {}]   ;;  %s9762_s5 = inlined_call_operand.vmem [shape: bf16[256,256], index: 5, kind: input, shape index: {}]   ;;  %s9763_s6 = inlined_call_operand.vmem [shape: f32[256,1], index: 6, kind: input, shape index: {}]   ;;  %s9764_s7 = inlined_call_operand.vmem [shape: bf16[256,256], index: 7, kind: input, shape index: {}]   ;;  %s9765_s8 = inlined_call_operand.vmem [shape: f32[256,1], index: 8, kind: input, shape index: {}]   ;;  %s9766_s9 = inlined_call_operand.vmem [shape: bf16[256,256], index: 9, kind: input, shape index: {}]   ;;  %s9767_s10 = inlined_call_operand.vmem [shape: f32[256,1], index: 10, kind: input, shape index: {}]   ;;  %s9768_s11 = inlined_call_operand.vmem [shape: bf16[256,256], index: 11, kind: input, shape index: {}]   ;;  %s9769_s12 = inlined_call_operand.vmem [shape: f32[256,1], index: 12, kind: input, shape index: {}]   ;;  %s9770_s13 = inlined_call_operand.vmem [shape: bf16[256,256], index: 13, kind: input, shape index: {}]   ;;  %s9771_s14 = inlined_call_operand.vmem [shape: f32[256,1], index: 14, kind: input, shape index: {}]   ;;  %s9772_s15 = inlined_call_operand.vmem [shape: bf16[256,256], index: 15, kind: input, shape index: {}]   ;;  %s9773_s16 = inlined_call_operand.vmem [shape: f32[256,1], index: 16, kind: input, shape index: {}]   ;;  %s9774_s17 = inlined_call_operand.vmem [shape: bf16[128,256], index: 17, kind: input, shape index: {}]   ;;  %s9775_s18 = inlined_call_operand.vmem [shape: f32[128,1], index: 18, kind: input, shape index: {}]   ;;  %s9776_s19 = inlined_call_operand.vmem [shape: f32[128,1], index: 19, kind: input, shape index: {}]   ;;  %s9777_s20 = inlined_call_operand.<no memory space> [shape: f32[1,1], index: 20, kind: input, shape index: {}]   ;;  %s9778_s21 = inlined_call_operand.hbm [shape: f32[1,384], index: 21, kind: output, shape index: {}]  }
   0x1   :  { %9796 = sst [smem:[#allocation135_spill]] %s9757_s0  ;;  %v26_v0 = vstv %s9777_s20 }
   0x2   :  { %9797 = sst [smem:[#allocation136_spill]] %s9758_s1  ;;  %27 = vst [vmem:[#allocation2] sm:$0x1] %v26_v0 }
   0x3   :  { %9798 = sst [smem:[#allocation137_spill]] %s9759_s2 }
   0x4   :  { %9799 = sst [smem:[#allocation138_spill]] %s9760_s3 }
   0x5   :  { %9800 = sst [smem:[#allocation139_spill]] %s9761_s4 }
   0x6   :  { %9801 = sst [smem:[#allocation140_spill]] %s9762_s5 }
   0x7   :  { %9802 = sst [smem:[#allocation141_spill]] %s9763_s6 }
   0x8   :  { %9803 = sst [smem:[#allocation142_spill]] %s9778_s21 }
   0x9   :  { %28 = vsyncpa [#allocation4], 0 }
   0xa   :  { %30 = vsyncpa [#allocation4 + $0x1], 0  ;;  %s7202_s26 = smov 0   ;;  %s7204_s27 = smov 0  }
   0xb   :  { %s7206_s3 = smov 0   ;;  %s7208_s28 = smov 0  }
   0xc LB: > { %9804 = sst [smem:[#allocation6_spill]] %s7073_s26  ;;  %s7223_s20 = sadd.s32 4294967295, %s7085_s28   ;;  %s7085_s28 = sphi %s7208_s28, %s10070_s28   ;;  %s7081_s3 = sphi %s7206_s3, %s10072_s3   ;;  %s7077_s27 = sphi %s7204_s27, %s10074_s27   ;;  %s7073_s26 = sphi %s7202_s26, %s10073_s26  }
   0xd   : > { %9805 = sst [smem:[#allocation7_spill]] %s7081_s3  ;;  %s5563_s29 = sadd.s32 4294967294, %s7085_s28  }
   0xe   : > { %9806 = sst [smem:[#allocation8_spill]] %s7085_s28  ;;  %s7227_s0 = sadd.s32 1, %s7085_s28  }
   0xf   : > { %9807 = sst [smem:[#allocation9_spill]] %s7227_s0  ;;  %s489_s4 = sadd.s32 1, %s7081_s3 }
  0x10   : > { %s486_s30 = ssub.s32 %s7085_s28, %s7227_s0  ;;  %p499_p0 = scmp.ne.s32.totalorder %s7081_s3, %s7077_s27 }
  0x11   : > { %p487_p1 = scmp.eq.s32.totalorder %s486_s30, 0  ;;  %p500_p2 = scmp.eq.s32.totalorder %s7223_s20, 2 }
  0x12   : > { %p505_p3 = scmp.ne.s32.totalorder %s7077_s27, %s7073_s26  ;;  %p506_p4 = scmp.eq.s32.totalorder %s5563_s29, 2 }
  0x13   : > { %s7238_s5 = scalar_select %p487_p1, %s7081_s3, %s489_s4  }
  0x14   : > { %p7240_p5 = por %p500_p2, %p499_p0  ;;  %p7244_p6 = por %p506_p4, %p505_p3 }
  0x15   : > { %9808 = sst [smem:[#allocation10_spill]] %s7238_s5  ;;  %p5566_p7 = scmp.ge.s32.totalorder %s7085_s28, 1 }
  0x16   : > { %s9809_s22 = scalar_select %p7240_p5, 1, 0 }
  0x17   : > { %s9811_s23 = scalar_select %p7244_p6, 1, 0 }
  0x18   : > { %9810 = sst [smem:[#allocation11_spill]] %s9809_s22  ;;  %p591_p8 = scmp.lt.s32.totalorder %s7085_s28, 4 }
  0x19   : > { %9812 = sst [smem:[#allocation12_spill]] %s9811_s23 }
  0x1a   : > { %p592_p9 = pnand %p5566_p7, %p591_p8 }
  0x1c   : > { %595 = sbr.rel (%p592_p9) target bundleno = 3047 (0xbe7), region = 104 }
  0x21   : > { %s9813_s2 = sld [smem:[#allocation137_spill]]  ;;  %p649_p10 = scmp.lt.s32.totalorder %s7223_s20, 2  ;;  %v7087_v3 = vmov 0   ;;  %vm808_vm0 = vcmask 64512   ;;  %vm833_vm1 = vcmask 1043456  }
  0x22   : > { %6688 = vset.pattern.permute.xlu1 %v7087_v3  ;;  %6687 = vset.pattern.permute.xlu0 %v7087_v3  ;;  %s9814_s3 = sld [smem:[#allocation136_spill]]  ;;  %s647_s1 = sand.u32 1, %s7077_s27  }
  0x23   : > { %s650_s5 = scalar_select %p649_p10, %s7223_s20, 2 }
  0x24   : > { %s9816_s21 = sld [smem:[#allocation135_spill]]  ;;  %s5808_s28 = sshll.u32 %s7223_s20, 4 }
  0x25   : > { %s5567_s25 = sshll.u32 %s650_s5, 3  ;;  %s9817_s29 = sld [smem:[#allocation139_spill]] }
  0x26   : > { %s9818_s6 = sld [smem:[#allocation141_spill]]  ;;  %s648_s5 = scalar_lea.vmem [#allocation3], %s647_s1 }
  0x27   : > { %v685_v1 = vld [vmem:[%s9813_s2 + $0x70] sm:$0xff]  ;;  %v683_v2 = vld [vmem:[%s9813_s2 + $0x60] sm:$0xff]  ;;  %v686_v4 = vld [vmem:[%s9813_s2 + $0x78] sm:$0xff]  ;;  %s5508_s23 = sshll.u32 %s648_s5, 4  ;;  %s5509_s23 = int_to_ptr.vmem [resolvable:$true] %s5508_s23 }
  0x28   : > { %760 = vperm.xlu0 %6687, %v685_v1   ;;  %750 = vperm.xlu1 %6688, %v683_v2   ;;  %s9815_s0 = smov %s9814_s3  ;;  %v6689_v5 = vld [vmem:[%s9814_s3] sm:$0xff]   ;;  %v684_v6 = vld [vmem:[%s9813_s2 + $0x68] sm:$0xff]  ;;  %v682_v9 = vld [vmem:[%s9813_s2 + $0x58] sm:$0xff]  ;;  %s5496_s3 = scalar_lea.sflag [#allocation4], %s647_s1 }
  0x29   : > { %6582 = vmatprep.mubr.msk.bf16.mxu0 %vm808_vm0, %v6689_v5  ;;  %v681_v10 = vld [vmem:[%s9813_s2 + $0x50] sm:$0xff]  ;;  %v6690_v12 = vld [vmem:[%s9815_s0 + $0x8] sm:$0xff]   ;;  %v679_v15 = vld [vmem:[%s9813_s2 + $0x40] sm:$0xff] }
  0x2a   : > { %s652_s4 = scalar_lea.vmem %s9816_s21, %s5567_s25  ;;  %v680_v13 = vld [vmem:[%s9813_s2 + $0x48] sm:$0xff]  ;;  %v6691_v14 = vld [vmem:[%s9815_s0 + $0x10] sm:$0xff]   ;;  %v678_v16 = vld [vmem:[%s9813_s2 + $0x38] sm:$0xff]  ;;  %s9819_s21 = sld [smem:[#allocation138_spill]] }
  0x2b   : > { %v654_v7 = vld [vmem:[%s652_s4] sm:$0xff]  ;;  %v677_v17 = vld [vmem:[%s9813_s2 + $0x30] sm:$0xff]  ;;  %v6692_v18 = vld [vmem:[%s9815_s0 + $0x18] sm:$0xff]   ;;  %s9911_s4 = sld [smem:[#allocation140_spill]] }
  0x2c   : > { %765 = vperm.xlu0 %6687, %v686_v4   ;;  %755 = vperm.xlu1 %6688, %v684_v6   ;;  %v687_v8 = vpack.c.bf16 %v654_v7, %v654_v7  ;;  %v676_v19 = vld [vmem:[%s9813_s2 + $0x28] sm:$0xff]  ;;  %v6693_v20 = vld [vmem:[%s9815_s0 + $0x20] sm:$0xff]   ;;  %v674_v22 = vld [vmem:[%s9813_s2 + $0x18] sm:$0xff]  ;;  %s10066_s25 = sld [smem:[#allocation142_spill]] }
  0x2d   : > { %v675_v21 = vld [vmem:[%s9813_s2 + $0x20] sm:$0xff]  ;;  %v673_v23 = vld [vmem:[%s9813_s2 + $0x10] sm:$0xff]  ;;  %v6694_v24 = vld [vmem:[%s9815_s0 + $0x28] sm:$0xff]  }
  0x2e   : > { %6646 = vmatprep.subr.msk.bf16.mxu0 %vm833_vm1, %v687_v8  ;;  %v835_v11 = vsel %vm833_vm1, %v687_v8, 0  ;;  %v672_v25 = vld [vmem:[%s9813_s2 + $0x8] sm:$0xff]  ;;  %v6695_v26 = vld [vmem:[%s9815_s0 + $0x30] sm:$0xff]   ;;  %v671_v27 = vld [vmem:[%s9813_s2] sm:$0xff]  ;;  %s7088_s2 = smov [#allocation3]  }
  0x2f   : > { %6581 = vmatpush3.bf16.msra.mxu0 %v835_v11  ;;  %v1013_v28 = vld [vmem:[%s9817_s29 + $0xf8] sm:$0xff]  ;;  %v1012_v29 = vld [vmem:[%s9817_s29 + $0xf0] sm:$0xff]  ;;  %v1011_v33 = vld [vmem:[%s9817_s29 + $0xe8] sm:$0xff] }
  0x30   : > { %745 = vperm.xlu1 %6688, %v682_v9   ;;  %740 = vperm.xlu0 %6687, %v681_v10   ;;  %v6696_v30 = vld [vmem:[%s9815_s0 + $0x38] sm:$0xff]   ;;  %v996_v32 = vld [vmem:[%s9817_s29 + $0x70] sm:$0xff]  ;;  %v1010_v34 = vld [vmem:[%s9817_s29 + $0xe0] sm:$0xff]  ;;  %s7025_s0 = scalar_lea.vmem %s5509_s23, 16 }
  0x31   : > { %v997_v31 = vld [vmem:[%s9817_s29 + $0x78] sm:$0xff]  ;;  %v995_v35 = vld [vmem:[%s9817_s29 + $0x68] sm:$0xff]  ;;  %v994_v36 = vld [vmem:[%s9817_s29 + $0x60] sm:$0xff]  ;;  %p7026_p11 = scmp.ne.s32.totalorder %s5509_s23, %s7025_s0 }
  0x32   : > { %6583 = vmatmul.mubr.msk.bf16.vlgmr.msra.gmra.mxu0 %vm808_vm0, %v6690_v12  ;;  %v1009_v37 = vld [vmem:[%s9817_s29 + $0xd8] sm:$0xff]  ;;  %v1008_v38 = vld [vmem:[%s9817_s29 + $0xd0] sm:$0xff]  ;;  %v1007_v41 = vld [vmem:[%s9817_s29 + $0xc8] sm:$0xff]  ;;  %s5506_s30 = scalar_lea.hbm %s10066_s25, %s5808_s28 }
  0x33   : > { %6586 = vmatprep.mubr.msk.bf16.mxu0 %vm808_vm0, %v6691_v14  ;;  %v993_v39 = vld [vmem:[%s9817_s29 + $0x58] sm:$0xff]  ;;  %v992_v40 = vld [vmem:[%s9817_s29 + $0x50] sm:$0xff]  ;;  %v1006_v42 = vld [vmem:[%s9817_s29 + $0xc0] sm:$0xff]  ;;  %p7027_p12 = pnand %p7026_p11, %p7240_p5 }
  0x34   : > { %735 = vperm.xlu1 %6688, %v680_v13   ;;  %730 = vperm.xlu0 %6687, %v679_v15   ;;  %v991_v43 = vld [vmem:[%s9817_s29 + $0x48] sm:$0xff]  ;;  %v990_v44 = vld [vmem:[%s9817_s29 + $0x40] sm:$0xff]  ;;  %v1005_v45 = vld [vmem:[%s9817_s29 + $0xb8] sm:$0xff] }
  0x35   : > { %v1004_v46 = vld [vmem:[%s9817_s29 + $0xb0] sm:$0xff]  ;;  %v989_v47 = vld [vmem:[%s9817_s29 + $0x38] sm:$0xff]  ;;  %v1003_v49 = vld [vmem:[%s9817_s29 + $0xa8] sm:$0xff]  ;;  %p7028_p13 = pneg %p7027_p12 }
  0x36   : > { %v988_v48 = vld [vmem:[%s9817_s29 + $0x30] sm:$0xff]  ;;  %v1002_v50 = vld [vmem:[%s9817_s29 + $0xa0] sm:$0xff]  ;;  %v987_v51 = vld [vmem:[%s9817_s29 + $0x28] sm:$0xff] }
  0x37   : > { %v986_v52 = vld [vmem:[%s9817_s29 + $0x20] sm:$0xff]  ;;  %v1001_v53 = vld [vmem:[%s9817_s29 + $0x98] sm:$0xff]  ;;  %v1000_v54 = vld [vmem:[%s9817_s29 + $0x90] sm:$0xff] }
  0x38   : > { %725 = vperm.xlu1 %6688, %v678_v16   ;;  %720 = vperm.xlu0 %6687, %v677_v17   ;;  %v985_v55 = vld [vmem:[%s9817_s29 + $0x18] sm:$0xff]  ;;  %v984_v56 = vld [vmem:[%s9817_s29 + $0x10] sm:$0xff]  ;;  %v999_v57 = vld [vmem:[%s9817_s29 + $0x88] sm:$0xff] }
  0x39   : > { %v998_v58 = vld [vmem:[%s9817_s29 + $0x80] sm:$0xff]  ;;  %v983_v59 = vld [vmem:[%s9817_s29 + $0x8] sm:$0xff]  ;;  %v1534_v61 = vld [vmem:[%s9818_s6 + $0xf8] sm:$0xff] }
  0x3a   : > { %6587 = vmatmul.mubr.msk.bf16.gmra.mxu0 %vm808_vm0, %v6692_v18  ;;  %v982_v60 = vld [vmem:[%s9817_s29] sm:$0xff]  ;;  %v1533_v62 = vld [vmem:[%s9818_s6 + $0xf0] sm:$0xff]  ;;  %v1518_v63 = vld [vmem:[%s9818_s6 + $0x78] sm:$0xff] }
  0x3b   : > { %6590 = vmatprep.mubr.msk.bf16.mxu0 %vm808_vm0, %v6693_v20  ;;  %v1517_v0 = vld [vmem:[%s9818_s6 + $0x70] sm:$0xff]  ;;  %v1532_v1 = vld [vmem:[%s9818_s6 + $0xe8] sm:$0xff]  ;;  %v1531_v2 = vld [vmem:[%s9818_s6 + $0xe0] sm:$0xff] }
  0x3c   : > { %715 = vperm.xlu1 %6688, %v676_v19   ;;  %710 = vperm.xlu0 %6687, %v675_v21   ;;  %v1516_v3 = vld [vmem:[%s9818_s6 + $0x68] sm:$0xff]  ;;  %v1515_v4 = vld [vmem:[%s9818_s6 + $0x60] sm:$0xff]  ;;  %v1530_v5 = vld [vmem:[%s9818_s6 + $0xd8] sm:$0xff] }
  0x3d   : > { %v1529_v6 = vld [vmem:[%s9818_s6 + $0xd0] sm:$0xff]  ;;  %v1514_v7 = vld [vmem:[%s9818_s6 + $0x58] sm:$0xff]  ;;  %v1528_v9 = vld [vmem:[%s9818_s6 + $0xc8] sm:$0xff] }
  0x3e   : > { %v1513_v8 = vld [vmem:[%s9818_s6 + $0x50] sm:$0xff]  ;;  %v1527_v10 = vld [vmem:[%s9818_s6 + $0xc0] sm:$0xff]  ;;  %v1512_v11 = vld [vmem:[%s9818_s6 + $0x48] sm:$0xff] }
  0x3f   : > { %v1511_v12 = vld [vmem:[%s9818_s6 + $0x40] sm:$0xff]  ;;  %v1526_v15 = vld [vmem:[%s9818_s6 + $0xb8] sm:$0xff]  ;;  %v1525_v16 = vld [vmem:[%s9818_s6 + $0xb0] sm:$0xff] }
  0x40   : > { %705 = vperm.xlu1 %6688, %v674_v22   ;;  %700 = vperm.xlu0 %6687, %v673_v23   ;;  %v1510_v19 = vld [vmem:[%s9818_s6 + $0x38] sm:$0xff]  ;;  %v1509_v20 = vld [vmem:[%s9818_s6 + $0x30] sm:$0xff]  ;;  %v1524_v23 = vld [vmem:[%s9818_s6 + $0xa8] sm:$0xff] }
  0x42   : > { %6591 = vmatmul.mubr.msk.bf16.gmra.mxu0 %vm808_vm0, %v6694_v24  ;;  %v1523_v24 = vld [vmem:[%s9818_s6 + $0xa0] sm:$0xff] }
  0x43   : > { %6594 = vmatprep.mubr.msk.bf16.mxu0 %vm808_vm0, %v6695_v26 }
  0x44   : > { %695 = vperm.xlu1 %6688, %v672_v25   ;;  %690 = vperm.xlu0 %6687, %v671_v27   ;;  %v1508_v27 = vld [vmem:[%s9818_s6 + $0x28] sm:$0xff] }
  0x48   : > { %1179 = vperm.xlu1 %6688, %v1013_v28   ;;  %1174 = vperm.xlu0 %6687, %v1012_v29   ;;  %v1507_v28 = vld [vmem:[%s9818_s6 + $0x20] sm:$0xff] }
  0x4a   : > { %6595 = vmatmul.mubr.msk.bf16.gmra.mxu0 %vm808_vm0, %v6696_v30 }
  0x4c   : > { %1099 = vperm.xlu1 %6688, %v997_v31   ;;  %1094 = vperm.xlu0 %6687, %v996_v32   ;;  %v6697_v31 = vld [vmem:[%s9819_s21] sm:$0xff]   ;;  %v1522_v32 = vld [vmem:[%s9818_s6 + $0x98] sm:$0xff] }
  0x4d   : > { %6614 = vmatprep.mubr.bf16.mxu1 %v6697_v31  ;;  %v2102_v31 = vld [vmem:[%s9765_s8 + $0x30] sm:$0xff] }
  0x50   : > { %1169 = vperm.xlu1 %6688, %v1011_v33   ;;  %1164 = vperm.xlu0 %6687, %v1010_v34   ;;  %v1521_v33 = vld [vmem:[%s9818_s6 + $0x90] sm:$0xff] }
  0x54   : > { %1089 = vperm.xlu1 %6688, %v995_v35   ;;  %1084 = vperm.xlu0 %6687, %v994_v36   ;;  %v1506_v36 = vld [vmem:[%s9818_s6 + $0x18] sm:$0xff] }
  0x58   : > { %1159 = vperm.xlu1 %6688, %v1009_v37   ;;  %1154 = vperm.xlu0 %6687, %v1008_v38   ;;  %v1505_v37 = vld [vmem:[%s9818_s6 + $0x10] sm:$0xff] }
  0x5c   : > { %1079 = vperm.xlu1 %6688, %v993_v39   ;;  %1074 = vperm.xlu0 %6687, %v992_v40   ;;  %v1520_v40 = vld [vmem:[%s9818_s6 + $0x88] sm:$0xff] }
  0x60   : > { %1149 = vperm.xlu1 %6688, %v1007_v41   ;;  %1144 = vperm.xlu0 %6687, %v1006_v42   ;;  %v1519_v41 = vld [vmem:[%s9818_s6 + $0x80] sm:$0xff] }
  0x64   : > { %1069 = vperm.xlu1 %6688, %v991_v43   ;;  %1064 = vperm.xlu0 %6687, %v990_v44   ;;  %v1504_v44 = vld [vmem:[%s9818_s6 + $0x8] sm:$0xff] }
  0x68   : > { %1139 = vperm.xlu1 %6688, %v1005_v45   ;;  %1134 = vperm.xlu0 %6687, %v1004_v46   ;;  %v1503_v45 = vld [vmem:[%s9818_s6] sm:$0xff] }
  0x6c   : > { %1059 = vperm.xlu1 %6688, %v989_v47   ;;  %1054 = vperm.xlu0 %6687, %v988_v48   ;;  %v2127_v48 = vld [vmem:[%s9765_s8 + $0xf8] sm:$0xff] }
  0x70   : > { %1129 = vperm.xlu1 %6688, %v1003_v49   ;;  %1124 = vperm.xlu0 %6687, %v1002_v50   ;;  %v2126_v49 = vld [vmem:[%s9765_s8 + $0xf0] sm:$0xff] }
  0x74   : > { %1049 = vperm.xlu1 %6688, %v987_v51   ;;  %1044 = vperm.xlu0 %6687, %v986_v52   ;;  %v2111_v52 = vld [vmem:[%s9765_s8 + $0x78] sm:$0xff] }
  0x78   : > { %1119 = vperm.xlu1 %6688, %v1001_v53   ;;  %1114 = vperm.xlu0 %6687, %v1000_v54   ;;  %v2110_v53 = vld [vmem:[%s9765_s8 + $0x70] sm:$0xff] }
  0x7c   : > { %1039 = vperm.xlu1 %6688, %v985_v55   ;;  %1034 = vperm.xlu0 %6687, %v984_v56   ;;  %v2125_v56 = vld [vmem:[%s9765_s8 + $0xe8] sm:$0xff] }
  0x80   : > { %1109 = vperm.xlu1 %6688, %v999_v57   ;;  %1104 = vperm.xlu0 %6687, %v998_v58   ;;  %v2124_v57 = vld [vmem:[%s9765_s8 + $0xe0] sm:$0xff] }
  0x84   : > { %1029 = vperm.xlu1 %6688, %v983_v59   ;;  %1024 = vperm.xlu0 %6687, %v982_v60   ;;  %v2109_v60 = vld [vmem:[%s9765_s8 + $0x68] sm:$0xff] }
  0x88   : > { %1708 = vperm.xlu1 %6688, %v1534_v61   ;;  %1703 = vperm.xlu0 %6687, %v1533_v62   ;;  %v2108_v61 = vld [vmem:[%s9765_s8 + $0x60] sm:$0xff] }
  0x8c   : > { %1628 = vperm.xlu1 %6688, %v1518_v63   ;;  %1623 = vperm.xlu0 %6687, %v1517_v0   ;;  %v2123_v0 = vld [vmem:[%s9765_s8 + $0xd8] sm:$0xff] }
  0x90   : > { %1698 = vperm.xlu1 %6688, %v1532_v1   ;;  %1693 = vperm.xlu0 %6687, %v1531_v2   ;;  %v2122_v1 = vld [vmem:[%s9765_s8 + $0xd0] sm:$0xff] }
  0x94   : > { %1618 = vperm.xlu1 %6688, %v1516_v3   ;;  %1613 = vperm.xlu0 %6687, %v1515_v4   ;;  %v2107_v4 = vld [vmem:[%s9765_s8 + $0x58] sm:$0xff] }
  0x98   : > { %1688 = vperm.xlu1 %6688, %v1530_v5   ;;  %1683 = vperm.xlu0 %6687, %v1529_v6   ;;  %v2106_v5 = vld [vmem:[%s9765_s8 + $0x50] sm:$0xff] }
  0x9c   : > { %1608 = vperm.xlu1 %6688, %v1514_v7   ;;  %1603 = vperm.xlu0 %6687, %v1513_v8   ;;  %v2121_v8 = vld [vmem:[%s9765_s8 + $0xc8] sm:$0xff] }
  0xa0   : > { %1678 = vperm.xlu1 %6688, %v1528_v9   ;;  %1673 = vperm.xlu0 %6687, %v1527_v10   ;;  %v2120_v9 = vld [vmem:[%s9765_s8 + $0xc0] sm:$0xff] }
  0xa3   : > { %v7479_v13 = vpop.permute.xlu0 %760  ;;  %v7481_v14 = vpop.permute.xlu1 %750 }
  0xa4   : > { %1598 = vperm.xlu1 %6688, %v1512_v11   ;;  %1593 = vperm.xlu0 %6687, %v1511_v12   ;;  %v2105_v12 = vld [vmem:[%s9765_s8 + $0x48] sm:$0xff] }
  0xa7   : > { %v7489_v17 = vpop.permute.xlu0 %765  ;;  %v7491_v18 = vpop.permute.xlu1 %755 }
  0xa8   : > { %1668 = vperm.xlu1 %6688, %v1526_v15   ;;  %1663 = vperm.xlu0 %6687, %v1525_v16   ;;  %v2104_v15 = vld [vmem:[%s9765_s8 + $0x40] sm:$0xff] }
  0xab   : > { %v7499_v21 = vpop.permute.xlu1 %745  ;;  %v7501_v22 = vpop.permute.xlu0 %740 }
  0xac   : > { %1588 = vperm.xlu1 %6688, %v1510_v19   ;;  %1583 = vperm.xlu0 %6687, %v1509_v20   ;;  %v2119_v20 = vld [vmem:[%s9765_s8 + $0xb8] sm:$0xff] }
  0xaf   : > { %v7509_v25 = vpop.permute.xlu1 %735  ;;  %v7511_v26 = vpop.permute.xlu0 %730 }
  0xb0   : > { %1658 = vperm.xlu1 %6688, %v1524_v23   ;;  %1653 = vperm.xlu0 %6687, %v1523_v24   ;;  %v2118_v23 = vld [vmem:[%s9765_s8 + $0xb0] sm:$0xff] }
  0xb3   : > { %v7519_v29 = vpop.permute.xlu1 %725  ;;  %v7521_v30 = vpop.permute.xlu0 %720 }
  0xb4   : > { %1578 = vperm.xlu1 %6688, %v1508_v27   ;;  %1573 = vperm.xlu0 %6687, %v1507_v28   ;;  %v2103_v28 = vld [vmem:[%s9765_s8 + $0x38] sm:$0xff] }
  0xb7   : > { %v7532_v34 = vpop.permute.xlu1 %715  ;;  %v7534_v35 = vpop.permute.xlu0 %710 }
  0xb8   : > { %1648 = vperm.xlu1 %6688, %v1522_v32   ;;  %1643 = vperm.xlu0 %6687, %v1521_v33  }
  0xbb   : > { %v7542_v38 = vpop.permute.xlu1 %705  ;;  %v7544_v39 = vpop.permute.xlu0 %700 }
  0xbc   : > { %1568 = vperm.xlu1 %6688, %v1506_v36   ;;  %1563 = vperm.xlu0 %6687, %v1505_v37   ;;  %v2117_v36 = vld [vmem:[%s9765_s8 + $0xa8] sm:$0xff]  ;;  %v2116_v37 = vld [vmem:[%s9765_s8 + $0xa0] sm:$0xff] }
  0xbf   : > { %v7552_v42 = vpop.permute.xlu1 %695  ;;  %v7554_v43 = vpop.permute.xlu0 %690 }
  0xc0   : > { %1638 = vperm.xlu1 %6688, %v1520_v40   ;;  %1633 = vperm.xlu0 %6687, %v1519_v41  }
  0xc3   : > { %v7562_v46 = vpop.permute.xlu1 %1179  ;;  %v7564_v47 = vpop.permute.xlu0 %1174 }
  0xc4   : > { %1558 = vperm.xlu1 %6688, %v1504_v44   ;;  %1553 = vperm.xlu0 %6687, %v1503_v45   ;;  %v2101_v44 = vld [vmem:[%s9765_s8 + $0x28] sm:$0xff]  ;;  %v2100_v45 = vld [vmem:[%s9765_s8 + $0x20] sm:$0xff] }
  0xc7   : > { %v7572_v50 = vpop.permute.xlu1 %1099  ;;  %v7574_v51 = vpop.permute.xlu0 %1094 }
  0xc8   : > { %2301 = vperm.xlu1 %6688, %v2127_v48   ;;  %2296 = vperm.xlu0 %6687, %v2126_v49  }
  0xcb   : > { %v7582_v54 = vpop.permute.xlu1 %1169  ;;  %v7584_v55 = vpop.permute.xlu0 %1164 }
  0xcc   : > { %2221 = vperm.xlu1 %6688, %v2111_v52   ;;  %2216 = vperm.xlu0 %6687, %v2110_v53   ;;  %v2115_v53 = vld [vmem:[%s9765_s8 + $0x98] sm:$0xff] }
  0xcf   : > { %v7592_v58 = vpop.permute.xlu1 %1089  ;;  %v7594_v59 = vpop.permute.xlu0 %1084 }
  0xd0   : > { %2291 = vperm.xlu1 %6688, %v2125_v56   ;;  %2286 = vperm.xlu0 %6687, %v2124_v57   ;;  %v2114_v57 = vld [vmem:[%s9765_s8 + $0x90] sm:$0xff] }
  0xd3   : > { %v7602_v62 = vpop.permute.xlu1 %1159  ;;  %v7604_v63 = vpop.permute.xlu0 %1154 }
  0xd4   : > { %2211 = vperm.xlu1 %6688, %v2109_v60   ;;  %2206 = vperm.xlu0 %6687, %v2108_v61  }
  0xd7   : > { %v7612_v2 = vpop.permute.xlu1 %1079  ;;  %v7614_v3 = vpop.permute.xlu0 %1074 }
  0xd8   : > { %2281 = vperm.xlu1 %6688, %v2123_v0   ;;  %2276 = vperm.xlu0 %6687, %v2122_v1   ;;  %v2099_v1 = vld [vmem:[%s9765_s8 + $0x18] sm:$0xff] }
  0xdb   : > { %v7622_v6 = vpop.permute.xlu1 %1149  ;;  %v7624_v7 = vpop.permute.xlu0 %1144 }
  0xdc   : > { %2201 = vperm.xlu1 %6688, %v2107_v4   ;;  %2196 = vperm.xlu0 %6687, %v2106_v5   ;;  %v2098_v5 = vld [vmem:[%s9765_s8 + $0x10] sm:$0xff] }
  0xdf   : > { %v7632_v10 = vpop.permute.xlu1 %1069  ;;  %v7634_v11 = vpop.permute.xlu0 %1064 }
  0xe0   : > { %2271 = vperm.xlu1 %6688, %v2121_v8   ;;  %2266 = vperm.xlu0 %6687, %v2120_v9  }
  0xe3   : > { %v7642_v16 = vpop.permute.xlu1 %1139  ;;  %v7644_v19 = vpop.permute.xlu0 %1134 }
  0xe4   : > { %2191 = vperm.xlu1 %6688, %v2105_v12   ;;  %2186 = vperm.xlu0 %6687, %v2104_v15   ;;  %v2113_v15 = vld [vmem:[%s9765_s8 + $0x88] sm:$0xff] }
  0xe7   : > { %v7652_v24 = vpop.permute.xlu1 %1059  ;;  %v7654_v27 = vpop.permute.xlu0 %1054 }
  0xe8   : > { %2261 = vperm.xlu1 %6688, %v2119_v20   ;;  %2256 = vperm.xlu0 %6687, %v2118_v23   ;;  %v2112_v23 = vld [vmem:[%s9765_s8 + $0x80] sm:$0xff] }
  0xeb   : > { %v7662_v32 = vpop.permute.xlu1 %1129  ;;  %v7664_v33 = vpop.permute.xlu0 %1124 }
  0xec   : > { %9820 = vst [vmem:[#allocation13_spill] sm:$0xff] %v7662_v32  ;;  %9821 = vst [vmem:[#allocation14_spill] sm:$0xff] %v7664_v33  ;;  %2181 = vperm.xlu1 %6688, %v2103_v28   ;;  %2176 = vperm.xlu0 %6687, %v2102_v31   ;;  %v2716_v32 = vld [vmem:[%s9767_s10 + $0xd8] sm:$0xff] }
  0xef   : > { %v7672_v40 = vpop.permute.xlu1 %1049  ;;  %v7674_v41 = vpop.permute.xlu0 %1044 }
  0xf0   : > { %9822 = vst [vmem:[#allocation15_spill] sm:$0xff] %v7672_v40  ;;  %9823 = vst [vmem:[#allocation16_spill] sm:$0xff] %v7674_v41  ;;  %2251 = vperm.xlu1 %6688, %v2117_v36   ;;  %2246 = vperm.xlu0 %6687, %v2116_v37   ;;  %v2097_v37 = vld [vmem:[%s9765_s8 + $0x8] sm:$0xff] }
  0xf2   : > { %v7686_v52 = vpop.f32.mrf.mxu0 }
  0xf3   : > { %v7682_v48 = vpop.permute.xlu1 %1119  ;;  %v7684_v49 = vpop.permute.xlu0 %1114 }
  0xf4   : > { %9824 = vst [vmem:[#allocation17_spill] sm:$0xff] %v7682_v48  ;;  %9825 = vst [vmem:[#allocation18_spill] sm:$0xff] %v7684_v49  ;;  %2171 = vperm.xlu1 %6688, %v2101_v44   ;;  %2166 = vperm.xlu0 %6687, %v2100_v45   ;;  %v7691_v56 = vpop.f32.mrf.mxu0  ;;  %v2096_v45 = vld [vmem:[%s9765_s8] sm:$0xff] }
  0xf6   : > { %v7700_v0 = vpop.f32.mrf.mxu0 }
  0xf7   : > { %v7696_v60 = vpop.permute.xlu1 %1039  ;;  %v7698_v61 = vpop.permute.xlu0 %1034 }
  0xf8   : > { %2241 = vperm.xlu1 %6688, %v2115_v53   ;;  %2236 = vperm.xlu0 %6687, %v2114_v57   ;;  %v7705_v4 = vpop.f32.mrf.mxu0 }
  0xfa   : > { %v7714_v12 = vpop.f32.mrf.mxu0 }
  0xfb   : > { %v7710_v8 = vpop.permute.xlu1 %1109  ;;  %v7712_v9 = vpop.permute.xlu0 %1104 }
  0xfc   : > { %9826 = vst [vmem:[#allocation19_spill] sm:$0xff] %v7710_v8  ;;  %9827 = vst [vmem:[#allocation20_spill] sm:$0xff] %v7712_v9  ;;  %2161 = vperm.xlu1 %6688, %v2099_v1   ;;  %2156 = vperm.xlu0 %6687, %v2098_v5   ;;  %v7719_v20 = vpop.f32.mrf.mxu0  ;;  %v2720_v5 = vld [vmem:[%s9767_s10 + $0xf8] sm:$0xff] }
  0xfe   : > { %v7728_v36 = vpop.f32.mrf.mxu0 }
  0xff   : > { %v7724_v28 = vpop.permute.xlu1 %1029  ;;  %v7726_v31 = vpop.permute.xlu0 %1024 }
 0x100   : > { %9828 = vst [vmem:[#allocation21_spill] sm:$0xff] %v7724_v28  ;;  %9829 = vst [vmem:[#allocation22_spill] sm:$0xff] %v7726_v31  ;;  %2231 = vperm.xlu1 %6688, %v2113_v15   ;;  %2226 = vperm.xlu0 %6687, %v2112_v23   ;;  %v7733_v44 = vpop.f32.mrf.mxu0  ;;  %v2719_v23 = vld [vmem:[%s9767_s10 + $0xf0] sm:$0xff] }
 0x102   : > { %v6592_v1 = vpop.f32.mrf.mxu0 }
 0x103   : > { %v7738_v53 = vpop.permute.xlu1 %1708  ;;  %v7740_v57 = vpop.permute.xlu0 %1703 }
 0x104   : > { %9830 = vst [vmem:[#allocation23_spill] sm:$0xff] %v7738_v53  ;;  %9831 = vst [vmem:[#allocation24_spill] sm:$0xff] %v7740_v57  ;;  %2151 = vperm.xlu1 %6688, %v2097_v37   ;;  %2146 = vperm.xlu0 %6687, %v2096_v45   ;;  %v903_v15 = vpop.f32.mrf.mxu0  ;;  %v2704_v37 = vld [vmem:[%s9767_s10 + $0x78] sm:$0xff]  ;;  %v2703_v53 = vld [vmem:[%s9767_s10 + $0x70] sm:$0xff] }
 0x106   : > { %v6593_v9 = vpop.f32.mrf.mxu0 }
 0x107   : > { %v7748_v31 = vpop.permute.xlu1 %1628  ;;  %v7750_v28 = vpop.permute.xlu0 %1623 }
 0x108   : > { %9832 = vst [vmem:[#allocation25_spill] sm:$0xff] %v7748_v31  ;;  %9833 = vst [vmem:[#allocation26_spill] sm:$0xff] %v7750_v28  ;;  %2894 = vperm.xlu1 %6688, %v2720_v5   ;;  %2889 = vperm.xlu0 %6687, %v2719_v23   ;;  %v906_v45 = vpop.f32.mrf.mxu0  ;;  %v2718_v5 = vld [vmem:[%s9767_s10 + $0xe8] sm:$0xff]  ;;  %v2717_v31 = vld [vmem:[%s9767_s10 + $0xe0] sm:$0xff] }
 0x10a   : > { %v6596_v49 = vpop.f32.mrf.mxu0 }
 0x10b   : > { %v7758_v57 = vpop.permute.xlu1 %1698  ;;  %v7760_v8 = vpop.permute.xlu0 %1693  ;;  %v928_v28 = vadd.f32 %v6596_v49, %v7479_v13  ;;  %v2701_v13 = vld [vmem:[%s9767_s10 + $0x60] sm:$0xff]  ;;  %v915_v49 = vadd.f32 %v6593_v9, %v7499_v21  ;;  %v2715_v21 = vld [vmem:[%s9767_s10 + $0xd0] sm:$0xff] }
 0x10c   : > { %9834 = vst [vmem:[#allocation27_spill] sm:$0xff] %v7758_v57  ;;  %9835 = vst [vmem:[#allocation28_spill] sm:$0xff] %v7760_v8  ;;  %2814 = vperm.xlu1 %6688, %v2704_v37   ;;  %2809 = vperm.xlu0 %6687, %v2703_v53   ;;  %v919_v23 = vpop.f32.mrf.mxu0  ;;  %v2702_v8 = vld [vmem:[%s9767_s10 + $0x68] sm:$0xff] }
 0x10d   : > { %v920_v37 = vadd.f32 %v919_v23, %v7481_v14 }
 0x10e   : > { %v6597_v57 = vpop.f32.mrf.mxu0 }
 0x10f   : > { %v7769_v41 = vpop.permute.xlu1 %1618  ;;  %v7771_v48 = vpop.permute.xlu0 %1613  ;;  %v931_v53 = vadd.f32 %v6597_v57, %v7489_v17  ;;  %v912_v17 = vadd.f32 %v6592_v1, %v7501_v22  ;;  %v899_v1 = vadd.f32 %v7728_v36, %v7519_v29  ;;  %v2713_v29 = vld [vmem:[%s9767_s10 + $0xc0] sm:$0xff] }
 0x110   : > { %9836 = vst [vmem:[#allocation29_spill] sm:$0xff] %v7769_v41  ;;  %9837 = vst [vmem:[#allocation30_spill] sm:$0xff] %v7771_v48  ;;  %2884 = vperm.xlu1 %6688, %v2718_v5   ;;  %2879 = vperm.xlu0 %6687, %v2717_v31   ;;  %v922_v40 = vpop.f32.mrf.mxu0  ;;  %v948_v41 = vmax.f32 %v928_v28, 0.0  ;;  %v946_v31 = vmax.f32 %v920_v37, 0.0  ;;  %v2700_v28 = vld [vmem:[%s9767_s10 + $0x58] sm:$0xff] }
 0x111   : > { %v949_v48 = vmax.f32 %v931_v53, 0.0  ;;  %v923_v5 = vadd.f32 %v922_v40, %v7491_v18  ;;  %v945_v18 = vmax.f32 %v915_v49, 0.0  ;;  %v907_v40 = vadd.f32 %v906_v45, %v7509_v25  ;;  %v2699_v25 = vld [vmem:[%s9767_s10 + $0x50] sm:$0xff] }
 0x112   : > { %v941_v36 = vmax.f32 %v899_v1, 0.0  ;;  %v891_v49 = vadd.f32 %v7733_v44, %v7532_v34  ;;  %v2697_v34 = vld [vmem:[%s9767_s10 + $0x40] sm:$0xff]  ;;  %v883_v44 = vadd.f32 %v7700_v0, %v7542_v38  ;;  %v2711_v38 = vld [vmem:[%s9767_s10 + $0xb0] sm:$0xff]  ;;  %v2696_v1 = vld [vmem:[%s9767_s10 + $0x38] sm:$0xff] }
 0x113   : > { %v7783_v33 = vpop.permute.xlu1 %1688  ;;  %v7785_v14 = vpop.permute.xlu0 %1683  ;;  %v947_v57 = vmax.f32 %v923_v5, 0.0  ;;  %v1021_v23 = vpack.c.bf16 %v949_v48, %v948_v41  ;;  %v944_v41 = vmax.f32 %v912_v17, 0.0  ;;  %v904_v48 = vadd.f32 %v903_v15, %v7511_v26 }
 0x114   : > { %9838 = vst [vmem:[#allocation31_spill] sm:$0xff] %v7783_v33  ;;  %9839 = vst [vmem:[#allocation32_spill] sm:$0xff] %v7785_v14  ;;  %2804 = vperm.xlu1 %6688, %v2702_v8   ;;  %2799 = vperm.xlu0 %6687, %v2701_v13   ;;  %v943_v37 = vmax.f32 %v907_v40, 0.0  ;;  %v896_v26 = vadd.f32 %v7714_v12, %v7521_v30  ;;  %v2714_v13 = vld [vmem:[%s9767_s10 + $0xc8] sm:$0xff]  ;;  %v888_v12 = vadd.f32 %v7719_v20, %v7534_v35 }
 0x115   : > { %6598 = vmatprep.subr.bf16.mxu1 %v1021_v23  ;;  %v1020_v8 = vpack.c.bf16 %v947_v57, %v946_v31  ;;  %v1019_v45 = vpack.c.bf16 %v945_v18, %v944_v41  ;;  %v942_v15 = vmax.f32 %v904_v48, 0.0  ;;  %v2698_v57 = vld [vmem:[%s9767_s10 + $0x48] sm:$0xff]  ;;  %v880_v35 = vadd.f32 %v7686_v52, %v7544_v39 }
 0x116   : > { %6599 = vmatpush3.bf16.msra.mxu1 %v1021_v23  ;;  %v940_v30 = vmax.f32 %v896_v26, 0.0  ;;  %v938_v20 = vmax.f32 %v888_v12, 0.0  ;;  %v937_v0 = vmax.f32 %v883_v44, 0.0  ;;  %v875_v41 = vadd.f32 %v7705_v4, %v7552_v42  ;;  %v2695_v42 = vld [vmem:[%s9767_s10 + $0x30] sm:$0xff]  ;;  %v6698_v12 = vld [vmem:[%s9819_s21 + $0x8] sm:$0xff]   ;;  %v2708_v44 = vld [vmem:[%s9767_s10 + $0x98] sm:$0xff] }
 0x117   : > { %v7795_v9 = vpop.permute.xlu1 %1608  ;;  %v7797_v22 = vpop.permute.xlu0 %1603  ;;  %6600 = vmatprep.subr.bf16.mxu1 %v1020_v8  ;;  %v1018_v17 = vpack.c.bf16 %v943_v37, %v942_v15  ;;  %v936_v39 = vmax.f32 %v880_v35, 0.0  ;;  %v872_v52 = vadd.f32 %v7691_v56, %v7554_v43  ;;  %v2710_v43 = vld [vmem:[%s9767_s10 + $0xa8] sm:$0xff]  ;;  %v2709_v56 = vld [vmem:[%s9767_s10 + $0xa0] sm:$0xff] }
 0x118   : > { %9840 = vst [vmem:[#allocation33_spill] sm:$0xff] %v7795_v9  ;;  %9841 = vst [vmem:[#allocation34_spill] sm:$0xff] %v7797_v22  ;;  %2874 = vperm.xlu1 %6688, %v2716_v32   ;;  %2869 = vperm.xlu0 %6687, %v2715_v21   ;;  %v1017_v23 = vpack.c.bf16 %v941_v36, %v940_v30  ;;  %v939_v21 = vmax.f32 %v891_v49, 0.0  ;;  %v2694_v49 = vld [vmem:[%s9767_s10 + $0x28] sm:$0xff]  ;;  %v5057_v22 = vld [vmem:[%s9775_s18 + $0x60] sm:$0xff] }
 0x119   : > { %v1015_v4 = vpack.c.bf16 %v937_v0, %v936_v39  ;;  %v934_v15 = vmax.f32 %v872_v52, 0.0  ;;  %v6700_v0 = vld [vmem:[%s9819_s21 + $0x18] sm:$0xff]   ;;  %v2706_v39 = vld [vmem:[%s9767_s10 + $0x88] sm:$0xff]  ;;  %v2705_v52 = vld [vmem:[%s9767_s10 + $0x80] sm:$0xff] }
 0x11a   : > { %6601 = vmatpush3.bf16.msra.mxu1 %v1020_v8  ;;  %v2712_v8 = vld [vmem:[%s9767_s10 + $0xb8] sm:$0xff] }
 0x11b   : > { %v7808_v53 = vpop.permute.xlu1 %1678  ;;  %v7810_v32 = vpop.permute.xlu0 %1673  ;;  %6602 = vmatprep.subr.bf16.mxu1 %v1019_v45 }
 0x11c   : > { %9842 = vst [vmem:[#allocation35_spill] sm:$0xff] %v7808_v53  ;;  %9843 = vst [vmem:[#allocation36_spill] sm:$0xff] %v7810_v32  ;;  %2794 = vperm.xlu1 %6688, %v2700_v28   ;;  %2789 = vperm.xlu0 %6687, %v2699_v25   ;;  %v1016_v28 = vpack.c.bf16 %v939_v21, %v938_v20  ;;  %v2692_v20 = vld [vmem:[%s9767_s10 + $0x18] sm:$0xff] }
 0x11e   : > { %6603 = vmatpush3.bf16.msra.mxu1 %v1019_v45  ;;  %v935_v45 = vmax.f32 %v875_v41, 0.0 }
 0x11f   : > { %v7822_v5 = vpop.permute.xlu1 %1598  ;;  %v7824_v31 = vpop.permute.xlu0 %1593  ;;  %6604 = vmatprep.subr.bf16.mxu1 %v1018_v17 }
 0x120   : > { %9844 = vst [vmem:[#allocation37_spill] sm:$0xff] %v7822_v5  ;;  %9845 = vst [vmem:[#allocation38_spill] sm:$0xff] %v7824_v31  ;;  %2864 = vperm.xlu1 %6688, %v2714_v13   ;;  %2859 = vperm.xlu0 %6687, %v2713_v29   ;;  %v1014_v29 = vpack.c.bf16 %v935_v45, %v934_v15  ;;  %v2689_v45 = vld [vmem:[%s9767_s10] sm:$0xff] }
 0x122   : > { %6605 = vmatpush3.bf16.msra.mxu1 %v1018_v17  ;;  %v2693_v17 = vld [vmem:[%s9767_s10 + $0x20] sm:$0xff] }
 0x123   : > { %v7836_v18 = vpop.permute.xlu1 %1668  ;;  %v7838_v40 = vpop.permute.xlu0 %1663  ;;  %6606 = vmatprep.subr.bf16.mxu1 %v1017_v23 }
 0x124   : > { %9846 = vst [vmem:[#allocation39_spill] sm:$0xff] %v7836_v18  ;;  %9847 = vst [vmem:[#allocation40_spill] sm:$0xff] %v7838_v40  ;;  %2784 = vperm.xlu1 %6688, %v2698_v57   ;;  %2779 = vperm.xlu0 %6687, %v2697_v34   ;;  %v6699_v34 = vld [vmem:[%s9819_s21 + $0x10] sm:$0xff]   ;;  %v5053_v18 = vld [vmem:[%s9775_s18 + $0x40] sm:$0xff] }
 0x126   : > { %6607 = vmatpush3.bf16.msra.mxu1 %v1017_v23  ;;  %v2707_v23 = vld [vmem:[%s9767_s10 + $0x90] sm:$0xff] }
 0x127   : > { %v7850_v48 = vpop.permute.xlu1 %1588  ;;  %v7852_v25 = vpop.permute.xlu0 %1583  ;;  %6608 = vmatprep.subr.bf16.mxu1 %v1016_v28 }
 0x128   : > { %2854 = vperm.xlu1 %6688, %v2712_v8   ;;  %2849 = vperm.xlu0 %6687, %v2711_v38   ;;  %v2691_v8 = vld [vmem:[%s9767_s10 + $0x10] sm:$0xff] }
 0x12a   : > { %6609 = vmatpush3.bf16.msra.mxu1 %v1016_v28  ;;  %v6701_v28 = vld [vmem:[%s9819_s21 + $0x20] sm:$0xff]  }
 0x12b   : > { %v7862_v37 = vpop.permute.xlu1 %1658  ;;  %v7864_v26 = vpop.permute.xlu0 %1653  ;;  %6610 = vmatprep.subr.bf16.mxu1 %v1015_v4 }
 0x12c   : > { %9848 = vst [vmem:[#allocation41_spill] sm:$0xff] %v7862_v37  ;;  %9849 = vst [vmem:[#allocation42_spill] sm:$0xff] %v7864_v26  ;;  %2774 = vperm.xlu1 %6688, %v2696_v1   ;;  %2769 = vperm.xlu0 %6687, %v2695_v42  }
 0x12e   : > { %6611 = vmatpush3.bf16.msra.mxu1 %v1015_v4  ;;  %v2690_v4 = vld [vmem:[%s9767_s10 + $0x8] sm:$0xff] }
 0x12f   : > { %v7872_v13 = vpop.permute.xlu1 %1578  ;;  %v7874_v36 = vpop.permute.xlu0 %1573  ;;  %6612 = vmatprep.subr.bf16.mxu1 %v1014_v29 }
 0x130   : > { %2844 = vperm.xlu1 %6688, %v2710_v43   ;;  %2839 = vperm.xlu0 %6687, %v2709_v56   ;;  %v6702_v43 = vld [vmem:[%s9819_s21 + $0x28] sm:$0xff]  }
 0x132   : > { %6613 = vmatpush3.bf16.msra.mxu1 %v1014_v29  ;;  %v6703_v29 = vld [vmem:[%s9819_s21 + $0x30] sm:$0xff]  }
 0x133   : > { %v7882_v30 = vpop.permute.xlu1 %1648  ;;  %v7887_v57 = vpop.permute.xlu0 %1643 }
 0x134   : > { %9850 = vst [vmem:[#allocation43_spill] sm:$0xff] %v7882_v30  ;;  %9851 = vst [vmem:[#allocation44_spill] sm:$0xff] %v7887_v57  ;;  %2764 = vperm.xlu1 %6688, %v2694_v49   ;;  %2759 = vperm.xlu0 %6687, %v2693_v17   ;;  %v3313_v49 = vld [vmem:[%s9769_s12 + $0xf8] sm:$0xff]  ;;  %v3312_v17 = vld [vmem:[%s9769_s12 + $0xf0] sm:$0xff] }
 0x135   : > { %6615 = vmatmul.mubr.bf16.vlgmr.msra.gmra.mxu1 %v6698_v12 }
 0x136   : > { %6618 = vmatprep.mubr.bf16.mxu1 %v6699_v34 }
 0x137   : > { %v7898_v21 = vpop.permute.xlu1 %1568  ;;  %v7900_v35 = vpop.permute.xlu0 %1563 }
 0x138   : > { %2834 = vperm.xlu1 %6688, %v2708_v44   ;;  %2829 = vperm.xlu0 %6687, %v2707_v23   ;;  %v3297_v44 = vld [vmem:[%s9769_s12 + $0x78] sm:$0xff]  ;;  %v3296_v23 = vld [vmem:[%s9769_s12 + $0x70] sm:$0xff] }
 0x13b   : > { %v7908_v38 = vpop.permute.xlu1 %1638  ;;  %v7913_v41 = vpop.permute.xlu0 %1633 }
 0x13c   : > { %9852 = vst [vmem:[#allocation45_spill] sm:$0xff] %v7908_v38  ;;  %9853 = vst [vmem:[#allocation46_spill] sm:$0xff] %v7913_v41  ;;  %2754 = vperm.xlu1 %6688, %v2692_v20   ;;  %2749 = vperm.xlu0 %6687, %v2691_v8   ;;  %v6704_v8 = vld [vmem:[%s9819_s21 + $0x38] sm:$0xff]  }
 0x13d   : > { %6619 = vmatmul.mubr.bf16.gmra.mxu1 %v6700_v0 }
 0x13e   : > { %6622 = vmatprep.mubr.bf16.mxu1 %v6701_v28  ;;  %v6705_v28 = vld [vmem:[%s9819_s21 + $0x40] sm:$0xff]  }
 0x13f   : > { %v7924_v1 = vpop.permute.xlu1 %1558  ;;  %v7926_v42 = vpop.permute.xlu0 %1553 }
 0x140   : > { %2824 = vperm.xlu1 %6688, %v2706_v39   ;;  %2819 = vperm.xlu0 %6687, %v2705_v52   ;;  %v3311_v39 = vld [vmem:[%s9769_s12 + $0xe8] sm:$0xff]  ;;  %v3310_v52 = vld [vmem:[%s9769_s12 + $0xe0] sm:$0xff] }
 0x143   : > { %v7934_v15 = vpop.permute.xlu1 %2301  ;;  %v7939_v56 = vpop.permute.xlu0 %2296 }
 0x144   : > { %9854 = vst [vmem:[#allocation47_spill] sm:$0xff] %v7934_v15  ;;  %9855 = vst [vmem:[#allocation48_spill] sm:$0xff] %v7939_v56  ;;  %2744 = vperm.xlu1 %6688, %v2690_v4   ;;  %2739 = vperm.xlu0 %6687, %v2689_v45  }
 0x145   : > { %6623 = vmatmul.mubr.bf16.gmra.mxu1 %v6702_v43  ;;  %v3295_v43 = vld [vmem:[%s9769_s12 + $0x68] sm:$0xff] }
 0x146   : > { %6626 = vmatprep.mubr.bf16.mxu1 %v6703_v29  ;;  %v3294_v29 = vld [vmem:[%s9769_s12 + $0x60] sm:$0xff] }
 0x147   : > { %v7950_v12 = vpop.permute.xlu1 %2221  ;;  %v7952_v34 = vpop.permute.xlu0 %2216 }
 0x148   : > { %9856 = vst [vmem:[#allocation49_spill] sm:$0xff] %v7950_v12  ;;  %9857 = vst [vmem:[#allocation50_spill] sm:$0xff] %v7952_v34  ;;  %3487 = vperm.xlu1 %6688, %v3313_v49   ;;  %3482 = vperm.xlu0 %6687, %v3312_v17   ;;  %v6706_v17 = vld [vmem:[%s9819_s21 + $0x48] sm:$0xff]   ;;  %v3285_v12 = vld [vmem:[%s9769_s12 + $0x18] sm:$0xff] }
 0x14b   : > { %v7960_v20 = vpop.permute.xlu1 %2291  ;;  %v7965_v0 = vpop.permute.xlu0 %2286 }
 0x14c   : > { %9858 = vst [vmem:[#allocation51_spill] sm:$0xff] %v7960_v20  ;;  %9859 = vst [vmem:[#allocation52_spill] sm:$0xff] %v7965_v0  ;;  %3407 = vperm.xlu1 %6688, %v3297_v44   ;;  %3402 = vperm.xlu0 %6687, %v3296_v23   ;;  %v6707_v23 = vld [vmem:[%s9819_s21 + $0x50] sm:$0xff]  }
 0x14d   : > { %6627 = vmatmul.mubr.bf16.gmra.mxu1 %v6704_v8  ;;  %v3309_v8 = vld [vmem:[%s9769_s12 + $0xd8] sm:$0xff] }
 0x14e   : > { %6630 = vmatprep.mubr.bf16.mxu1 %v6705_v28  ;;  %v3308_v28 = vld [vmem:[%s9769_s12 + $0xd0] sm:$0xff] }
 0x14f   : > { %v7976_v4 = vpop.permute.xlu1 %2211  ;;  %v7978_v45 = vpop.permute.xlu0 %2206 }
 0x150   : > { %9860 = vst [vmem:[#allocation53_spill] sm:$0xff] %v7976_v4  ;;  %9861 = vst [vmem:[#allocation54_spill] sm:$0xff] %v7978_v45  ;;  %3477 = vperm.xlu1 %6688, %v3311_v39   ;;  %3472 = vperm.xlu0 %6687, %v3310_v52   ;;  %v3906_v4 = vld [vmem:[%s9771_s14 + $0xf8] sm:$0xff] }
 0x153   : > { %v7986_v49 = vpop.permute.xlu1 %2281  ;;  %v7991_v44 = vpop.permute.xlu0 %2276 }
 0x154   : > { %9862 = vst [vmem:[#allocation55_spill] sm:$0xff] %v7986_v49  ;;  %9863 = vst [vmem:[#allocation56_spill] sm:$0xff] %v7991_v44  ;;  %3397 = vperm.xlu1 %6688, %v3295_v43   ;;  %3392 = vperm.xlu0 %6687, %v3294_v29   ;;  %v3293_v43 = vld [vmem:[%s9769_s12 + $0x58] sm:$0xff]  ;;  %v3292_v29 = vld [vmem:[%s9769_s12 + $0x50] sm:$0xff] }
 0x155   : > { %6631 = vmatmul.mubr.bf16.gmra.mxu1 %v6706_v17  ;;  %v6708_v17 = vld [vmem:[%s9819_s21 + $0x58] sm:$0xff]  }
 0x156   : > { %6634 = vmatprep.mubr.bf16.mxu1 %v6707_v23  ;;  %v6709_v23 = vld [vmem:[%s9819_s21 + $0x60] sm:$0xff]  }
 0x157   : > { %v8002_v39 = vpop.permute.xlu1 %2201  ;;  %v8004_v52 = vpop.permute.xlu0 %2196 }
 0x158   : > { %9864 = vst [vmem:[#allocation57_spill] sm:$0xff] %v8002_v39  ;;  %9865 = vst [vmem:[#allocation58_spill] sm:$0xff] %v8004_v52  ;;  %3467 = vperm.xlu1 %6688, %v3309_v8   ;;  %3462 = vperm.xlu0 %6687, %v3308_v28   ;;  %v3307_v8 = vld [vmem:[%s9769_s12 + $0xc8] sm:$0xff]  ;;  %v3306_v28 = vld [vmem:[%s9769_s12 + $0xc0] sm:$0xff] }
 0x159   : > { %v3888_v39 = vld [vmem:[%s9771_s14 + $0x68] sm:$0xff] }
 0x15b   : > { %v8012_v44 = vpop.permute.xlu1 %2271  ;;  %v8017_v49 = vpop.permute.xlu0 %2266 }
 0x15c   : > { %9866 = vst [vmem:[#allocation59_spill] sm:$0xff] %v8012_v44  ;;  %9867 = vst [vmem:[#allocation60_spill] sm:$0xff] %v8017_v49  ;;  %3387 = vperm.xlu1 %6688, %v3293_v43   ;;  %3382 = vperm.xlu0 %6687, %v3292_v29   ;;  %v3291_v43 = vld [vmem:[%s9769_s12 + $0x48] sm:$0xff]  ;;  %v3290_v29 = vld [vmem:[%s9769_s12 + $0x40] sm:$0xff] }
 0x15d   : > { %6635 = vmatmul.mubr.bf16.gmra.mxu1 %v6708_v17  ;;  %v6710_v17 = vld [vmem:[%s9819_s21 + $0x68] sm:$0xff]  }
 0x15e   : > { %6638 = vmatprep.mubr.bf16.mxu1 %v6709_v23  ;;  %v6711_v23 = vld [vmem:[%s9819_s21 + $0x70] sm:$0xff]  }
 0x15f   : > { %v8028_v44 = vpop.permute.xlu1 %2191  ;;  %v8030_v15 = vpop.permute.xlu0 %2186 }
 0x160   : > { %9868 = vst [vmem:[#allocation61_spill] sm:$0xff] %v8028_v44  ;;  %9869 = vst [vmem:[#allocation62_spill] sm:$0xff] %v8030_v15  ;;  %3457 = vperm.xlu1 %6688, %v3307_v8   ;;  %3452 = vperm.xlu0 %6687, %v3306_v28   ;;  %v3305_v8 = vld [vmem:[%s9769_s12 + $0xb8] sm:$0xff]  ;;  %v3304_v28 = vld [vmem:[%s9769_s12 + $0xb0] sm:$0xff] }
 0x163   : > { %v8038_v49 = vpop.permute.xlu1 %2261  ;;  %v8043_v0 = vpop.permute.xlu0 %2256 }
 0x164   : > { %9870 = vst [vmem:[#allocation63_spill] sm:$0xff] %v8038_v49  ;;  %9871 = vst [vmem:[#allocation64_spill] sm:$0xff] %v8043_v0  ;;  %3377 = vperm.xlu1 %6688, %v3291_v43   ;;  %3372 = vperm.xlu0 %6687, %v3290_v29   ;;  %v3289_v43 = vld [vmem:[%s9769_s12 + $0x38] sm:$0xff]  ;;  %v3288_v29 = vld [vmem:[%s9769_s12 + $0x30] sm:$0xff] }
 0x165   : > { %6639 = vmatmul.mubr.bf16.gmra.mxu1 %v6710_v17  ;;  %v6712_v0 = vld [vmem:[%s9819_s21 + $0x78] sm:$0xff]  }
 0x166   : > { %6642 = vmatprep.mubr.bf16.mxu1 %v6711_v23  ;;  %v3303_v23 = vld [vmem:[%s9769_s12 + $0xa8] sm:$0xff] }
 0x167   : > { %v8054_v49 = vpop.permute.xlu1 %2181  ;;  %v8056_v56 = vpop.permute.xlu0 %2176 }
 0x168   : > { %9872 = vst [vmem:[#allocation65_spill] sm:$0xff] %v8054_v49  ;;  %9873 = vst [vmem:[#allocation66_spill] sm:$0xff] %v8056_v56  ;;  %3447 = vperm.xlu1 %6688, %v3305_v8   ;;  %3442 = vperm.xlu0 %6687, %v3304_v28   ;;  %v3302_v8 = vld [vmem:[%s9769_s12 + $0xa0] sm:$0xff]  ;;  %v4485_v49 = vld [vmem:[%s9773_s16 + $0x88] sm:$0xff] }
 0x169   : > { %v4484_v56 = vld [vmem:[%s9773_s16 + $0x80] sm:$0xff] }
 0x16b   : > { %v8067_v17 = vpop.permute.xlu1 %2251  ;;  %v8069_v20 = vpop.permute.xlu0 %2246 }
 0x16c   : > { %9874 = vst [vmem:[#allocation67_spill] sm:$0xff] %v8067_v17  ;;  %9875 = vst [vmem:[#allocation68_spill] sm:$0xff] %v8069_v20  ;;  %3367 = vperm.xlu1 %6688, %v3289_v43   ;;  %3362 = vperm.xlu0 %6687, %v3288_v29   ;;  %v3287_v17 = vld [vmem:[%s9769_s12 + $0x28] sm:$0xff]  ;;  %v3286_v43 = vld [vmem:[%s9769_s12 + $0x20] sm:$0xff] }
 0x16d   : > { %6643 = vmatmul.mubr.bf16.gmra.mxu1 %v6712_v0  ;;  %v3301_v0 = vld [vmem:[%s9769_s12 + $0x98] sm:$0xff]  ;;  %v3300_v29 = vld [vmem:[%s9769_s12 + $0x90] sm:$0xff] }
 0x16f   : > { %v8077_v28 = vpop.permute.xlu0 %2166  ;;  %v8082_v20 = vpop.permute.xlu1 %2171 }
 0x170   : > { %3437 = vperm.xlu1 %6688, %v3303_v23   ;;  %9876 = vst [vmem:[#allocation69_spill] sm:$0xff] %v8077_v28  ;;  %3432 = vperm.xlu0 %6687, %v3302_v8   ;;  %9877 = vst [vmem:[#allocation70_spill] sm:$0xff] %v8082_v20 }
 0x173   : > { %v8093_v23 = vpop.permute.xlu0 %2236  ;;  %v8095_v8 = vpop.permute.xlu1 %2241 }
 0x174   : > { %3357 = vperm.xlu1 %6688, %v3287_v17   ;;  %3352 = vperm.xlu0 %6687, %v3286_v43   ;;  %9878 = vst [vmem:[#allocation71_spill] sm:$0xff] %v8093_v23  ;;  %9879 = vst [vmem:[#allocation72_spill] sm:$0xff] %v8095_v8  ;;  %v3284_v17 = vld [vmem:[%s9769_s12 + $0x10] sm:$0xff]  ;;  %v3299_v23 = vld [vmem:[%s9769_s12 + $0x88] sm:$0xff] }
 0x177   : > { %v8103_v43 = vpop.permute.xlu0 %2156  ;;  %v8108_v34 = vpop.permute.xlu1 %2161 }
 0x178   : > { %3427 = vperm.xlu1 %6688, %v3301_v0   ;;  %3422 = vperm.xlu0 %6687, %v3300_v29   ;;  %9880 = vst [vmem:[#allocation73_spill] sm:$0xff] %v8103_v43  ;;  %9881 = vst [vmem:[#allocation74_spill] sm:$0xff] %v8108_v34  ;;  %v3298_v0 = vld [vmem:[%s9769_s12 + $0x80] sm:$0xff]  ;;  %v3283_v29 = vld [vmem:[%s9769_s12 + $0x8] sm:$0xff] }
 0x17b   : > { %v8121_v8 = vpop.permute.xlu1 %2231 }
 0x17c   : > { %3347 = vperm.xlu1 %6688, %v3285_v12   ;;  %3342 = vperm.xlu0 %6687, %v3284_v17   ;;  %v3282_v12 = vld [vmem:[%s9769_s12] sm:$0xff]  ;;  %v8119_v17 = vpop.permute.xlu0 %2226  ;;  %9883 = vst [vmem:[#allocation76_spill] sm:$0xff] %v8121_v8 }
 0x17d   : > { %9882 = vst [vmem:[#allocation75_spill] sm:$0xff] %v8119_v17  ;;  %v3890_v17 = vld [vmem:[%s9771_s14 + $0x78] sm:$0xff] }
 0x17f   : > { %v8134_v45 = vpop.permute.xlu1 %2151 }
 0x180   : > { %3417 = vperm.xlu1 %6688, %v3299_v23   ;;  %3412 = vperm.xlu0 %6687, %v3298_v0   ;;  %v3905_v23 = vld [vmem:[%s9771_s14 + $0xf0] sm:$0xff]  ;;  %v8129_v0 = vpop.permute.xlu0 %2146  ;;  %9885 = vst [vmem:[#allocation78_spill] sm:$0xff] %v8134_v45 }
 0x181   : > { %9884 = vst [vmem:[#allocation77_spill] sm:$0xff] %v8129_v0 }
 0x183   : > { %v8147_v8 = vpop.permute.xlu1 %2894 }
 0x184   : > { %3337 = vperm.xlu1 %6688, %v3283_v29   ;;  %3332 = vperm.xlu0 %6687, %v3282_v12   ;;  %v3889_v29 = vld [vmem:[%s9771_s14 + $0x70] sm:$0xff]  ;;  %v3904_v12 = vld [vmem:[%s9771_s14 + $0xe8] sm:$0xff]  ;;  %9887 = vst [vmem:[#allocation80_spill] sm:$0xff] %v8147_v8 }
 0x187   : > { %v8160_v52 = vpop.permute.xlu1 %2814 }
 0x188   : > { %4080 = vperm.xlu1 %6688, %v3906_v4   ;;  %4075 = vperm.xlu0 %6687, %v3905_v23   ;;  %v3903_v4 = vld [vmem:[%s9771_s14 + $0xe0] sm:$0xff]  ;;  %v8145_v23 = vpop.permute.xlu0 %2889  ;;  %9889 = vst [vmem:[#allocation82_spill] sm:$0xff] %v8160_v52  ;;  %v3900_v52 = vld [vmem:[%s9771_s14 + $0xc8] sm:$0xff] }
 0x189   : > { %9886 = vst [vmem:[#allocation79_spill] sm:$0xff] %v8145_v23  ;;  %v3902_v23 = vld [vmem:[%s9771_s14 + $0xd8] sm:$0xff] }
 0x18b   : > { %v8173_v8 = vpop.permute.xlu1 %2884 }
 0x18c   : > { %4000 = vperm.xlu1 %6688, %v3890_v17   ;;  %3995 = vperm.xlu0 %6687, %v3889_v29   ;;  %v3887_v17 = vld [vmem:[%s9771_s14 + $0x60] sm:$0xff]  ;;  %v8155_v29 = vpop.permute.xlu0 %2809  ;;  %9891 = vst [vmem:[#allocation84_spill] sm:$0xff] %v8173_v8 }
 0x18d   : > { %9888 = vst [vmem:[#allocation81_spill] sm:$0xff] %v8155_v29 }
 0x18f   : > { %v8186_v29 = vpop.permute.xlu1 %2804 }
 0x190   : > { %4070 = vperm.xlu1 %6688, %v3904_v12   ;;  %4065 = vperm.xlu0 %6687, %v3903_v4   ;;  %v3901_v12 = vld [vmem:[%s9771_s14 + $0xd0] sm:$0xff]  ;;  %v3886_v4 = vld [vmem:[%s9771_s14 + $0x58] sm:$0xff]  ;;  %9893 = vst [vmem:[#allocation86_spill] sm:$0xff] %v8186_v29 }
 0x191   : > { %v3882_v29 = vld [vmem:[%s9771_s14 + $0x38] sm:$0xff] }
 0x193   : > { %v8199_v8 = vpop.permute.xlu1 %2874 }
 0x194   : > { %3990 = vperm.xlu1 %6688, %v3888_v39   ;;  %3985 = vperm.xlu0 %6687, %v3887_v17   ;;  %v3885_v39 = vld [vmem:[%s9771_s14 + $0x50] sm:$0xff]  ;;  %v8171_v17 = vpop.permute.xlu0 %2879  ;;  %9895 = vst [vmem:[#allocation88_spill] sm:$0xff] %v8199_v8 }
 0x195   : > { %9890 = vst [vmem:[#allocation83_spill] sm:$0xff] %v8171_v17  ;;  %v3884_v17 = vld [vmem:[%s9771_s14 + $0x48] sm:$0xff] }
 0x198   : > { %4060 = vperm.xlu1 %6688, %v3902_v23   ;;  %4055 = vperm.xlu0 %6687, %v3901_v12   ;;  %v3899_v23 = vld [vmem:[%s9771_s14 + $0xc0] sm:$0xff]  ;;  %v8181_v12 = vpop.permute.xlu0 %2799 }
 0x199   : > { %9892 = vst [vmem:[#allocation85_spill] sm:$0xff] %v8181_v12  ;;  %v8212_v12 = vpop.permute.xlu1 %2794 }
 0x19a   : > { %9897 = vst [vmem:[#allocation90_spill] sm:$0xff] %v8212_v12  ;;  %v3894_v12 = vld [vmem:[%s9771_s14 + $0x98] sm:$0xff] }
 0x19c   : > { %3980 = vperm.xlu1 %6688, %v3886_v4   ;;  %3975 = vperm.xlu0 %6687, %v3885_v39   ;;  %v3883_v4 = vld [vmem:[%s9771_s14 + $0x40] sm:$0xff]  ;;  %v3898_v39 = vld [vmem:[%s9771_s14 + $0xb8] sm:$0xff] }
 0x19d   : > { %v8225_v8 = vpop.permute.xlu1 %2864 }
 0x19e   : > { %9899 = vst [vmem:[#allocation92_spill] sm:$0xff] %v8225_v8 }
 0x1a0   : > { %4050 = vperm.xlu1 %6688, %v3900_v52   ;;  %4045 = vperm.xlu0 %6687, %v3899_v23   ;;  %v3897_v52 = vld [vmem:[%s9771_s14 + $0xb0] sm:$0xff]  ;;  %v8197_v23 = vpop.permute.xlu0 %2869 }
 0x1a1   : > { %9894 = vst [vmem:[#allocation87_spill] sm:$0xff] %v8197_v23  ;;  %v3896_v23 = vld [vmem:[%s9771_s14 + $0xa8] sm:$0xff] }
 0x1a4   : > { %3970 = vperm.xlu1 %6688, %v3884_v17   ;;  %3965 = vperm.xlu0 %6687, %v3883_v4   ;;  %v3881_v17 = vld [vmem:[%s9771_s14 + $0x30] sm:$0xff]  ;;  %v8207_v4 = vpop.permute.xlu0 %2789 }
 0x1a5   : > { %9896 = vst [vmem:[#allocation89_spill] sm:$0xff] %v8207_v4  ;;  %v8238_v4 = vpop.permute.xlu1 %2784 }
 0x1a6   : > { %9901 = vst [vmem:[#allocation94_spill] sm:$0xff] %v8238_v4  ;;  %v3876_v4 = vld [vmem:[%s9771_s14 + $0x8] sm:$0xff] }
 0x1a8   : > { %4040 = vperm.xlu1 %6688, %v3898_v39   ;;  %4035 = vperm.xlu0 %6687, %v3897_v52   ;;  %v3895_v39 = vld [vmem:[%s9771_s14 + $0xa0] sm:$0xff]  ;;  %v3880_v52 = vld [vmem:[%s9771_s14 + $0x28] sm:$0xff] }
 0x1a9   : > { %v8251_v8 = vpop.permute.xlu1 %2854 }
 0x1aa   : > { %9903 = vst [vmem:[#allocation96_spill] sm:$0xff] %v8251_v8 }
 0x1ac   : > { %3960 = vperm.xlu1 %6688, %v3882_v29   ;;  %3955 = vperm.xlu0 %6687, %v3881_v17   ;;  %v3879_v29 = vld [vmem:[%s9771_s14 + $0x20] sm:$0xff]  ;;  %v8223_v17 = vpop.permute.xlu0 %2859 }
 0x1ad   : > { %9898 = vst [vmem:[#allocation91_spill] sm:$0xff] %v8223_v17  ;;  %v3878_v17 = vld [vmem:[%s9771_s14 + $0x18] sm:$0xff] }
 0x1b0   : > { %4030 = vperm.xlu1 %6688, %v3896_v23   ;;  %4025 = vperm.xlu0 %6687, %v3895_v39   ;;  %v3893_v23 = vld [vmem:[%s9771_s14 + $0x90] sm:$0xff]  ;;  %v8233_v39 = vpop.permute.xlu0 %2779 }
 0x1b1   : > { %9900 = vst [vmem:[#allocation93_spill] sm:$0xff] %v8233_v39  ;;  %v8264_v39 = vpop.permute.xlu1 %2774 }
 0x1b2   : > { %9905 = vst [vmem:[#allocation98_spill] sm:$0xff] %v8264_v39  ;;  %v4497_v39 = vld [vmem:[%s9773_s16 + $0xe8] sm:$0xff] }
 0x1b4   : > { %3950 = vperm.xlu1 %6688, %v3880_v52   ;;  %3945 = vperm.xlu0 %6687, %v3879_v29   ;;  %v3877_v52 = vld [vmem:[%s9771_s14 + $0x10] sm:$0xff]  ;;  %v3892_v29 = vld [vmem:[%s9771_s14 + $0x88] sm:$0xff] }
 0x1b5   : > { %v8277_v8 = vpop.permute.xlu1 %2844 }
 0x1b6   : > { %9907 = vst [vmem:[#allocation100_spill] sm:$0xff] %v8277_v8  ;;  %v6715_v8 = vld [vmem:[%s9911_s4 + $0x4] ss:$8 sps:$4 sm:$0xff]  }
 0x1b7   : > { %1903 = vmatprep.mubr.bf16.mxu0 %v6715_v8  ;;  %v4477_v8 = vld [vmem:[%s9773_s16 + $0x48] sm:$0xff] }
 0x1b8   : > { %4020 = vperm.xlu1 %6688, %v3894_v12   ;;  %4015 = vperm.xlu0 %6687, %v3893_v23   ;;  %v3891_v12 = vld [vmem:[%s9771_s14 + $0x80] sm:$0xff]  ;;  %v8249_v23 = vpop.permute.xlu0 %2849 }
 0x1b9   : > { %9902 = vst [vmem:[#allocation95_spill] sm:$0xff] %v8249_v23  ;;  %v4499_v23 = vld [vmem:[%s9773_s16 + $0xf8] sm:$0xff] }
 0x1bc   : > { %3940 = vperm.xlu1 %6688, %v3878_v17   ;;  %3935 = vperm.xlu0 %6687, %v3877_v52   ;;  %v3875_v17 = vld [vmem:[%s9771_s14] sm:$0xff]  ;;  %v8259_v52 = vpop.permute.xlu0 %2769 }
 0x1bd   : > { %9904 = vst [vmem:[#allocation97_spill] sm:$0xff] %v8259_v52  ;;  %v8290_v52 = vpop.permute.xlu1 %2764 }
 0x1be   : > { %9909 = vst [vmem:[#allocation102_spill] sm:$0xff] %v8290_v52 }
 0x1c0   : > { %4010 = vperm.xlu1 %6688, %v3892_v29   ;;  %4005 = vperm.xlu0 %6687, %v3891_v12   ;;  %v4498_v29 = vld [vmem:[%s9773_s16 + $0xf0] sm:$0xff]  ;;  %v4483_v12 = vld [vmem:[%s9773_s16 + $0x78] sm:$0xff] }
 0x1c1   : > { %v8306_v52 = vpop.permute.xlu1 %2834 }
 0x1c2   : > { %9912 = vst [vmem:[#allocation104_spill] sm:$0xff] %v8306_v52 }
 0x1c4   : > { %3930 = vperm.xlu1 %6688, %v3876_v4   ;;  %3925 = vperm.xlu0 %6687, %v3875_v17   ;;  %v4482_v4 = vld [vmem:[%s9773_s16 + $0x70] sm:$0xff]  ;;  %v8275_v17 = vpop.permute.xlu0 %2839 }
 0x1c5   : > { %9906 = vst [vmem:[#allocation99_spill] sm:$0xff] %v8275_v17  ;;  %v4481_v17 = vld [vmem:[%s9773_s16 + $0x68] sm:$0xff]  ;;  %v8319_v52 = vpop.permute.xlu1 %2754 }
 0x1c6   : > { %9914 = vst [vmem:[#allocation106_spill] sm:$0xff] %v8319_v52  ;;  %v4491_v52 = vld [vmem:[%s9773_s16 + $0xb8] sm:$0xff] }
 0x1c8   : > { %4673 = vperm.xlu1 %6688, %v4499_v23   ;;  %4668 = vperm.xlu0 %6687, %v4498_v29   ;;  %v4496_v23 = vld [vmem:[%s9773_s16 + $0xe0] sm:$0xff]  ;;  %v8285_v29 = vpop.permute.xlu0 %2759 }
 0x1c9   : > { %9908 = vst [vmem:[#allocation101_spill] sm:$0xff] %v8285_v29 }
 0x1cc   : > { %4593 = vperm.xlu1 %6688, %v4483_v12   ;;  %4588 = vperm.xlu0 %6687, %v4482_v4   ;;  %v4480_v12 = vld [vmem:[%s9773_s16 + $0x60] sm:$0xff]  ;;  %v4495_v4 = vld [vmem:[%s9773_s16 + $0xd8] sm:$0xff] }
 0x1d0   : > { %4663 = vperm.xlu1 %6688, %v4497_v39   ;;  %4658 = vperm.xlu0 %6687, %v4496_v23   ;;  %v4494_v39 = vld [vmem:[%s9773_s16 + $0xd0] sm:$0xff]  ;;  %v8301_v23 = vpop.permute.xlu0 %2829 }
 0x1d1   : > { %9910 = vst [vmem:[#allocation103_spill] sm:$0xff] %v8301_v23  ;;  %v4493_v23 = vld [vmem:[%s9773_s16 + $0xc8] sm:$0xff] }
 0x1d4   : > { %4583 = vperm.xlu1 %6688, %v4481_v17   ;;  %4578 = vperm.xlu0 %6687, %v4480_v12   ;;  %v4479_v17 = vld [vmem:[%s9773_s16 + $0x58] sm:$0xff]  ;;  %v4478_v12 = vld [vmem:[%s9773_s16 + $0x50] sm:$0xff]  ;;  %v8314_v29 = vpop.permute.xlu0 %2749 }
 0x1d5   : > { %9913 = vst [vmem:[#allocation105_spill] sm:$0xff] %v8314_v29 }
 0x1d8   : > { %4653 = vperm.xlu1 %6688, %v4495_v4   ;;  %4648 = vperm.xlu0 %6687, %v4494_v39   ;;  %v4492_v4 = vld [vmem:[%s9773_s16 + $0xc0] sm:$0xff] }
 0x1d9   : > { %v4476_v39 = vld [vmem:[%s9773_s16 + $0x40] sm:$0xff] }
 0x1dc   : > { %4573 = vperm.xlu1 %6688, %v4479_v17   ;;  %4568 = vperm.xlu0 %6687, %v4478_v12   ;;  %v8330_v17 = vpop.permute.xlu0 %2819  ;;  %v8332_v12 = vpop.permute.xlu1 %2824 }
 0x1dd   : > { %9915 = vst [vmem:[#allocation107_spill] sm:$0xff] %v8330_v17  ;;  %9916 = vst [vmem:[#allocation108_spill] sm:$0xff] %v8332_v12  ;;  %v4475_v17 = vld [vmem:[%s9773_s16 + $0x38] sm:$0xff] }
 0x1e0   : > { %4643 = vperm.xlu1 %6688, %v4493_v23   ;;  %4638 = vperm.xlu0 %6687, %v4492_v4   ;;  %v4490_v23 = vld [vmem:[%s9773_s16 + $0xb0] sm:$0xff]  ;;  %v8340_v4 = vpop.permute.xlu0 %2739  ;;  %v8345_v29 = vpop.permute.xlu1 %2744 }
 0x1e1   : > { %9917 = vst [vmem:[#allocation109_spill] sm:$0xff] %v8340_v4  ;;  %9918 = vst [vmem:[#allocation110_spill] sm:$0xff] %v8345_v29  ;;  %v4473_v29 = vld [vmem:[%s9773_s16 + $0x28] sm:$0xff] }
 0x1e4   : > { %4563 = vperm.xlu1 %6688, %v4477_v8   ;;  %4558 = vperm.xlu0 %6687, %v4476_v39   ;;  %v4474_v8 = vld [vmem:[%s9773_s16 + $0x30] sm:$0xff]  ;;  %v4489_v39 = vld [vmem:[%s9773_s16 + $0xa8] sm:$0xff]  ;;  %v8358_v12 = vpop.permute.xlu1 %3487 }
 0x1e5   : > { %9920 = vst [vmem:[#allocation112_spill] sm:$0xff] %v8358_v12 }
 0x1e8   : > { %4633 = vperm.xlu1 %6688, %v4491_v52   ;;  %4628 = vperm.xlu0 %6687, %v4490_v23   ;;  %v4488_v52 = vld [vmem:[%s9773_s16 + $0xa0] sm:$0xff]  ;;  %v8356_v23 = vpop.permute.xlu0 %3482  ;;  %v8371_v4 = vpop.permute.xlu1 %3407 }
 0x1e9   : > { %9919 = vst [vmem:[#allocation111_spill] sm:$0xff] %v8356_v23  ;;  %v4487_v23 = vld [vmem:[%s9773_s16 + $0x98] sm:$0xff]  ;;  %9922 = vst [vmem:[#allocation114_spill] sm:$0xff] %v8371_v4 }
 0x1ec   : > { %4553 = vperm.xlu1 %6688, %v4475_v17   ;;  %4548 = vperm.xlu0 %6687, %v4474_v8   ;;  %v4472_v17 = vld [vmem:[%s9773_s16 + $0x20] sm:$0xff]  ;;  %v8366_v8 = vpop.permute.xlu0 %3402  ;;  %v8387_v15 = vpop.permute.xlu1 %3477 }
 0x1ed   : > { %9921 = vst [vmem:[#allocation113_spill] sm:$0xff] %v8366_v8  ;;  %v4470_v8 = vld [vmem:[%s9773_s16 + $0x10] sm:$0xff]  ;;  %9924 = vst [vmem:[#allocation116_spill] sm:$0xff] %v8387_v15 }
 0x1f0   : > { %4623 = vperm.xlu1 %6688, %v4489_v39   ;;  %4618 = vperm.xlu0 %6687, %v4488_v52   ;;  %v4486_v39 = vld [vmem:[%s9773_s16 + $0x90] sm:$0xff]  ;;  %v8385_v4 = vpop.permute.xlu0 %3472 }
 0x1f1   : > { %9923 = vst [vmem:[#allocation115_spill] sm:$0xff] %v8385_v4 }
 0x1f4   : > { %4543 = vperm.xlu1 %6688, %v4473_v29   ;;  %4538 = vperm.xlu0 %6687, %v4472_v17   ;;  %v4471_v29 = vld [vmem:[%s9773_s16 + $0x18] sm:$0xff]  ;;  %v8400_v15 = vpop.permute.xlu0 %3392 }
 0x1f5   : > { %v6616_v52 = vpop.f32.mrf.mxu1  ;;  %9925 = vst [vmem:[#allocation117_spill] sm:$0xff] %v8400_v15 }
 0x1f6   : > { %v1321_v17 = vadd.f32 %v6616_v52, %v7698_v61 }
 0x1f7   : > { %v8376_v12 = vpop.f32.mrf.mxu1 }
 0x1f8   : > { %4613 = vperm.xlu1 %6688, %v4487_v23   ;;  %4608 = vperm.xlu0 %6687, %v4486_v39   ;;  %v1441_v61 = vmax.f32 %v1321_v17, 0.0  ;;  %v4468_v17 = vld [vmem:[%s9773_s16] sm:$0xff] }
 0x1f9   : > { %v6617_v44 = vpop.f32.mrf.mxu1 }
 0x1fa   : > { %v1324_v23 = vadd.f32 %v6617_v44, %v7696_v60  ;;  %v4469_v44 = vld [vmem:[%s9773_s16 + $0x8] sm:$0xff] }
 0x1fb   : > { %v8390_v39 = vpop.f32.mrf.mxu1 }
 0x1fc   : > { %4533 = vperm.xlu1 %6688, %v4471_v29   ;;  %4528 = vperm.xlu0 %6687, %v4470_v8   ;;  %v1442_v52 = vmax.f32 %v1324_v23, 0.0  ;;  %v8407_v8 = vpop.permute.xlu1 %3397 }
 0x1fd   : > { %v6620_v4 = vpop.f32.mrf.mxu1  ;;  %9926 = vst [vmem:[#allocation118_spill] sm:$0xff] %v8407_v8 }
 0x1fe   : > { %v8398_v20 = vpack.c.bf16 %v1442_v52, %v1441_v61  ;;  %v1337_v29 = vadd.f32 %v6620_v4, %v7654_v27  ;;  %v5046_v61 = vld [vmem:[%s9775_s18 + $0x8] sm:$0xff]  ;;  %v5045_v27 = vld [vmem:[%s9775_s18] sm:$0xff]  ;;  %v8422_v4 = vpop.permute.xlu0 %3462 }
 0x1ff   : > { %v8402_v60 = vpop.f32.mrf.mxu1  ;;  %9927 = vst [vmem:[#allocation119_spill] sm:$0xff] %v8422_v4 }
 0x200   : > { %4603 = vperm.xlu1 %6688, %v4485_v49   ;;  %4598 = vperm.xlu0 %6687, %v4484_v56   ;;  %v1445_v52 = vmax.f32 %v1337_v29, 0.0  ;;  %v8426_v28 = vpop.permute.xlu1 %3467  ;;  %v5048_v29 = vld [vmem:[%s9775_s18 + $0x18] sm:$0xff] }
 0x201   : > { %v6621_v23 = vpop.f32.mrf.mxu1  ;;  %9928 = vst [vmem:[#allocation120_spill] sm:$0xff] %v8426_v28  ;;  %v5350_v28 = vld [vmem:[%s9776_s19] sm:$0xff] }
 0x202   : > { %v1340_v49 = vadd.f32 %v6621_v23, %v7652_v24 }
 0x203   : > { %v8414_v56 = vpop.f32.mrf.mxu1 }
 0x204   : > { %4523 = vperm.xlu1 %6688, %v4469_v44   ;;  %4518 = vperm.xlu0 %6687, %v4468_v17   ;;  %v1446_v15 = vmax.f32 %v1340_v49, 0.0  ;;  %v5047_v17 = vld [vmem:[%s9775_s18 + $0x10] sm:$0xff]  ;;  %v8440_v49 = vpop.permute.xlu0 %3382 }
 0x205   : > { %v8424_v8 = vpop.f32.mrf.mxu1  ;;  %9929 = vst [vmem:[#allocation121_spill] sm:$0xff] %v8440_v49 }
 0x206   : > { %v8428_v24 = vpack.c.bf16 %v1446_v15, %v1445_v52  ;;  %v8447_v52 = vpop.permute.xlu1 %3387 }
 0x207   : > { %v8430_v44 = vpop.f32.mrf.mxu1  ;;  %9930 = vst [vmem:[#allocation122_spill] sm:$0xff] %v8447_v52 }
 0x208   : > { %5084 = vperm.xlu1 %6688, %v5046_v61   ;;  %5079 = vperm.xlu0 %6687, %v5045_v27   ;;  %v5050_v61 = vld [vmem:[%s9775_s18 + $0x28] sm:$0xff]  ;;  %v5049_v27 = vld [vmem:[%s9775_s18 + $0x20] sm:$0xff]  ;;  %v8462_v49 = vpop.permute.xlu0 %3452 }
 0x209   : > { %v8438_v23 = vpop.f32.mrf.mxu1  ;;  %9931 = vst [vmem:[#allocation123_spill] sm:$0xff] %v8462_v49 }
 0x20a   : > { %v8464_v34 = vpop.permute.xlu1 %3457 }
 0x20b   : > { %v8442_v15 = vpop.f32.mrf.mxu1  ;;  %9932 = vst [vmem:[#allocation124_spill] sm:$0xff] %v8464_v34  ;;  %v5051_v34 = vld [vmem:[%s9775_s18 + $0x30] sm:$0xff] }
 0x20c   : > { %5094 = vperm.xlu1 %6688, %v5048_v29   ;;  %5089 = vperm.xlu0 %6687, %v5047_v17   ;;  %v5351_v17 = vld [vmem:[%s9776_s19 + $0x8] sm:$0xff]  ;;  %v8476_v0 = vpop.permute.xlu0 %3372 }
 0x20d   : > { %v8452_v4 = vpop.f32.mrf.mxu1  ;;  %9933 = vst [vmem:[#allocation125_spill] sm:$0xff] %v8476_v0  ;;  %v5052_v0 = vld [vmem:[%s9775_s18 + $0x38] sm:$0xff] }
 0x20f   : > { %v8454_v29 = vpop.f32.mrf.mxu1 }
 0x210   : > { %5104 = vperm.xlu1 %6688, %v5050_v61   ;;  %5099 = vperm.xlu0 %6687, %v5049_v27   ;;  %v5353_v61 = vld [vmem:[%s9776_s19 + $0x18] sm:$0xff]  ;;  %v5352_v27 = vld [vmem:[%s9776_s19 + $0x10] sm:$0xff]  ;;  %v8498_v37 = vpop.permute.xlu0 %3442 }
 0x211   : > { %v6629_v52 = vpop.f32.mrf.mxu1  ;;  %9935 = vst [vmem:[#allocation127_spill] sm:$0xff] %v8498_v37 }
 0x213   : > { %v8466_v43 = vpop.f32.mrf.mxu1 }
 0x214   : > { %5373 = vperm.xlu1 %6688, %v5351_v17   ;;  %5368 = vperm.xlu0 %6687, %v5350_v28   ;;  %v5354_v28 = vld [vmem:[%s9776_s19 + $0x20] sm:$0xff]  ;;  %v8483_v17 = vpop.permute.xlu1 %3377  ;;  %v8514_v37 = vpop.permute.xlu0 %3362  ;;  %v1364_v5 = vadd.f32 %v8466_v43, %v7592_v58  ;;  %v1361_v58 = vadd.f32 %v8454_v29, %v7594_v59 }
 0x215   : > { %v8474_v45 = vpop.f32.mrf.mxu1  ;;  %9934 = vst [vmem:[#allocation126_spill] sm:$0xff] %v8483_v17  ;;  %9937 = vst [vmem:[#allocation129_spill] sm:$0xff] %v8514_v37 }
 0x217   : > { %v8478_v49 = vpop.f32.mrf.mxu1 }
 0x218   : > { %5383 = vperm.xlu1 %6688, %v5353_v61   ;;  %5378 = vperm.xlu0 %6687, %v5352_v27   ;;  %v5355_v27 = vld [vmem:[%s9776_s19 + $0x28] sm:$0xff]  ;;  %v8502_v40 = vpop.permute.xlu1 %3447  ;;  %v8532_v37 = vpop.permute.xlu0 %3432 }
 0x219   : > { %v8488_v26 = vpop.f32.mrf.mxu1  ;;  %9936 = vst [vmem:[#allocation128_spill] sm:$0xff] %v8502_v40  ;;  %v5054_v40 = vld [vmem:[%s9775_s18 + $0x48] sm:$0xff]  ;;  %9939 = vst [vmem:[#allocation131_spill] sm:$0xff] %v8532_v37  ;;  %v1372_v37 = vadd.f32 %v6629_v52, %v7572_v50 }
 0x21b   : > { %v8490_v61 = vpop.f32.mrf.mxu1 }
 0x21c   : > { %5388 = vperm.xlu1 %6688, %v5354_v28   ;;  %5109 = vperm.xlu0 %6687, %v5051_v34   ;;  %v5356_v34 = vld [vmem:[%s9776_s19 + $0x30] sm:$0xff]  ;;  %v8542_v41 = vpop.permute.xlu0 %3352 }
 0x21d   : > { %v8500_v17 = vpop.f32.mrf.mxu1  ;;  %9941 = vst [vmem:[#allocation133_spill] sm:$0xff] %v8542_v41 }
 0x21f   : > { %v8504_v28 = vpop.f32.mrf.mxu1 }
 0x220   : > { %5393 = vperm.xlu1 %6688, %v5355_v27   ;;  %5114 = vperm.xlu0 %6687, %v5052_v0   ;;  %v5357_v0 = vld [vmem:[%s9776_s19 + $0x38] sm:$0xff]  ;;  %v8521_v27 = vpop.permute.xlu1 %3367 }
 0x221   : > { %v8512_v32 = vpop.f32.mrf.mxu1  ;;  %9938 = vst [vmem:[#allocation130_spill] sm:$0xff] %v8521_v27 }
 0x223   : > { %v8516_v53 = vpop.f32.mrf.mxu1 }
 0x224   : > { %5398 = vperm.xlu1 %6688, %v5356_v34   ;;  %5119 = vperm.xlu0 %6687, %v5053_v18   ;;  %v5358_v18 = vld [vmem:[%s9776_s19 + $0x40] sm:$0xff]  ;;  %v5055_v34 = vld [vmem:[%s9775_s18 + $0x50] sm:$0xff]  ;;  %v8534_v27 = vpop.permute.xlu1 %3437 }
 0x225   : > { %v6640_v14 = vpop.f32.mrf.mxu1  ;;  %9940 = vst [vmem:[#allocation132_spill] sm:$0xff] %v8534_v27 }
 0x227   : > { %v1408_v33 = vpop.f32.mrf.mxu1 }
 0x228   : > { %5403 = vperm.xlu1 %6688, %v5357_v0   ;;  %5124 = vperm.xlu0 %6687, %v5054_v40   ;;  %v5359_v40 = vld [vmem:[%s9776_s19 + $0x48] sm:$0xff]  ;;  %v5056_v0 = vld [vmem:[%s9775_s18 + $0x58] sm:$0xff] }
 0x229   : > { %v6641_v30 = vpop.f32.mrf.mxu1 }
 0x22b   : > { %v1411_v57 = vpop.f32.mrf.mxu1 }
 0x22c   : > { %5408 = vperm.xlu1 %6688, %v5358_v18   ;;  %5129 = vperm.xlu0 %6687, %v5055_v34   ;;  %v5360_v18 = vld [vmem:[%s9776_s19 + $0x50] sm:$0xff]  ;;  %v8548_v34 = vpop.permute.xlu1 %3357  ;;  %v1412_v59 = vadd.f32 %v1411_v57, %v7622_v6  ;;  %v1348_v6 = vadd.f32 %v8442_v15, %v7632_v10  ;;  %v1345_v10 = vadd.f32 %v8430_v44, %v7634_v11 }
 0x22d   : > { %v6644_v38 = vpop.f32.mrf.mxu1  ;;  %9942 = vst [vmem:[#allocation134_spill] sm:$0xff] %v8548_v34  ;;  %v1401_v15 = vadd.f32 %v8500_v17, %v7644_v19  ;;  %v5364_v11 = vld [vmem:[%s9776_s19 + $0x70] sm:$0xff] }
 0x22e   : > { %v1433_v27 = vadd.f32 %v6644_v38, %v7564_v47  ;;  %v5361_v47 = vld [vmem:[%s9776_s19 + $0x58] sm:$0xff]  ;;  %v1420_v38 = vadd.f32 %v6641_v30, %v7602_v62  ;;  %v1447_v44 = vmax.f32 %v1345_v10, 0.0 }
 0x22f   : > { %v1424_v9 = vpop.f32.mrf.mxu1 }
 0x230   : > { %5413 = vperm.xlu1 %6688, %v5359_v40   ;;  %5134 = vperm.xlu0 %6687, %v5056_v0   ;;  %v1369_v40 = vadd.f32 %v8452_v4, %v7574_v51  ;;  %v1425_v50 = vadd.f32 %v1424_v9, %v7584_v55  ;;  %v1454_v0 = vmax.f32 %v1372_v37, 0.0  ;;  %v1469_v31 = vmax.f32 %v1433_v27, 0.0  ;;  %v8568_v55 = vpop.permute.xlu0 %3422 }
 0x231   : > { %v6645_v41 = vpop.f32.mrf.mxu1  ;;  %v1417_v37 = vadd.f32 %v6640_v14, %v7604_v63  ;;  %v1452_v27 = vmax.f32 %v1364_v5, 0.0  ;;  %v5059_v63 = vld [vmem:[%s9775_s18 + $0x70] sm:$0xff]  ;;  %v1353_v14 = vadd.f32 %v8424_v8, %v7614_v3  ;;  %v1404_v8 = vadd.f32 %v8512_v32, %v7642_v16  ;;  %v5365_v16 = vld [vmem:[%s9776_s19 + $0x78] sm:$0xff] }
 0x232   : > { %v1436_v52 = vadd.f32 %v6645_v41, %v7562_v46  ;;  %v5058_v46 = vld [vmem:[%s9775_s18 + $0x68] sm:$0xff]  ;;  %v1453_v9 = vmax.f32 %v1369_v40, 0.0  ;;  %v1467_v41 = vmax.f32 %v1425_v50, 0.0 }
 0x233   : > { %v1427_v34 = vpop.f32.mrf.mxu1  ;;  %v1465_v5 = vmax.f32 %v1417_v37, 0.0  ;;  %v5363_v50 = vld [vmem:[%s9776_s19 + $0x68] sm:$0xff]  ;;  %v1462_v32 = vmax.f32 %v1404_v8, 0.0 }
 0x234   : > { %5418 = vperm.xlu1 %6688, %v5360_v18   ;;  %5139 = vperm.xlu0 %6687, %v5057_v22   ;;  %v1470_v51 = vmax.f32 %v1436_v52, 0.0  ;;  %v1428_v4 = vadd.f32 %v1427_v34, %v7582_v54  ;;  %v8572_v22 = vpop.permute.xlu1 %3427  ;;  %v1356_v54 = vadd.f32 %v8438_v23, %v7612_v2  ;;  %v1542_v43 = vpack.c.bf16 %v1454_v0, %v1453_v9  ;;  %v5362_v18 = vld [vmem:[%s9776_s19 + $0x60] sm:$0xff]  ;;  %v8587_v23 = vpop.permute.xlu0 %3342  ;;  %v5060_v52 = vld [vmem:[%s9775_s18 + $0x78] sm:$0xff]  ;;  %v9944_v37 = vld [vmem:[#allocation14_spill] sm:$0xff] }
 0x235   : > { %v1466_v34 = vmax.f32 %v1420_v38, 0.0  ;;  %v1451_v2 = vmax.f32 %v1361_v58, 0.0  ;;  %v1449_v0 = vmax.f32 %v1353_v14, 0.0  ;;  %v1461_v58 = vmax.f32 %v1401_v15, 0.0 }
 0x236   : > { %v1550_v62 = vpack.c.bf16 %v1470_v51, %v1469_v31  ;;  %v1468_v30 = vmax.f32 %v1428_v4, 0.0  ;;  %v1409_v31 = vadd.f32 %v1408_v33, %v7624_v7  ;;  %v1450_v40 = vmax.f32 %v1356_v54, 0.0  ;;  %v9943_v4 = vld [vmem:[#allocation13_spill] sm:$0xff] }
 0x237   : > { %v1541_v57 = vpack.c.bf16 %v1452_v27, %v1451_v2  ;;  %v1548_v7 = vpack.c.bf16 %v1466_v34, %v1465_v5  ;;  %v1464_v33 = vmax.f32 %v1412_v59, 0.0  ;;  %v1448_v51 = vmax.f32 %v1348_v6, 0.0  ;;  %v9946_v54 = vld [vmem:[#allocation17_spill] sm:$0xff]  ;;  %v5483_v34 = vld [vmem:[#allocation2] sm:$0x1] }
 0x238   : > { %5423 = vperm.xlu1 %6688, %v5361_v47   ;;  %5144 = vperm.xlu0 %6687, %v5058_v46   ;;  %v1549_v29 = vpack.c.bf16 %v1468_v30, %v1467_v41  ;;  %v8594_v3 = vpop.permute.xlu1 %3347  ;;  %v1463_v47 = vmax.f32 %v1409_v31, 0.0  ;;  %v1540_v38 = vpack.c.bf16 %v1450_v40, %v1449_v0  ;;  %v1396_v46 = vadd.f32 %v8516_v53, %v9943_v4  ;;  %v8613_v19 = vpop.permute.xlu0 %3412  ;;  %v9947_v59 = vld [vmem:[#allocation16_spill] sm:$0xff]  ;;  %v9949_v31 = vld [vmem:[#allocation19_spill] sm:$0xff]  ;;  %v9952_v0 = vld [vmem:[#allocation22_spill] sm:$0xff] }
 0x239   : > { %5844 = vmatprep.subr.bf16.mxu0 %v1550_v62  ;;  %v1393_v41 = vadd.f32 %v8504_v28, %v9944_v37  ;;  %v9945_v62 = vld [vmem:[#allocation15_spill] sm:$0xff]  ;;  %v1539_v30 = vpack.c.bf16 %v1448_v51, %v1447_v44  ;;  %v1546_v27 = vpack.c.bf16 %v1462_v32, %v1461_v58  ;;  %v1313_v10 = vadd.f32 %v8376_v12, %v9952_v0  ;;  %v6721_v51 = vld [vmem:[%s9911_s4 + $0x20] ss:$8 sps:$4 sm:$0xff]   ;;  %v6725_v4 = vld [vmem:[%s9911_s4 + $0x44] ss:$8 sps:$4 sm:$0xff]  }
 0x23a   : > { %5845 = vmatpush3.bf16.msra.mxu0 %v1542_v43  ;;  %v1547_v9 = vpack.c.bf16 %v1464_v33, %v1463_v47  ;;  %v1332_v53 = vadd.f32 %v8414_v56, %v9945_v62  ;;  %v1388_v43 = vadd.f32 %v8488_v26, %v9946_v54  ;;  %v1380_v26 = vadd.f32 %v8490_v61, %v9949_v31  ;;  %v6718_v12 = vld [vmem:[%s9911_s4 + $0x10] ss:$8 sps:$4 sm:$0xff]   ;;  %v6731_v44 = vld [vmem:[%s9911_s4 + $0x64] ss:$8 sps:$4 sm:$0xff]   ;;  %v6733_v58 = vld [vmem:[%s9911_s4 + $0x60] ss:$8 sps:$4 sm:$0xff]  }
 0x23b   : > { %5846 = vmatprep.subr.bf16.mxu0 %v1549_v29  ;;  %v1329_v29 = vadd.f32 %v8402_v60, %v9947_v59  ;;  %v1459_v14 = vmax.f32 %v1393_v41, 0.0  ;;  %v9950_v60 = vld [vmem:[#allocation20_spill] sm:$0xff]  ;;  %v6737_v62 = vld [vmem:[%s9911_s4 + $0x84] ss:$8 sps:$4 sm:$0xff]  }
 0x23c   : > { %5428 = vperm.xlu1 %6688, %v5362_v18   ;;  %5149 = vperm.xlu0 %6687, %v5059_v63   ;;  %v8615_v17 = vpop.permute.xlu1 %3417  ;;  %v1460_v18 = vmax.f32 %v1396_v46, 0.0  ;;  %v9948_v63 = vld [vmem:[#allocation18_spill] sm:$0xff]  ;;  %v8627_v2 = vpop.permute.xlu0 %3332  ;;  %v1444_v56 = vmax.f32 %v1332_v53, 0.0  ;;  %v1458_v5 = vmax.f32 %v1388_v43, 0.0  ;;  %v6734_v37 = vld [vmem:[%s9911_s4 + $0x74] ss:$8 sps:$4 sm:$0xff]  }
 0x23d   : > { %v1385_v28 = vadd.f32 %v8474_v45, %v9948_v63  ;;  %v1443_v6 = vmax.f32 %v1329_v29, 0.0  ;;  %v9951_v45 = vld [vmem:[#allocation21_spill] sm:$0xff]  ;;  %v6724_v32 = vld [vmem:[%s9911_s4 + $0x30] ss:$8 sps:$4 sm:$0xff]   ;;  %v6752_v63 = vld [vmem:[%s9911_s4 + $0xd4] ss:$8 sps:$4 sm:$0xff]  }
 0x23e   : > { %5847 = vmatpush3.bf16.msra.mxu0 %v1541_v57  ;;  %v1545_v40 = vpack.c.bf16 %v1460_v18, %v1459_v14  ;;  %v1316_v8 = vadd.f32 %v8390_v39, %v9951_v45  ;;  %v6713_v39 = vld [vmem:[%s9911_s4] ss:$8 sps:$4 sm:$0xff]   ;;  %v6736_v41 = vld [vmem:[%s9911_s4 + $0x70] ss:$8 sps:$4 sm:$0xff]   ;;  %v6743_v43 = vld [vmem:[%s9911_s4 + $0xa4] ss:$8 sps:$4 sm:$0xff]  }
 0x23f   : > { %5848 = vmatprep.subr.bf16.mxu0 %v1548_v7  ;;  %v1457_v57 = vmax.f32 %v1385_v28, 0.0  ;;  %v1537_v7 = vpack.c.bf16 %v1444_v56, %v1443_v6  ;;  %v6727_v46 = vld [vmem:[%s9911_s4 + $0x40] ss:$8 sps:$4 sm:$0xff]   ;;  %v6742_v54 = vld [vmem:[%s9911_s4 + $0x90] ss:$8 sps:$4 sm:$0xff]  }
 0x240   : > { %5433 = vperm.xlu1 %6688, %v5363_v50   ;;  %5154 = vperm.xlu0 %6687, %v5060_v52   ;;  %v1377_v50 = vadd.f32 %v8478_v49, %v9950_v60  ;;  %v1456_v52 = vmax.f32 %v1380_v26, 0.0  ;;  %v1440_v15 = vmax.f32 %v1316_v8, 0.0  ;;  %v6739_v53 = vld [vmem:[%s9911_s4 + $0x80] ss:$8 sps:$4 sm:$0xff]   ;;  %v6746_v18 = vld [vmem:[%s9911_s4 + $0xb4] ss:$8 sps:$4 sm:$0xff]  }
 0x241   : > { %v1544_v33 = vpack.c.bf16 %v1458_v5, %v1457_v57  ;;  %v6749_v59 = vld [vmem:[%s9911_s4 + $0xc4] ss:$8 sps:$4 sm:$0xff]   ;;  %v6751_v29 = vld [vmem:[%s9911_s4 + $0xc0] ss:$8 sps:$4 sm:$0xff]   ;;  %v6754_v28 = vld [vmem:[%s9911_s4 + $0xd0] ss:$8 sps:$4 sm:$0xff]  }
 0x242   : > { %5849 = vmatpush3.bf16.msra.mxu0 %v1540_v38  ;;  %v1455_v61 = vmax.f32 %v1377_v50, 0.0  ;;  %v6716_v38 = vld [vmem:[%s9911_s4 + $0x14] ss:$8 sps:$4 sm:$0xff]   ;;  %v6755_v14 = vld [vmem:[%s9911_s4 + $0xe4] ss:$8 sps:$4 sm:$0xff]  }
 0x243   : > { %5850 = vmatprep.subr.bf16.mxu0 %v1547_v9  ;;  %v6728_v9 = vld [vmem:[%s9911_s4 + $0x54] ss:$8 sps:$4 sm:$0xff]   ;;  %v6757_v56 = vld [vmem:[%s9911_s4 + $0xe0] ss:$8 sps:$4 sm:$0xff]   ;;  %v6760_v31 = vld [vmem:[%s9911_s4 + $0xf0] ss:$8 sps:$4 sm:$0xff]  }
 0x244   : > { %5443 = vperm.xlu1 %6688, %v5365_v16   ;;  %5438 = vperm.xlu0 %6687, %v5364_v11   ;;  %v1543_v47 = vpack.c.bf16 %v1456_v52, %v1455_v61  ;;  %v6722_v16 = vld [vmem:[%s9911_s4 + $0x34] ss:$8 sps:$4 sm:$0xff]   ;;  %v6730_v11 = vld [vmem:[%s9911_s4 + $0x50] ss:$8 sps:$4 sm:$0xff]  }
 0x245   : > { %v6758_v5 = vld [vmem:[%s9911_s4 + $0xf4] ss:$8 sps:$4 sm:$0xff]  }
 0x246   : > { %5851 = vmatpush3.bf16.msra.mxu0 %v1539_v30  ;;  %v6740_v30 = vld [vmem:[%s9911_s4 + $0x94] ss:$8 sps:$4 sm:$0xff]  }
 0x247   : > { %5852 = vmatprep.subr.bf16.mxu0 %v1546_v27  ;;  %v6745_v27 = vld [vmem:[%s9911_s4 + $0xa0] ss:$8 sps:$4 sm:$0xff]  }
 0x248   : > { %5486 = vperm.xlu0 %6687, %v5483_v34   ;;  %v6748_v34 = vld [vmem:[%s9911_s4 + $0xb0] ss:$8 sps:$4 sm:$0xff]  }
 0x24a   : > { %5853 = vmatpush3.bf16.msra.mxu0 %v8428_v24  ;;  %v1439_v24 = vmax.f32 %v1313_v10, 0.0 }
 0x24b   : > { %5854 = vmatprep.subr.bf16.mxu0 %v1545_v40 }
 0x24c   : > { %v1535_v49 = vpack.c.bf16 %v1440_v15, %v1439_v24 }
 0x24e   : > { %5855 = vmatpush3.bf16.msra.mxu0 %v1537_v7 }
 0x24f   : > { %5856 = vmatprep.subr.bf16.mxu0 %v1544_v33 }
 0x252   : > { %5857 = vmatpush3.bf16.msra.mxu0 %v8398_v20  ;;  %v6719_v20 = vld [vmem:[%s9911_s4 + $0x24] ss:$8 sps:$4 sm:$0xff]   ;;  %s7029_s4 = sshll.u32 %s7088_s2, 4  ;;  %s7030_s4 = int_to_ptr.vmem [resolvable:$false] %s7029_s4 }
 0x253   : > { %5858 = vmatprep.subr.bf16.mxu0 %v1543_v47  ;;  %s7031_s20 = scalar_lea.vmem %s7030_s4, 32  ;;  %p7032_p0 = scmp.lt.s32.totalorder %s5509_s23, %s7030_s4 }
 0x254   : > { %p7033_p1 = scmp.lt.s32.totalorder %s7031_s20, %s7025_s0 }
 0x256   : > { %5859 = vmatpush3.bf16.msra.mxu0 %v1535_v49  ;;  %p7034_p2 = por %p7033_p1, %p7032_p0 }
 0x258   : > { %p7035_p3 = pnand %p7034_p2, %p7028_p13 }
 0x259   : > { %1904 = vmatmul.mubr.bf16.vlgmr.msra.gmra.mxu0 %v6713_v39 }
 0x25a   : > { %1911 = vmatprep.mubr.bf16.mxu0 %v6716_v38 }
 0x261   : > { %1912 = vmatmul.mubr.bf16.gmra.mxu0 %v6718_v12 }
 0x262   : > { %1919 = vmatprep.mubr.bf16.mxu0 %v6719_v20 }
 0x269   : > { %1920 = vmatmul.mubr.bf16.gmra.mxu0 %v6721_v51 }
 0x26a   : > { %1927 = vmatprep.mubr.bf16.mxu0 %v6722_v16 }
 0x271   : > { %1928 = vmatmul.mubr.bf16.gmra.mxu0 %v6724_v32 }
 0x272   : > { %1935 = vmatprep.mubr.bf16.mxu0 %v6725_v4 }
 0x279   : > { %1936 = vmatmul.mubr.bf16.gmra.mxu0 %v6727_v46 }
 0x27a   : > { %1943 = vmatprep.mubr.bf16.mxu0 %v6728_v9 }
 0x281   : > { %1944 = vmatmul.mubr.bf16.gmra.mxu0 %v6730_v11 }
 0x282   : > { %1951 = vmatprep.mubr.bf16.mxu0 %v6731_v44 }
 0x289   : > { %1952 = vmatmul.mubr.bf16.gmra.mxu0 %v6733_v58 }
 0x28a   : > { %1959 = vmatprep.mubr.bf16.mxu0 %v6734_v37 }
 0x291   : > { %1960 = vmatmul.mubr.bf16.gmra.mxu0 %v6736_v41 }
 0x292   : > { %1967 = vmatprep.mubr.bf16.mxu0 %v6737_v62 }
 0x299   : > { %1968 = vmatmul.mubr.bf16.gmra.mxu0 %v6739_v53 }
 0x29a   : > { %1975 = vmatprep.mubr.bf16.mxu0 %v6740_v30 }
 0x2a1   : > { %1976 = vmatmul.mubr.bf16.gmra.mxu0 %v6742_v54 }
 0x2a2   : > { %1983 = vmatprep.mubr.bf16.mxu0 %v6743_v43 }
 0x2a9   : > { %1984 = vmatmul.mubr.bf16.gmra.mxu0 %v6745_v27 }
 0x2aa   : > { %1991 = vmatprep.mubr.bf16.mxu0 %v6746_v18 }
 0x2b1   : > { %1992 = vmatmul.mubr.bf16.gmra.mxu0 %v6748_v34 }
 0x2b2   : > { %1999 = vmatprep.mubr.bf16.mxu0 %v6749_v59 }
 0x2b9   : > { %2000 = vmatmul.mubr.bf16.gmra.mxu0 %v6751_v29 }
 0x2ba   : > { %2007 = vmatprep.mubr.bf16.mxu0 %v6752_v63 }
 0x2c1   : > { %2008 = vmatmul.mubr.bf16.gmra.mxu0 %v6754_v28  ;;  %v9953_v28 = vld [vmem:[#allocation38_spill] sm:$0xff] }
 0x2c2   : > { %2015 = vmatprep.mubr.bf16.mxu0 %v6755_v14 }
 0x2c9   : > { %2016 = vmatmul.mubr.bf16.gmra.mxu0 %v6757_v56 }
 0x2ca   : > { %2023 = vmatprep.mubr.bf16.mxu0 %v6758_v5  ;;  %v9954_v5 = vld [vmem:[#allocation37_spill] sm:$0xff] }
 0x2d1   : > { %2024 = vmatmul.mubr.bf16.gmra.mxu0 %v6760_v31 }
 0x319   : > { %v5860_v26 = vpop.f32.mrf.mxu0 }
 0x31b   : > { %v5861_v40 = vpop.f32.mrf.mxu0 }
 0x31c   : > { %v5862_v6 = vadd.f32 %v5861_v40, %v5860_v26 }
 0x31d   : > { %v5863_v57 = vpop.f32.mrf.mxu0 }
 0x31e   : > { %v1906_v50 = vadd.f32 %v5862_v6, %v7926_v42 }
 0x31f   : > { %v5864_v60 = vpop.f32.mrf.mxu0 }
 0x320   : > { %v5865_v45 = vadd.f32 %v5864_v60, %v5863_v57  ;;  %v2032_v52 = vmax.f32 %v1906_v50, 0.0 }
 0x321   : > { %v5866_v8 = vpop.f32.mrf.mxu0 }
 0x322   : > { %v1909_v7 = vadd.f32 %v5865_v45, %v7924_v1  ;;  %v9955_v45 = vld [vmem:[#allocation34_spill] sm:$0xff] }
 0x323   : > { %v5867_v33 = vpop.f32.mrf.mxu0 }
 0x324   : > { %v2033_v0 = vmax.f32 %v1909_v7, 0.0  ;;  %v5868_v10 = vadd.f32 %v5867_v33, %v5866_v8 }
 0x325   : > { %v5869_v61 = vpop.f32.mrf.mxu0 }
 0x326   : > { %v8734_v15 = vpack.c.bf16 %v2033_v0, %v2032_v52  ;;  %v1914_v24 = vadd.f32 %v5868_v10, %v7900_v35  ;;  %v9956_v52 = vld [vmem:[#allocation33_spill] sm:$0xff] }
 0x327   : > { %v5870_v47 = vpop.f32.mrf.mxu0 }
 0x328   : > { %v5871_v49 = vadd.f32 %v5870_v47, %v5869_v61  ;;  %v2034_v42 = vmax.f32 %v1914_v24, 0.0 }
 0x329   : > { %v5872_v39 = vpop.f32.mrf.mxu0 }
 0x32a   : > { %v1917_v38 = vadd.f32 %v5871_v49, %v7898_v21 }
 0x32b   : > { %v5873_v12 = vpop.f32.mrf.mxu0 }
 0x32c   : > { %v2035_v20 = vmax.f32 %v1917_v38, 0.0  ;;  %v5874_v51 = vadd.f32 %v5873_v12, %v5872_v39  ;;  %v9957_v12 = vld [vmem:[#allocation30_spill] sm:$0xff] }
 0x32d   : > { %v5875_v16 = vpop.f32.mrf.mxu0 }
 0x32e   : > { %v8738_v1 = vpack.c.bf16 %v2035_v20, %v2034_v42  ;;  %v1922_v4 = vadd.f32 %v5874_v51, %v7874_v36 }
 0x32f   : > { %v5876_v32 = vpop.f32.mrf.mxu0 }
 0x330   : > { %v5877_v46 = vadd.f32 %v5876_v32, %v5875_v16  ;;  %v2036_v35 = vmax.f32 %v1922_v4, 0.0  ;;  %v9958_v16 = vld [vmem:[#allocation29_spill] sm:$0xff] }
 0x331   : > { %v5878_v9 = vpop.f32.mrf.mxu0 }
 0x332   : > { %v1925_v11 = vadd.f32 %v5877_v46, %v7872_v13  ;;  %v6763_v13 = vld [vmem:[%s9764_s7 + $0x4] ss:$8 sps:$4 sm:$0xff]  }
 0x333   : > { %v5879_v44 = vpop.f32.mrf.mxu0  ;;  %2496 = vmatprep.mubr.bf16.mxu1 %v6763_v13 }
 0x334   : > { %v2037_v58 = vmax.f32 %v1925_v11, 0.0  ;;  %v5880_v37 = vadd.f32 %v5879_v44, %v5878_v9 }
 0x335   : > { %v5881_v41 = vpop.f32.mrf.mxu0 }
 0x336   : > { %v8742_v21 = vpack.c.bf16 %v2037_v58, %v2036_v35  ;;  %v1930_v53 = vadd.f32 %v5880_v37, %v7852_v25  ;;  %v9959_v37 = vld [vmem:[#allocation26_spill] sm:$0xff] }
 0x337   : > { %v5882_v62 = vpop.f32.mrf.mxu0 }
 0x338   : > { %v5883_v30 = vadd.f32 %v5882_v62, %v5881_v41  ;;  %v2038_v36 = vmax.f32 %v1930_v53, 0.0 }
 0x339   : > { %v5884_v54 = vpop.f32.mrf.mxu0 }
 0x33a   : > { %v1933_v43 = vadd.f32 %v5883_v30, %v7850_v48  ;;  %v9960_v30 = vld [vmem:[#allocation25_spill] sm:$0xff] }
 0x33b   : > { %v5885_v27 = vpop.f32.mrf.mxu0 }
 0x33c   : > { %v2039_v18 = vmax.f32 %v1933_v43, 0.0  ;;  %v5886_v34 = vadd.f32 %v5885_v27, %v5884_v54 }
 0x33d   : > { %v5887_v59 = vpop.f32.mrf.mxu0 }
 0x33e   : > { %v8749_v29 = vpack.c.bf16 %v2039_v18, %v2038_v36  ;;  %v1938_v14 = vadd.f32 %v5886_v34, %v9953_v28 }
 0x33f   : > { %v5888_v63 = vpop.f32.mrf.mxu0 }
 0x340   : > { %v5889_v25 = vadd.f32 %v5888_v63, %v5887_v59  ;;  %v2040_v26 = vmax.f32 %v1938_v14, 0.0  ;;  %v9961_v63 = vld [vmem:[#allocation46_spill] sm:$0xff] }
 0x341   : > { %v5890_v56 = vpop.f32.mrf.mxu0 }
 0x342   : > { %v1941_v31 = vadd.f32 %v5889_v25, %v9954_v5 }
 0x343   : > { %v5891_v48 = vpop.f32.mrf.mxu0 }
 0x344   : > { %v2041_v40 = vmax.f32 %v1941_v31, 0.0  ;;  %v5892_v6 = vadd.f32 %v5891_v48, %v5890_v56  ;;  %v9962_v56 = vld [vmem:[#allocation45_spill] sm:$0xff] }
 0x345   : > { %v5893_v57 = vpop.f32.mrf.mxu0 }
 0x346   : > { %v8753_v60 = vpack.c.bf16 %v2041_v40, %v2040_v26  ;;  %v1946_v8 = vadd.f32 %v5892_v6, %v9955_v45  ;;  %v9963_v45 = vld [vmem:[#allocation44_spill] sm:$0xff] }
 0x347   : > { %v5894_v50 = vpop.f32.mrf.mxu0 }
 0x348   : > { %v5895_v7 = vadd.f32 %v5894_v50, %v5893_v57  ;;  %v2042_v61 = vmax.f32 %v1946_v8, 0.0 }
 0x349   : > { %v5896_v33 = vpop.f32.mrf.mxu0 }
 0x34a   : > { %v1949_v0 = vadd.f32 %v5895_v7, %v9956_v52  ;;  %v9964_v52 = vld [vmem:[#allocation43_spill] sm:$0xff] }
 0x34b   : > { %v5897_v10 = vpop.f32.mrf.mxu0 }
 0x34c   : > { %v2043_v47 = vmax.f32 %v1949_v0, 0.0  ;;  %v5898_v24 = vadd.f32 %v5897_v10, %v5896_v33 }
 0x34d   : > { %v5899_v49 = vpop.f32.mrf.mxu0 }
 0x34e   : > { %v8757_v39 = vpack.c.bf16 %v2043_v47, %v2042_v61  ;;  %v1954_v42 = vadd.f32 %v5898_v24, %v9957_v12 }
 0x34f   : > { %v5900_v38 = vpop.f32.mrf.mxu0 }
 0x350   : > { %v5901_v20 = vadd.f32 %v5900_v38, %v5899_v49  ;;  %v2044_v46 = vmax.f32 %v1954_v42, 0.0 }
 0x351   : > { %v5902_v51 = vpop.f32.mrf.mxu0 }
 0x352   : > { %v1957_v32 = vadd.f32 %v5901_v20, %v9958_v16 }
 0x353   : > { %v5903_v4 = vpop.f32.mrf.mxu0 }
 0x354   : > { %v2045_v9 = vmax.f32 %v1957_v32, 0.0  ;;  %v5904_v11 = vadd.f32 %v5903_v4, %v5902_v51 }
 0x355   : > { %v5905_v44 = vpop.f32.mrf.mxu0 }
 0x356   : > { %v8761_v35 = vpack.c.bf16 %v2045_v9, %v2044_v46  ;;  %v1962_v41 = vadd.f32 %v5904_v11, %v9959_v37 }
 0x357   : > { %v5906_v58 = vpop.f32.mrf.mxu0 }
 0x358   : > { %v5907_v62 = vadd.f32 %v5906_v58, %v5905_v44  ;;  %v2046_v27 = vmax.f32 %v1962_v41, 0.0 }
 0x359   : > { %v5908_v53 = vpop.f32.mrf.mxu0 }
 0x35a   : > { %v1965_v54 = vadd.f32 %v5907_v62, %v9960_v30 }
 0x35b   : > { %v5909_v43 = vpop.f32.mrf.mxu0 }
 0x35c   : > { %v2047_v36 = vmax.f32 %v1965_v54, 0.0  ;;  %v5910_v18 = vadd.f32 %v5909_v43, %v5908_v53 }
 0x35d   : > { %v5911_v34 = vpop.f32.mrf.mxu0 }
 0x35e   : > { %v8765_v59 = vpack.c.bf16 %v2047_v36, %v2046_v27  ;;  %v1970_v28 = vadd.f32 %v5910_v18, %v9961_v63  ;;  %v9965_v63 = vld [vmem:[#allocation27_spill] sm:$0xff] }
 0x35f   : > { %v5912_v13 = vpop.f32.mrf.mxu0 }
 0x360   : > { %v5913_v14 = vadd.f32 %v5912_v13, %v5911_v34  ;;  %v2048_v48 = vmax.f32 %v1970_v28, 0.0 }
 0x361   : > { %v5914_v25 = vpop.f32.mrf.mxu0 }
 0x362   : > { %v1973_v5 = vadd.f32 %v5913_v14, %v9962_v56  ;;  %v9966_v14 = vld [vmem:[#allocation24_spill] sm:$0xff] }
 0x363   : > { %v5915_v31 = vpop.f32.mrf.mxu0 }
 0x364   : > { %v2049_v26 = vmax.f32 %v1973_v5, 0.0  ;;  %v5916_v40 = vadd.f32 %v5915_v31, %v5914_v25  ;;  %v9967_v31 = vld [vmem:[#allocation28_spill] sm:$0xff] }
 0x365   : > { %v5917_v6 = vpop.f32.mrf.mxu0 }
 0x366   : > { %v8769_v57 = vpack.c.bf16 %v2049_v26, %v2048_v48  ;;  %v1978_v8 = vadd.f32 %v5916_v40, %v9963_v45  ;;  %v9968_v26 = vld [vmem:[#allocation23_spill] sm:$0xff] }
 0x367   : > { %v5918_v50 = vpop.f32.mrf.mxu0 }
 0x368   : > { %v5919_v7 = vadd.f32 %v5918_v50, %v5917_v6  ;;  %v2050_v61 = vmax.f32 %v1978_v8, 0.0  ;;  %v9969_v50 = vld [vmem:[#allocation31_spill] sm:$0xff] }
 0x369   : > { %v5920_v33 = vpop.f32.mrf.mxu0 }
 0x36a   : > { %v1981_v0 = vadd.f32 %v5919_v7, %v9964_v52 }
 0x36b   : > { %v5921_v10 = vpop.f32.mrf.mxu0 }
 0x36c   : > { %v2051_v47 = vmax.f32 %v1981_v0, 0.0 }
 0x36d   : > { %v5923_v24 = vpop.f32.mrf.mxu0 }
 0x36e   : > { %v8773_v49 = vpack.c.bf16 %v2051_v47, %v2050_v61  ;;  %v9970_v61 = vld [vmem:[#allocation32_spill] sm:$0xff] }
 0x36f   : > { %v5924_v38 = vpop.f32.mrf.mxu0 }
 0x371   : > { %v5926_v12 = vpop.f32.mrf.mxu0 }
 0x373   : > { %v5927_v42 = vpop.f32.mrf.mxu0 }
 0x375   : > { %v5929_v20 = vpop.f32.mrf.mxu0 }
 0x377   : > { %v5930_v51 = vpop.f32.mrf.mxu0 }
 0x379   : > { %v5932_v16 = vpop.f32.mrf.mxu0 }
 0x37b   : > { %v5933_v32 = vpop.f32.mrf.mxu0 }
 0x37c   : > { %v5934_v0 = vadd.f32 %v5933_v32, %v5932_v16 }
 0x37d   : > { %v5935_v4 = vpop.f32.mrf.mxu0 }
 0x37f   : > { %v5936_v46 = vpop.f32.mrf.mxu0 }
 0x380   : > { %v5937_v6 = vadd.f32 %v5936_v46, %v5935_v4  ;;  %v9972_v4 = vld [vmem:[#allocation36_spill] sm:$0xff] }
 0x381   : > { %v5938_v9 = vpop.f32.mrf.mxu0  ;;  %v2002_v46 = vadd.f32 %v5934_v0, %v9972_v4  ;;  %v6797_v0 = vld [vmem:[%s9764_s7 + $0xc4] ss:$8 sps:$4 sm:$0xff]  }
 0x383   : > { %v5939_v11 = vpop.f32.mrf.mxu0 }
 0x384   : > { %v5940_v5 = vadd.f32 %v5939_v11, %v5938_v9  ;;  %v5928_v11 = vadd.f32 %v5927_v42, %v5926_v12  ;;  %v9976_v42 = vld [vmem:[#allocation42_spill] sm:$0xff] }
 0x385   : > { %v5941_v44 = vpop.f32.mrf.mxu0 }
 0x386   : > { %v2010_v47 = vadd.f32 %v5940_v5, %v9970_v61  ;;  %v6781_v5 = vld [vmem:[%s9764_s7 + $0x60] ss:$8 sps:$4 sm:$0xff]  }
 0x387   : > { %v5942_v58 = vpop.f32.mrf.mxu0  ;;  %v6799_v61 = vld [vmem:[%s9764_s7 + $0xc0] ss:$8 sps:$4 sm:$0xff]  }
 0x388   : > { %v5943_v13 = vadd.f32 %v5942_v58, %v5941_v44 }
 0x389   : > { %v5944_v37 = vpop.f32.mrf.mxu0 }
 0x38a   : > { %v2013_v45 = vadd.f32 %v5943_v13, %v9969_v50  ;;  %v6790_v50 = vld [vmem:[%s9764_s7 + $0x90] ss:$8 sps:$4 sm:$0xff]  }
 0x38b   : > { %v5945_v41 = vpop.f32.mrf.mxu0 }
 0x38c   : > { %v5946_v18 = vadd.f32 %v5945_v41, %v5944_v37  ;;  %v5931_v37 = vadd.f32 %v5930_v51, %v5929_v20  ;;  %v9971_v41 = vld [vmem:[#allocation35_spill] sm:$0xff]  ;;  %v5922_v20 = vadd.f32 %v5921_v10, %v5920_v33  ;;  %v9974_v51 = vld [vmem:[#allocation40_spill] sm:$0xff]  ;;  %v6773_v10 = vld [vmem:[%s9764_s7 + $0x44] ss:$8 sps:$4 sm:$0xff]  }
 0x38d   : > { %v5947_v62 = vpop.f32.mrf.mxu0 }
 0x38e   : > { %v2018_v48 = vadd.f32 %v5946_v18, %v9967_v31  ;;  %v2056_v18 = vmax.f32 %v2002_v46, 0.0  ;;  %v6782_v31 = vld [vmem:[%s9764_s7 + $0x74] ss:$8 sps:$4 sm:$0xff]  }
 0x38f   : > { %v5948_v53 = vpop.f32.mrf.mxu0 }
 0x390   : > { %v5949_v43 = vadd.f32 %v5948_v53, %v5947_v62  ;;  %v2060_v44 = vmax.f32 %v2018_v48, 0.0  ;;  %v2005_v62 = vadd.f32 %v5937_v6, %v9971_v41  ;;  %v2059_v53 = vmax.f32 %v2013_v45, 0.0  ;;  %v6784_v48 = vld [vmem:[%s9764_s7 + $0x70] ss:$8 sps:$4 sm:$0xff]   ;;  %v6788_v6 = vld [vmem:[%s9764_s7 + $0x94] ss:$8 sps:$4 sm:$0xff]  }
 0x391   : > { %v5950_v30 = vpop.f32.mrf.mxu0  ;;  %v6791_v45 = vld [vmem:[%s9764_s7 + $0xa4] ss:$8 sps:$4 sm:$0xff]   ;;  %v6806_v41 = vld [vmem:[%s9764_s7 + $0xf4] ss:$8 sps:$4 sm:$0xff]  }
 0x392   : > { %v2021_v28 = vadd.f32 %v5949_v43, %v9965_v63  ;;  %v9973_v43 = vld [vmem:[#allocation39_spill] sm:$0xff]  ;;  %v2057_v32 = vmax.f32 %v2005_v62, 0.0  ;;  %v1986_v63 = vadd.f32 %v5922_v20, %v9976_v42 }
 0x393   : > { %v5951_v54 = vpop.f32.mrf.mxu0  ;;  %v1997_v16 = vadd.f32 %v5931_v37, %v9973_v43  ;;  %v6805_v37 = vld [vmem:[%s9764_s7 + $0xe0] ss:$8 sps:$4 sm:$0xff]   ;;  %v6808_v62 = vld [vmem:[%s9764_s7 + $0xf0] ss:$8 sps:$4 sm:$0xff]  }
 0x394   : > { %v5952_v27 = vadd.f32 %v5951_v54, %v5950_v30  ;;  %v2061_v8 = vmax.f32 %v2021_v28, 0.0  ;;  %v2058_v30 = vmax.f32 %v2010_v47, 0.0  ;;  %v5925_v54 = vadd.f32 %v5924_v38, %v5923_v24  ;;  %v6800_v47 = vld [vmem:[%s9764_s7 + $0xd4] ss:$8 sps:$4 sm:$0xff]  }
 0x395   : > { %v5953_v36 = vpop.f32.mrf.mxu0  ;;  %v2140_v12 = vpack.c.bf16 %v2057_v32, %v2056_v18  ;;  %v9978_v32 = vld [vmem:[#allocation78_spill] sm:$0xff] }
 0x396   : > { %v2026_v25 = vadd.f32 %v5952_v27, %v9966_v14  ;;  %v2142_v9 = vpack.c.bf16 %v2061_v8, %v2060_v44  ;;  %v2141_v27 = vpack.c.bf16 %v2059_v53, %v2058_v30  ;;  %v6776_v14 = vld [vmem:[%s9764_s7 + $0x54] ss:$8 sps:$4 sm:$0xff]   ;;  %v6793_v8 = vld [vmem:[%s9764_s7 + $0xa0] ss:$8 sps:$4 sm:$0xff]   ;;  %v6802_v44 = vld [vmem:[%s9764_s7 + $0xd0] ss:$8 sps:$4 sm:$0xff]  }
 0x397   : > { %v5954_v34 = vpop.f32.mrf.mxu0  ;;  %v9977_v30 = vld [vmem:[#allocation77_spill] sm:$0xff] }
 0x398   : > { %v5955_v56 = vadd.f32 %v5954_v34, %v5953_v36  ;;  %v2062_v7 = vmax.f32 %v2026_v25, 0.0  ;;  %v1994_v36 = vadd.f32 %v5928_v11, %v9974_v51  ;;  %v9975_v34 = vld [vmem:[#allocation41_spill] sm:$0xff]  ;;  %v6778_v25 = vld [vmem:[%s9764_s7 + $0x50] ss:$8 sps:$4 sm:$0xff]  }
 0x399   : > { %v1989_v13 = vadd.f32 %v5925_v54, %v9975_v34 }
 0x39a   : > { %v2029_v40 = vadd.f32 %v5955_v56, %v9968_v26  ;;  %v2054_v24 = vmax.f32 %v1994_v36, 0.0  ;;  %v6779_v56 = vld [vmem:[%s9764_s7 + $0x64] ss:$8 sps:$4 sm:$0xff]  }
 0x39b   : > { %v2053_v38 = vmax.f32 %v1989_v13, 0.0  ;;  %v6785_v26 = vld [vmem:[%s9764_s7 + $0x84] ss:$8 sps:$4 sm:$0xff]  }
 0x39c   : > { %v2063_v52 = vmax.f32 %v2029_v40, 0.0  ;;  %v6787_v40 = vld [vmem:[%s9764_s7 + $0x80] ss:$8 sps:$4 sm:$0xff]  }
 0x39e   : > { %v2143_v58 = vpack.c.bf16 %v2063_v52, %v2062_v7  ;;  %v6794_v7 = vld [vmem:[%s9764_s7 + $0xb4] ss:$8 sps:$4 sm:$0xff]   ;;  %v6796_v52 = vld [vmem:[%s9764_s7 + $0xb0] ss:$8 sps:$4 sm:$0xff]  }
 0x3a0   : > { %5956 = vmatprep.subr.bf16.mxu1 %v2143_v58  ;;  %v6803_v58 = vld [vmem:[%s9764_s7 + $0xe4] ss:$8 sps:$4 sm:$0xff]  }
 0x3a1   : > { %5957 = vmatpush3.bf16.msra.mxu1 %v8765_v59  ;;  %v2055_v59 = vmax.f32 %v1997_v16, 0.0 }
 0x3a2   : > { %5958 = vmatprep.subr.bf16.mxu1 %v2142_v9 }
 0x3a3   : > { %v2139_v28 = vpack.c.bf16 %v2055_v59, %v2054_v24 }
 0x3a5   : > { %5959 = vmatpush3.bf16.msra.mxu1 %v8761_v35  ;;  %v2052_v35 = vmax.f32 %v1986_v63, 0.0 }
 0x3a6   : > { %5960 = vmatprep.subr.bf16.mxu1 %v2141_v27 }
 0x3a7   : > { %v2138_v33 = vpack.c.bf16 %v2053_v38, %v2052_v35  ;;  %v9980_v38 = vld [vmem:[#allocation74_spill] sm:$0xff] }
 0x3a9   : > { %5961 = vmatpush3.bf16.msra.mxu1 %v8757_v39  ;;  %v6761_v39 = vld [vmem:[%s9764_s7] ss:$8 sps:$4 sm:$0xff]  }
 0x3aa   : > { %5962 = vmatprep.subr.bf16.mxu1 %v2140_v12  ;;  %v9979_v12 = vld [vmem:[#allocation73_spill] sm:$0xff] }
 0x3ad   : > { %5963 = vmatpush3.bf16.msra.mxu1 %v8753_v60  ;;  %v6764_v60 = vld [vmem:[%s9764_s7 + $0x14] ss:$8 sps:$4 sm:$0xff]  }
 0x3ae   : > { %5964 = vmatprep.subr.bf16.mxu1 %v2139_v28 }
 0x3b1   : > { %5965 = vmatpush3.bf16.msra.mxu1 %v8749_v29  ;;  %v6770_v29 = vld [vmem:[%s9764_s7 + $0x34] ss:$8 sps:$4 sm:$0xff]  }
 0x3b2   : > { %5966 = vmatprep.subr.bf16.mxu1 %v2138_v33 }
 0x3b5   : > { %5967 = vmatpush3.bf16.msra.mxu1 %v8742_v21  ;;  %v6766_v21 = vld [vmem:[%s9764_s7 + $0x10] ss:$8 sps:$4 sm:$0xff]  }
 0x3b6   : > { %5968 = vmatprep.subr.bf16.mxu1 %v8773_v49  ;;  %v6775_v49 = vld [vmem:[%s9764_s7 + $0x40] ss:$8 sps:$4 sm:$0xff]  }
 0x3b9   : > { %5969 = vmatpush3.bf16.msra.mxu1 %v8738_v1  ;;  %v6767_v1 = vld [vmem:[%s9764_s7 + $0x24] ss:$8 sps:$4 sm:$0xff]  }
 0x3ba   : > { %5970 = vmatprep.subr.bf16.mxu1 %v8769_v57  ;;  %v6772_v57 = vld [vmem:[%s9764_s7 + $0x30] ss:$8 sps:$4 sm:$0xff]  }
 0x3bd   : > { %5971 = vmatpush3.bf16.msra.mxu1 %v8734_v15  ;;  %v6769_v15 = vld [vmem:[%s9764_s7 + $0x20] ss:$8 sps:$4 sm:$0xff]  }
 0x3c0   : > { %2497 = vmatmul.mubr.bf16.vlgmr.msra.gmra.mxu1 %v6761_v39 }
 0x3c1   : > { %2504 = vmatprep.mubr.bf16.mxu1 %v6764_v60 }
 0x3c8   : > { %2505 = vmatmul.mubr.bf16.gmra.mxu1 %v6766_v21 }
 0x3c9   : > { %2512 = vmatprep.mubr.bf16.mxu1 %v6767_v1 }
 0x3d0   : > { %2513 = vmatmul.mubr.bf16.gmra.mxu1 %v6769_v15 }
 0x3d1   : > { %2520 = vmatprep.mubr.bf16.mxu1 %v6770_v29  ;;  %v9981_v29 = vld [vmem:[#allocation69_spill] sm:$0xff] }
 0x3d8   : > { %2521 = vmatmul.mubr.bf16.gmra.mxu1 %v6772_v57 }
 0x3d9   : > { %2528 = vmatprep.mubr.bf16.mxu1 %v6773_v10 }
 0x3e0   : > { %2529 = vmatmul.mubr.bf16.gmra.mxu1 %v6775_v49 }
 0x3e1   : > { %2536 = vmatprep.mubr.bf16.mxu1 %v6776_v14  ;;  %v9982_v14 = vld [vmem:[#allocation70_spill] sm:$0xff] }
 0x3e8   : > { %2537 = vmatmul.mubr.bf16.gmra.mxu1 %v6778_v25 }
 0x3e9   : > { %2544 = vmatprep.mubr.bf16.mxu1 %v6779_v56 }
 0x3f0   : > { %2545 = vmatmul.mubr.bf16.gmra.mxu1 %v6781_v5 }
 0x3f1   : > { %2552 = vmatprep.mubr.bf16.mxu1 %v6782_v31 }
 0x3f8   : > { %2553 = vmatmul.mubr.bf16.gmra.mxu1 %v6784_v48 }
 0x3f9   : > { %2560 = vmatprep.mubr.bf16.mxu1 %v6785_v26 }
 0x400   : > { %2561 = vmatmul.mubr.bf16.gmra.mxu1 %v6787_v40 }
 0x401   : > { %2568 = vmatprep.mubr.bf16.mxu1 %v6788_v6 }
 0x408   : > { %2569 = vmatmul.mubr.bf16.gmra.mxu1 %v6790_v50  ;;  %v9983_v50 = vld [vmem:[#allocation66_spill] sm:$0xff] }
 0x409   : > { %2576 = vmatprep.mubr.bf16.mxu1 %v6791_v45 }
 0x410   : > { %2577 = vmatmul.mubr.bf16.gmra.mxu1 %v6793_v8 }
 0x411   : > { %2584 = vmatprep.mubr.bf16.mxu1 %v6794_v7 }
 0x418   : > { %2585 = vmatmul.mubr.bf16.gmra.mxu1 %v6796_v52  ;;  %v9984_v52 = vld [vmem:[#allocation65_spill] sm:$0xff] }
 0x419   : > { %2592 = vmatprep.mubr.bf16.mxu1 %v6797_v0 }
 0x420   : > { %2593 = vmatmul.mubr.bf16.gmra.mxu1 %v6799_v61 }
 0x421   : > { %2600 = vmatprep.mubr.bf16.mxu1 %v6800_v47 }
 0x428   : > { %2601 = vmatmul.mubr.bf16.gmra.mxu1 %v6802_v44 }
 0x429   : > { %2608 = vmatprep.mubr.bf16.mxu1 %v6803_v58 }
 0x430   : > { %2609 = vmatmul.mubr.bf16.gmra.mxu1 %v6805_v37 }
 0x431   : > { %2616 = vmatprep.mubr.bf16.mxu1 %v6806_v41  ;;  %v6811_v41 = vld [vmem:[%s9766_s9 + $0x4] ss:$8 sps:$4 sm:$0xff]  }
 0x432   : > { %3089 = vmatprep.mubr.bf16.mxu0 %v6811_v41 }
 0x438   : > { %2617 = vmatmul.mubr.bf16.gmra.mxu1 %v6808_v62 }
 0x480   : > { %v5972_v53 = vpop.f32.mrf.mxu1 }
 0x482   : > { %v5973_v9 = vpop.f32.mrf.mxu1 }
 0x483   : > { %v5974_v11 = vadd.f32 %v5973_v9, %v5972_v53  ;;  %v9985_v9 = vld [vmem:[#allocation62_spill] sm:$0xff] }
 0x484   : > { %v5975_v4 = vpop.f32.mrf.mxu1 }
 0x485   : > { %v2499_v54 = vadd.f32 %v5974_v11, %v9977_v30  ;;  %v9986_v30 = vld [vmem:[#allocation61_spill] sm:$0xff] }
 0x486   : > { %v5976_v46 = vpop.f32.mrf.mxu1 }
 0x487   : > { %v5977_v43 = vadd.f32 %v5976_v46, %v5975_v4  ;;  %v2625_v51 = vmax.f32 %v2499_v54, 0.0 }
 0x488   : > { %v5978_v16 = vpop.f32.mrf.mxu1 }
 0x489   : > { %v2502_v27 = vadd.f32 %v5977_v43, %v9978_v32 }
 0x48a   : > { %v5979_v20 = vpop.f32.mrf.mxu1 }
 0x48b   : > { %v2626_v36 = vmax.f32 %v2502_v27, 0.0  ;;  %v5980_v18 = vadd.f32 %v5979_v20, %v5978_v16 }
 0x48c   : > { %v5981_v34 = vpop.f32.mrf.mxu1 }
 0x48d   : > { %v8892_v13 = vpack.c.bf16 %v2626_v36, %v2625_v51  ;;  %v2507_v42 = vadd.f32 %v5980_v18, %v9979_v12  ;;  %v9987_v18 = vld [vmem:[#allocation58_spill] sm:$0xff] }
 0x48e   : > { %v5982_v59 = vpop.f32.mrf.mxu1 }
 0x48f   : > { %v5983_v63 = vadd.f32 %v5982_v59, %v5981_v34  ;;  %v2627_v33 = vmax.f32 %v2507_v42, 0.0  ;;  %v9988_v42 = vld [vmem:[#allocation57_spill] sm:$0xff] }
 0x490   : > { %v5984_v24 = vpop.f32.mrf.mxu1 }
 0x491   : > { %v2510_v28 = vadd.f32 %v5983_v63, %v9980_v38 }
 0x492   : > { %v5985_v35 = vpop.f32.mrf.mxu1 }
 0x493   : > { %v2628_v39 = vmax.f32 %v2510_v28, 0.0  ;;  %v5986_v60 = vadd.f32 %v5985_v35, %v5984_v24 }
 0x494   : > { %v5987_v21 = vpop.f32.mrf.mxu1 }
 0x495   : > { %v8896_v1 = vpack.c.bf16 %v2628_v39, %v2627_v33  ;;  %v2515_v57 = vadd.f32 %v5986_v60, %v9981_v29 }
 0x496   : > { %v5988_v15 = vpop.f32.mrf.mxu1 }
 0x497   : > { %v5989_v10 = vadd.f32 %v5988_v15, %v5987_v21  ;;  %v2629_v5 = vmax.f32 %v2515_v57, 0.0  ;;  %v9989_v21 = vld [vmem:[#allocation54_spill] sm:$0xff] }
 0x498   : > { %v5990_v49 = vpop.f32.mrf.mxu1 }
 0x499   : > { %v2518_v25 = vadd.f32 %v5989_v10, %v9982_v14  ;;  %v9990_v10 = vld [vmem:[#allocation53_spill] sm:$0xff] }
 0x49a   : > { %v5991_v56 = vpop.f32.mrf.mxu1 }
 0x49b   : > { %v2630_v31 = vmax.f32 %v2518_v25, 0.0  ;;  %v5992_v48 = vadd.f32 %v5991_v56, %v5990_v49 }
 0x49c   : > { %v5993_v26 = vpop.f32.mrf.mxu1 }
 0x49d   : > { %v8900_v40 = vpack.c.bf16 %v2630_v31, %v2629_v5  ;;  %v2523_v45 = vadd.f32 %v5992_v48, %v9983_v50 }
 0x49e   : > { %v5994_v6 = vpop.f32.mrf.mxu1 }
 0x49f   : > { %v5995_v8 = vadd.f32 %v5994_v6, %v5993_v26  ;;  %v2631_v47 = vmax.f32 %v2523_v45, 0.0  ;;  %v9991_v6 = vld [vmem:[#allocation50_spill] sm:$0xff] }
 0x4a0   : > { %v5996_v7 = vpop.f32.mrf.mxu1 }
 0x4a1   : > { %v2526_v0 = vadd.f32 %v5995_v8, %v9984_v52 }
 0x4a2   : > { %v5997_v61 = vpop.f32.mrf.mxu1 }
 0x4a3   : > { %v2632_v44 = vmax.f32 %v2526_v0, 0.0  ;;  %v5998_v58 = vadd.f32 %v5997_v61, %v5996_v7  ;;  %v9992_v7 = vld [vmem:[#allocation49_spill] sm:$0xff] }
 0x4a4   : > { %v5999_v37 = vpop.f32.mrf.mxu1 }
 0x4a5   : > { %v8907_v62 = vpack.c.bf16 %v2632_v44, %v2631_v47  ;;  %v2531_v11 = vadd.f32 %v5998_v58, %v9985_v9 }
 0x4a6   : > { %v6000_v53 = vpop.f32.mrf.mxu1 }
 0x4a7   : > { %v6001_v4 = vadd.f32 %v6000_v53, %v5999_v37  ;;  %v2633_v16 = vmax.f32 %v2531_v11, 0.0  ;;  %v9993_v53 = vld [vmem:[#allocation75_spill] sm:$0xff] }
 0x4a8   : > { %v6002_v46 = vpop.f32.mrf.mxu1 }
 0x4a9   : > { %v2534_v54 = vadd.f32 %v6001_v4, %v9986_v30 }
 0x4aa   : > { %v6003_v43 = vpop.f32.mrf.mxu1 }
 0x4ab   : > { %v2634_v32 = vmax.f32 %v2534_v54, 0.0  ;;  %v6004_v27 = vadd.f32 %v6003_v43, %v6002_v46  ;;  %v9994_v46 = vld [vmem:[#allocation76_spill] sm:$0xff] }
 0x4ac   : > { %v6005_v20 = vpop.f32.mrf.mxu1 }
 0x4ad   : > { %v8911_v51 = vpack.c.bf16 %v2634_v32, %v2633_v16  ;;  %v2539_v34 = vadd.f32 %v6004_v27, %v9987_v18  ;;  %v9995_v18 = vld [vmem:[#allocation71_spill] sm:$0xff] }
 0x4ae   : > { %v6006_v36 = vpop.f32.mrf.mxu1 }
 0x4af   : > { %v6007_v59 = vadd.f32 %v6006_v36, %v6005_v20  ;;  %v2635_v38 = vmax.f32 %v2539_v34, 0.0 }
 0x4b0   : > { %v6008_v12 = vpop.f32.mrf.mxu1 }
 0x4b1   : > { %v2542_v63 = vadd.f32 %v6007_v59, %v9988_v42  ;;  %v9996_v42 = vld [vmem:[#allocation72_spill] sm:$0xff] }
 0x4b2   : > { %v6009_v24 = vpop.f32.mrf.mxu1 }
 0x4b3   : > { %v2636_v28 = vmax.f32 %v2542_v63, 0.0  ;;  %v6010_v35 = vadd.f32 %v6009_v24, %v6008_v12 }
 0x4b4   : > { %v6011_v33 = vpop.f32.mrf.mxu1 }
 0x4b5   : > { %v8915_v39 = vpack.c.bf16 %v2636_v28, %v2635_v38  ;;  %v2547_v15 = vadd.f32 %v6010_v35, %v9989_v21 }
 0x4b6   : > { %v6012_v60 = vpop.f32.mrf.mxu1 }
 0x4b7   : > { %v6013_v29 = vadd.f32 %v6012_v60, %v6011_v33  ;;  %v2637_v25 = vmax.f32 %v2547_v15, 0.0 }
 0x4b8   : > { %v6014_v57 = vpop.f32.mrf.mxu1 }
 0x4b9   : > { %v2550_v49 = vadd.f32 %v6013_v29, %v9990_v10 }
 0x4ba   : > { %v6015_v14 = vpop.f32.mrf.mxu1 }
 0x4bb   : > { %v2638_v56 = vmax.f32 %v2550_v49, 0.0  ;;  %v6016_v5 = vadd.f32 %v6015_v14, %v6014_v57 }
 0x4bc   : > { %v6017_v31 = vpop.f32.mrf.mxu1 }
 0x4bd   : > { %v8919_v48 = vpack.c.bf16 %v2638_v56, %v2637_v25  ;;  %v2555_v50 = vadd.f32 %v6016_v5, %v9991_v6 }
 0x4be   : > { %v6018_v26 = vpop.f32.mrf.mxu1 }
 0x4bf   : > { %v6019_v45 = vadd.f32 %v6018_v26, %v6017_v31  ;;  %v2639_v61 = vmax.f32 %v2555_v50, 0.0 }
 0x4c0   : > { %v6020_v8 = vpop.f32.mrf.mxu1 }
 0x4c1   : > { %v2558_v52 = vadd.f32 %v6019_v45, %v9992_v7 }
 0x4c2   : > { %v6021_v0 = vpop.f32.mrf.mxu1 }
 0x4c3   : > { %v2640_v47 = vmax.f32 %v2558_v52, 0.0  ;;  %v6022_v44 = vadd.f32 %v6021_v0, %v6020_v8 }
 0x4c4   : > { %v6023_v58 = vpop.f32.mrf.mxu1 }
 0x4c5   : > { %v8923_v37 = vpack.c.bf16 %v2640_v47, %v2639_v61  ;;  %v2563_v9 = vadd.f32 %v6022_v44, %v9993_v53  ;;  %v9997_v53 = vld [vmem:[#allocation51_spill] sm:$0xff] }
 0x4c6   : > { %v6024_v41 = vpop.f32.mrf.mxu1 }
 0x4c7   : > { %v6025_v11 = vadd.f32 %v6024_v41, %v6023_v58  ;;  %v2641_v43 = vmax.f32 %v2563_v9, 0.0 }
 0x4c8   : > { %v6026_v4 = vpop.f32.mrf.mxu1 }
 0x4c9   : > { %v2566_v30 = vadd.f32 %v6025_v11, %v9994_v46  ;;  %v9998_v11 = vld [vmem:[#allocation48_spill] sm:$0xff] }
 0x4ca   : > { %v6027_v54 = vpop.f32.mrf.mxu1 }
 0x4cb   : > { %v2642_v16 = vmax.f32 %v2566_v30, 0.0  ;;  %v6028_v32 = vadd.f32 %v6027_v54, %v6026_v4  ;;  %v9999_v54 = vld [vmem:[#allocation52_spill] sm:$0xff] }
 0x4cc   : > { %v6029_v27 = vpop.f32.mrf.mxu1 }
 0x4cd   : > { %v8927_v20 = vpack.c.bf16 %v2642_v16, %v2641_v43  ;;  %v2571_v34 = vadd.f32 %v6028_v32, %v9995_v18  ;;  %v10000_v16 = vld [vmem:[#allocation47_spill] sm:$0xff] }
 0x4ce   : > { %v6030_v36 = vpop.f32.mrf.mxu1 }
 0x4cf   : > { %v6031_v59 = vadd.f32 %v6030_v36, %v6029_v27  ;;  %v2643_v38 = vmax.f32 %v2571_v34, 0.0  ;;  %v10001_v36 = vld [vmem:[#allocation55_spill] sm:$0xff] }
 0x4d0   : > { %v6032_v12 = vpop.f32.mrf.mxu1 }
 0x4d1   : > { %v2574_v63 = vadd.f32 %v6031_v59, %v9996_v42 }
 0x4d2   : > { %v6033_v24 = vpop.f32.mrf.mxu1 }
 0x4d3   : > { %v2644_v28 = vmax.f32 %v2574_v63, 0.0 }
 0x4d4   : > { %v6035_v35 = vpop.f32.mrf.mxu1 }
 0x4d5   : > { %v8931_v33 = vpack.c.bf16 %v2644_v28, %v2643_v38  ;;  %v10002_v38 = vld [vmem:[#allocation56_spill] sm:$0xff] }
 0x4d6   : > { %v6036_v60 = vpop.f32.mrf.mxu1 }
 0x4d8   : > { %v6038_v21 = vpop.f32.mrf.mxu1 }
 0x4da   : > { %v6039_v15 = vpop.f32.mrf.mxu1 }
 0x4dc   : > { %v6041_v29 = vpop.f32.mrf.mxu1 }
 0x4de   : > { %v6042_v57 = vpop.f32.mrf.mxu1 }
 0x4e0   : > { %v6044_v10 = vpop.f32.mrf.mxu1 }
 0x4e2   : > { %v6045_v49 = vpop.f32.mrf.mxu1 }
 0x4e3   : > { %v6046_v63 = vadd.f32 %v6045_v49, %v6044_v10 }
 0x4e4   : > { %v6047_v14 = vpop.f32.mrf.mxu1 }
 0x4e6   : > { %v6048_v25 = vpop.f32.mrf.mxu1 }
 0x4e7   : > { %v6049_v27 = vadd.f32 %v6048_v25, %v6047_v14  ;;  %v10004_v14 = vld [vmem:[#allocation60_spill] sm:$0xff] }
 0x4e8   : > { %v6050_v56 = vpop.f32.mrf.mxu1  ;;  %v2595_v25 = vadd.f32 %v6046_v63, %v10004_v14  ;;  %v6847_v63 = vld [vmem:[%s9766_s9 + $0xc4] ss:$8 sps:$4 sm:$0xff]  }
 0x4ea   : > { %v6051_v5 = vpop.f32.mrf.mxu1 }
 0x4eb   : > { %v6052_v30 = vadd.f32 %v6051_v5, %v6050_v56  ;;  %v6040_v5 = vadd.f32 %v6039_v15, %v6038_v21  ;;  %v10008_v15 = vld [vmem:[#allocation68_spill] sm:$0xff] }
 0x4ec   : > { %v6053_v31 = vpop.f32.mrf.mxu1 }
 0x4ed   : > { %v2603_v28 = vadd.f32 %v6052_v30, %v10002_v38  ;;  %v6829_v30 = vld [vmem:[%s9766_s9 + $0x60] ss:$8 sps:$4 sm:$0xff]  }
 0x4ee   : > { %v6054_v26 = vpop.f32.mrf.mxu1  ;;  %v6845_v38 = vld [vmem:[%s9766_s9 + $0xc0] ss:$8 sps:$4 sm:$0xff]  }
 0x4ef   : > { %v6055_v41 = vadd.f32 %v6054_v26, %v6053_v31 }
 0x4f0   : > { %v6056_v6 = vpop.f32.mrf.mxu1 }
 0x4f1   : > { %v2606_v18 = vadd.f32 %v6055_v41, %v10001_v36  ;;  %v6836_v36 = vld [vmem:[%s9766_s9 + $0x90] ss:$8 sps:$4 sm:$0xff]  }
 0x4f2   : > { %v6057_v50 = vpop.f32.mrf.mxu1 }
 0x4f3   : > { %v6058_v44 = vadd.f32 %v6057_v50, %v6056_v6  ;;  %v6043_v6 = vadd.f32 %v6042_v57, %v6041_v29  ;;  %v10003_v50 = vld [vmem:[#allocation59_spill] sm:$0xff]  ;;  %v6034_v29 = vadd.f32 %v6033_v24, %v6032_v12  ;;  %v10006_v57 = vld [vmem:[#allocation64_spill] sm:$0xff]  ;;  %v6821_v24 = vld [vmem:[%s9766_s9 + $0x44] ss:$8 sps:$4 sm:$0xff]  }
 0x4f4   : > { %v6059_v45 = vpop.f32.mrf.mxu1 }
 0x4f5   : > { %v2611_v43 = vadd.f32 %v6058_v44, %v9999_v54  ;;  %v2649_v44 = vmax.f32 %v2595_v25, 0.0  ;;  %v6830_v54 = vld [vmem:[%s9766_s9 + $0x74] ss:$8 sps:$4 sm:$0xff]  }
 0x4f6   : > { %v6060_v8 = vpop.f32.mrf.mxu1 }
 0x4f7   : > { %v6061_v0 = vadd.f32 %v6060_v8, %v6059_v45  ;;  %v2653_v31 = vmax.f32 %v2611_v43, 0.0  ;;  %v2598_v45 = vadd.f32 %v6049_v27, %v10003_v50  ;;  %v2652_v8 = vmax.f32 %v2606_v18, 0.0  ;;  %v6832_v43 = vld [vmem:[%s9766_s9 + $0x70] ss:$8 sps:$4 sm:$0xff]   ;;  %v6838_v27 = vld [vmem:[%s9766_s9 + $0x94] ss:$8 sps:$4 sm:$0xff]  }
 0x4f8   : > { %v6062_v7 = vpop.f32.mrf.mxu1  ;;  %v6841_v18 = vld [vmem:[%s9766_s9 + $0xa4] ss:$8 sps:$4 sm:$0xff]   ;;  %v6856_v50 = vld [vmem:[%s9766_s9 + $0xf4] ss:$8 sps:$4 sm:$0xff]  }
 0x4f9   : > { %v2614_v9 = vadd.f32 %v6061_v0, %v9997_v53  ;;  %v10005_v0 = vld [vmem:[#allocation63_spill] sm:$0xff]  ;;  %v2650_v49 = vmax.f32 %v2598_v45, 0.0  ;;  %v2579_v53 = vadd.f32 %v6034_v29, %v10008_v15 }
 0x4fa   : > { %v6063_v52 = vpop.f32.mrf.mxu1  ;;  %v2590_v10 = vadd.f32 %v6043_v6, %v10005_v0  ;;  %v6851_v6 = vld [vmem:[%s9766_s9 + $0xe0] ss:$8 sps:$4 sm:$0xff]   ;;  %v6854_v45 = vld [vmem:[%s9766_s9 + $0xf0] ss:$8 sps:$4 sm:$0xff]  }
 0x4fb   : > { %v6064_v61 = vadd.f32 %v6063_v52, %v6062_v7  ;;  %v2654_v34 = vmax.f32 %v2614_v9, 0.0  ;;  %v2651_v7 = vmax.f32 %v2603_v28, 0.0  ;;  %v6037_v52 = vadd.f32 %v6036_v60, %v6035_v35  ;;  %v6850_v28 = vld [vmem:[%s9766_s9 + $0xd4] ss:$8 sps:$4 sm:$0xff]  }
 0x4fc   : > { %v6065_v47 = vpop.f32.mrf.mxu1  ;;  %v2733_v21 = vpack.c.bf16 %v2650_v49, %v2649_v44  ;;  %v10010_v49 = vld [vmem:[#allocation110_spill] sm:$0xff] }
 0x4fd   : > { %v2619_v4 = vadd.f32 %v6064_v61, %v9998_v11  ;;  %v2735_v56 = vpack.c.bf16 %v2654_v34, %v2653_v31  ;;  %v2734_v61 = vpack.c.bf16 %v2652_v8, %v2651_v7  ;;  %v6824_v11 = vld [vmem:[%s9766_s9 + $0x54] ss:$8 sps:$4 sm:$0xff]   ;;  %v6839_v34 = vld [vmem:[%s9766_s9 + $0xa0] ss:$8 sps:$4 sm:$0xff]   ;;  %v6848_v31 = vld [vmem:[%s9766_s9 + $0xd0] ss:$8 sps:$4 sm:$0xff]  }
 0x4fe   : > { %v6066_v58 = vpop.f32.mrf.mxu1  ;;  %v10009_v7 = vld [vmem:[#allocation109_spill] sm:$0xff] }
 0x4ff   : > { %v6067_v46 = vadd.f32 %v6066_v58, %v6065_v47  ;;  %v2655_v59 = vmax.f32 %v2619_v4, 0.0  ;;  %v2587_v47 = vadd.f32 %v6040_v5, %v10006_v57  ;;  %v10007_v58 = vld [vmem:[#allocation67_spill] sm:$0xff] }
 0x500   : > { %v2582_v41 = vadd.f32 %v6037_v52, %v10007_v58  ;;  %v6826_v4 = vld [vmem:[%s9766_s9 + $0x50] ss:$8 sps:$4 sm:$0xff]  }
 0x501   : > { %v2622_v32 = vadd.f32 %v6067_v46, %v10000_v16  ;;  %v2647_v35 = vmax.f32 %v2587_v47, 0.0  ;;  %v6827_v46 = vld [vmem:[%s9766_s9 + $0x64] ss:$8 sps:$4 sm:$0xff]  }
 0x502   : > { %v2646_v60 = vmax.f32 %v2582_v41, 0.0  ;;  %v6835_v16 = vld [vmem:[%s9766_s9 + $0x84] ss:$8 sps:$4 sm:$0xff]  }
 0x503   : > { %v2656_v42 = vmax.f32 %v2622_v32, 0.0  ;;  %v6833_v32 = vld [vmem:[%s9766_s9 + $0x80] ss:$8 sps:$4 sm:$0xff]  }
 0x505   : > { %v2736_v26 = vpack.c.bf16 %v2656_v42, %v2655_v59  ;;  %v6844_v59 = vld [vmem:[%s9766_s9 + $0xb4] ss:$8 sps:$4 sm:$0xff]   ;;  %v6842_v42 = vld [vmem:[%s9766_s9 + $0xb0] ss:$8 sps:$4 sm:$0xff]  }
 0x507   : > { %6068 = vmatprep.subr.bf16.mxu0 %v2736_v26  ;;  %v6853_v26 = vld [vmem:[%s9766_s9 + $0xe4] ss:$8 sps:$4 sm:$0xff]  }
 0x508   : > { %6069 = vmatpush3.bf16.msra.mxu0 %v8923_v37  ;;  %v2648_v37 = vmax.f32 %v2590_v10, 0.0 }
 0x509   : > { %6070 = vmatprep.subr.bf16.mxu0 %v2735_v56 }
 0x50a   : > { %v2732_v9 = vpack.c.bf16 %v2648_v37, %v2647_v35 }
 0x50c   : > { %6071 = vmatpush3.bf16.msra.mxu0 %v8919_v48  ;;  %v2645_v48 = vmax.f32 %v2579_v53, 0.0 }
 0x50d   : > { %6072 = vmatprep.subr.bf16.mxu0 %v2734_v61 }
 0x50e   : > { %v2731_v12 = vpack.c.bf16 %v2646_v60, %v2645_v48  ;;  %v10012_v60 = vld [vmem:[#allocation106_spill] sm:$0xff] }
 0x510   : > { %6073 = vmatpush3.bf16.msra.mxu0 %v8915_v39  ;;  %v6809_v39 = vld [vmem:[%s9766_s9] ss:$8 sps:$4 sm:$0xff]  }
 0x511   : > { %6074 = vmatprep.subr.bf16.mxu0 %v2733_v21  ;;  %v10011_v21 = vld [vmem:[#allocation105_spill] sm:$0xff] }
 0x514   : > { %6075 = vmatpush3.bf16.msra.mxu0 %v8911_v51  ;;  %v6812_v51 = vld [vmem:[%s9766_s9 + $0x14] ss:$8 sps:$4 sm:$0xff]  }
 0x515   : > { %6076 = vmatprep.subr.bf16.mxu0 %v2732_v9 }
 0x518   : > { %6077 = vmatpush3.bf16.msra.mxu0 %v8907_v62  ;;  %v6818_v62 = vld [vmem:[%s9766_s9 + $0x34] ss:$8 sps:$4 sm:$0xff]  }
 0x519   : > { %6078 = vmatprep.subr.bf16.mxu0 %v2731_v12 }
 0x51c   : > { %6079 = vmatpush3.bf16.msra.mxu0 %v8900_v40  ;;  %v6814_v40 = vld [vmem:[%s9766_s9 + $0x10] ss:$8 sps:$4 sm:$0xff]  }
 0x51d   : > { %6080 = vmatprep.subr.bf16.mxu0 %v8931_v33  ;;  %v6823_v33 = vld [vmem:[%s9766_s9 + $0x40] ss:$8 sps:$4 sm:$0xff]  }
 0x520   : > { %6081 = vmatpush3.bf16.msra.mxu0 %v8896_v1  ;;  %v6815_v1 = vld [vmem:[%s9766_s9 + $0x24] ss:$8 sps:$4 sm:$0xff]  }
 0x521   : > { %6082 = vmatprep.subr.bf16.mxu0 %v8927_v20  ;;  %v6820_v20 = vld [vmem:[%s9766_s9 + $0x30] ss:$8 sps:$4 sm:$0xff]  }
 0x524   : > { %6083 = vmatpush3.bf16.msra.mxu0 %v8892_v13  ;;  %v6817_v13 = vld [vmem:[%s9766_s9 + $0x20] ss:$8 sps:$4 sm:$0xff]  }
 0x527   : > { %3090 = vmatmul.mubr.bf16.vlgmr.msra.gmra.mxu0 %v6809_v39 }
 0x528   : > { %3097 = vmatprep.mubr.bf16.mxu0 %v6812_v51 }
 0x52f   : > { %3098 = vmatmul.mubr.bf16.gmra.mxu0 %v6814_v40 }
 0x530   : > { %3105 = vmatprep.mubr.bf16.mxu0 %v6815_v1 }
 0x537   : > { %3106 = vmatmul.mubr.bf16.gmra.mxu0 %v6817_v13 }
 0x538   : > { %3113 = vmatprep.mubr.bf16.mxu0 %v6818_v62  ;;  %v10013_v62 = vld [vmem:[#allocation101_spill] sm:$0xff] }
 0x53f   : > { %3114 = vmatmul.mubr.bf16.gmra.mxu0 %v6820_v20 }
 0x540   : > { %3121 = vmatprep.mubr.bf16.mxu0 %v6821_v24 }
 0x547   : > { %3122 = vmatmul.mubr.bf16.gmra.mxu0 %v6823_v33 }
 0x548   : > { %3129 = vmatprep.mubr.bf16.mxu0 %v6824_v11  ;;  %v10014_v11 = vld [vmem:[#allocation102_spill] sm:$0xff] }
 0x54f   : > { %3130 = vmatmul.mubr.bf16.gmra.mxu0 %v6826_v4 }
 0x550   : > { %3137 = vmatprep.mubr.bf16.mxu0 %v6827_v46 }
 0x557   : > { %3138 = vmatmul.mubr.bf16.gmra.mxu0 %v6829_v30 }
 0x558   : > { %3145 = vmatprep.mubr.bf16.mxu0 %v6830_v54 }
 0x55f   : > { %3146 = vmatmul.mubr.bf16.gmra.mxu0 %v6832_v43 }
 0x560   : > { %3153 = vmatprep.mubr.bf16.mxu0 %v6835_v16 }
 0x567   : > { %3154 = vmatmul.mubr.bf16.gmra.mxu0 %v6833_v32 }
 0x568   : > { %3161 = vmatprep.mubr.bf16.mxu0 %v6838_v27 }
 0x56f   : > { %3162 = vmatmul.mubr.bf16.gmra.mxu0 %v6836_v36  ;;  %v10015_v36 = vld [vmem:[#allocation97_spill] sm:$0xff] }
 0x570   : > { %3169 = vmatprep.mubr.bf16.mxu0 %v6841_v18 }
 0x577   : > { %3170 = vmatmul.mubr.bf16.gmra.mxu0 %v6839_v34 }
 0x578   : > { %3177 = vmatprep.mubr.bf16.mxu0 %v6844_v59 }
 0x57f   : > { %3178 = vmatmul.mubr.bf16.gmra.mxu0 %v6842_v42  ;;  %v10016_v42 = vld [vmem:[#allocation98_spill] sm:$0xff] }
 0x580   : > { %3185 = vmatprep.mubr.bf16.mxu0 %v6847_v63 }
 0x587   : > { %3186 = vmatmul.mubr.bf16.gmra.mxu0 %v6845_v38 }
 0x588   : > { %3193 = vmatprep.mubr.bf16.mxu0 %v6850_v28 }
 0x58f   : > { %3194 = vmatmul.mubr.bf16.gmra.mxu0 %v6848_v31 }
 0x590   : > { %3201 = vmatprep.mubr.bf16.mxu0 %v6853_v26 }
 0x597   : > { %3202 = vmatmul.mubr.bf16.gmra.mxu0 %v6851_v6 }
 0x598   : > { %3209 = vmatprep.mubr.bf16.mxu0 %v6856_v50  ;;  %v6859_v50 = vld [vmem:[%s9768_s11 + $0x4] ss:$8 sps:$4 sm:$0xff]  }
 0x599   : > { %3682 = vmatprep.mubr.bf16.mxu1 %v6859_v50 }
 0x59f   : > { %3210 = vmatmul.mubr.bf16.gmra.mxu0 %v6854_v45 }
 0x5e7   : > { %v6084_v8 = vpop.f32.mrf.mxu0 }
 0x5e9   : > { %v6085_v56 = vpop.f32.mrf.mxu0 }
 0x5ea   : > { %v6086_v5 = vadd.f32 %v6085_v56, %v6084_v8  ;;  %v10017_v56 = vld [vmem:[#allocation93_spill] sm:$0xff] }
 0x5eb   : > { %v6087_v14 = vpop.f32.mrf.mxu0 }
 0x5ec   : > { %v3092_v52 = vadd.f32 %v6086_v5, %v10009_v7  ;;  %v10018_v7 = vld [vmem:[#allocation94_spill] sm:$0xff] }
 0x5ed   : > { %v6088_v25 = vpop.f32.mrf.mxu0 }
 0x5ee   : > { %v6089_v0 = vadd.f32 %v6088_v25, %v6087_v14  ;;  %v3218_v57 = vmax.f32 %v3092_v52, 0.0 }
 0x5ef   : > { %v6090_v10 = vpop.f32.mrf.mxu0 }
 0x5f0   : > { %v3095_v61 = vadd.f32 %v6089_v0, %v10010_v49 }
 0x5f1   : > { %v6091_v29 = vpop.f32.mrf.mxu0 }
 0x5f2   : > { %v3219_v47 = vmax.f32 %v3095_v61, 0.0  ;;  %v6092_v44 = vadd.f32 %v6091_v29, %v6090_v10 }
 0x5f3   : > { %v6093_v58 = vpop.f32.mrf.mxu0 }
 0x5f4   : > { %v9050_v41 = vpack.c.bf16 %v3219_v47, %v3218_v57  ;;  %v3100_v15 = vadd.f32 %v6092_v44, %v10011_v21  ;;  %v10019_v44 = vld [vmem:[#allocation89_spill] sm:$0xff] }
 0x5f5   : > { %v6094_v37 = vpop.f32.mrf.mxu0 }
 0x5f6   : > { %v6095_v53 = vadd.f32 %v6094_v37, %v6093_v58  ;;  %v3220_v12 = vmax.f32 %v3100_v15, 0.0  ;;  %v10020_v15 = vld [vmem:[#allocation90_spill] sm:$0xff] }
 0x5f7   : > { %v6096_v35 = vpop.f32.mrf.mxu0 }
 0x5f8   : > { %v3103_v9 = vadd.f32 %v6095_v53, %v10012_v60 }
 0x5f9   : > { %v6097_v48 = vpop.f32.mrf.mxu0 }
 0x5fa   : > { %v3221_v39 = vmax.f32 %v3103_v9, 0.0  ;;  %v6098_v51 = vadd.f32 %v6097_v48, %v6096_v35 }
 0x5fb   : > { %v6099_v40 = vpop.f32.mrf.mxu0 }
 0x5fc   : > { %v9054_v1 = vpack.c.bf16 %v3221_v39, %v3220_v12  ;;  %v3108_v20 = vadd.f32 %v6098_v51, %v10013_v62 }
 0x5fd   : > { %v6100_v13 = vpop.f32.mrf.mxu0 }
 0x5fe   : > { %v6101_v24 = vadd.f32 %v6100_v13, %v6099_v40  ;;  %v3222_v30 = vmax.f32 %v3108_v20, 0.0  ;;  %v10021_v40 = vld [vmem:[#allocation85_spill] sm:$0xff] }
 0x5ff   : > { %v6102_v33 = vpop.f32.mrf.mxu0 }
 0x600   : > { %v3111_v4 = vadd.f32 %v6101_v24, %v10014_v11  ;;  %v10022_v24 = vld [vmem:[#allocation86_spill] sm:$0xff] }
 0x601   : > { %v6103_v46 = vpop.f32.mrf.mxu0 }
 0x602   : > { %v3223_v54 = vmax.f32 %v3111_v4, 0.0  ;;  %v6104_v43 = vadd.f32 %v6103_v46, %v6102_v33 }
 0x603   : > { %v6105_v16 = vpop.f32.mrf.mxu0 }
 0x604   : > { %v9058_v32 = vpack.c.bf16 %v3223_v54, %v3222_v30  ;;  %v3116_v18 = vadd.f32 %v6104_v43, %v10015_v36 }
 0x605   : > { %v6106_v27 = vpop.f32.mrf.mxu0 }
 0x606   : > { %v6107_v34 = vadd.f32 %v6106_v27, %v6105_v16  ;;  %v3224_v28 = vmax.f32 %v3116_v18, 0.0  ;;  %v10023_v27 = vld [vmem:[#allocation81_spill] sm:$0xff] }
 0x607   : > { %v6108_v59 = vpop.f32.mrf.mxu0 }
 0x608   : > { %v3119_v63 = vadd.f32 %v6107_v34, %v10016_v42 }
 0x609   : > { %v6109_v38 = vpop.f32.mrf.mxu0 }
 0x60a   : > { %v3225_v31 = vmax.f32 %v3119_v63, 0.0  ;;  %v6110_v26 = vadd.f32 %v6109_v38, %v6108_v59  ;;  %v10024_v59 = vld [vmem:[#allocation82_spill] sm:$0xff] }
 0x60b   : > { %v6111_v6 = vpop.f32.mrf.mxu0 }
 0x60c   : > { %v9065_v45 = vpack.c.bf16 %v3225_v31, %v3224_v28  ;;  %v3124_v5 = vadd.f32 %v6110_v26, %v10017_v56 }
 0x60d   : > { %v6112_v8 = vpop.f32.mrf.mxu0 }
 0x60e   : > { %v6113_v14 = vadd.f32 %v6112_v8, %v6111_v6  ;;  %v3226_v10 = vmax.f32 %v3124_v5, 0.0  ;;  %v10025_v8 = vld [vmem:[#allocation107_spill] sm:$0xff] }
 0x60f   : > { %v6114_v25 = vpop.f32.mrf.mxu0 }
 0x610   : > { %v3127_v52 = vadd.f32 %v6113_v14, %v10018_v7 }
 0x611   : > { %v6115_v0 = vpop.f32.mrf.mxu0 }
 0x612   : > { %v3227_v49 = vmax.f32 %v3127_v52, 0.0  ;;  %v6116_v61 = vadd.f32 %v6115_v0, %v6114_v25  ;;  %v10026_v25 = vld [vmem:[#allocation108_spill] sm:$0xff] }
 0x613   : > { %v6117_v29 = vpop.f32.mrf.mxu0 }
 0x614   : > { %v9069_v57 = vpack.c.bf16 %v3227_v49, %v3226_v10  ;;  %v3132_v58 = vadd.f32 %v6116_v61, %v10019_v44  ;;  %v10027_v44 = vld [vmem:[#allocation103_spill] sm:$0xff] }
 0x615   : > { %v6118_v47 = vpop.f32.mrf.mxu0 }
 0x616   : > { %v6119_v37 = vadd.f32 %v6118_v47, %v6117_v29  ;;  %v3228_v60 = vmax.f32 %v3132_v58, 0.0 }
 0x617   : > { %v6120_v21 = vpop.f32.mrf.mxu0 }
 0x618   : > { %v3135_v53 = vadd.f32 %v6119_v37, %v10020_v15  ;;  %v10028_v15 = vld [vmem:[#allocation104_spill] sm:$0xff] }
 0x619   : > { %v6121_v35 = vpop.f32.mrf.mxu0 }
 0x61a   : > { %v3229_v9 = vmax.f32 %v3135_v53, 0.0  ;;  %v6122_v48 = vadd.f32 %v6121_v35, %v6120_v21 }
 0x61b   : > { %v6123_v12 = vpop.f32.mrf.mxu0 }
 0x61c   : > { %v9073_v39 = vpack.c.bf16 %v3229_v9, %v3228_v60  ;;  %v3140_v13 = vadd.f32 %v6122_v48, %v10021_v40 }
 0x61d   : > { %v6124_v51 = vpop.f32.mrf.mxu0 }
 0x61e   : > { %v6125_v62 = vadd.f32 %v6124_v51, %v6123_v12  ;;  %v3230_v4 = vmax.f32 %v3140_v13, 0.0 }
 0x61f   : > { %v6126_v20 = vpop.f32.mrf.mxu0 }
 0x620   : > { %v3143_v33 = vadd.f32 %v6125_v62, %v10022_v24 }
 0x621   : > { %v6127_v11 = vpop.f32.mrf.mxu0 }
 0x622   : > { %v3231_v46 = vmax.f32 %v3143_v33, 0.0  ;;  %v6128_v30 = vadd.f32 %v6127_v11, %v6126_v20 }
 0x623   : > { %v6129_v54 = vpop.f32.mrf.mxu0 }
 0x624   : > { %v9077_v43 = vpack.c.bf16 %v3231_v46, %v3230_v4  ;;  %v3148_v36 = vadd.f32 %v6128_v30, %v10023_v27 }
 0x625   : > { %v6130_v16 = vpop.f32.mrf.mxu0 }
 0x626   : > { %v6131_v18 = vadd.f32 %v6130_v16, %v6129_v54  ;;  %v3232_v38 = vmax.f32 %v3148_v36, 0.0 }
 0x627   : > { %v6132_v34 = vpop.f32.mrf.mxu0 }
 0x628   : > { %v3151_v42 = vadd.f32 %v6131_v18, %v10024_v59 }
 0x629   : > { %v6133_v63 = vpop.f32.mrf.mxu0 }
 0x62a   : > { %v3233_v28 = vmax.f32 %v3151_v42, 0.0  ;;  %v6134_v31 = vadd.f32 %v6133_v63, %v6132_v34 }
 0x62b   : > { %v6135_v26 = vpop.f32.mrf.mxu0 }
 0x62c   : > { %v9081_v6 = vpack.c.bf16 %v3233_v28, %v3232_v38  ;;  %v3156_v56 = vadd.f32 %v6134_v31, %v10025_v8  ;;  %v10029_v8 = vld [vmem:[#allocation84_spill] sm:$0xff] }
 0x62d   : > { %v6136_v50 = vpop.f32.mrf.mxu0 }
 0x62e   : > { %v6137_v5 = vadd.f32 %v6136_v50, %v6135_v26  ;;  %v3234_v0 = vmax.f32 %v3156_v56, 0.0 }
 0x62f   : > { %v6138_v14 = vpop.f32.mrf.mxu0 }
 0x630   : > { %v3159_v7 = vadd.f32 %v6137_v5, %v10026_v25  ;;  %v10030_v5 = vld [vmem:[#allocation79_spill] sm:$0xff] }
 0x631   : > { %v6139_v52 = vpop.f32.mrf.mxu0 }
 0x632   : > { %v3235_v10 = vmax.f32 %v3159_v7, 0.0  ;;  %v6140_v49 = vadd.f32 %v6139_v52, %v6138_v14  ;;  %v10031_v52 = vld [vmem:[#allocation83_spill] sm:$0xff] }
 0x633   : > { %v6141_v61 = vpop.f32.mrf.mxu0 }
 0x634   : > { %v9085_v29 = vpack.c.bf16 %v3235_v10, %v3234_v0  ;;  %v3164_v58 = vadd.f32 %v6140_v49, %v10027_v44  ;;  %v10032_v10 = vld [vmem:[#allocation80_spill] sm:$0xff] }
 0x635   : > { %v6142_v47 = vpop.f32.mrf.mxu0 }
 0x636   : > { %v6143_v37 = vadd.f32 %v6142_v47, %v6141_v61  ;;  %v3236_v60 = vmax.f32 %v3164_v58, 0.0  ;;  %v10033_v47 = vld [vmem:[#allocation88_spill] sm:$0xff] }
 0x637   : > { %v6144_v21 = vpop.f32.mrf.mxu0 }
 0x638   : > { %v3167_v53 = vadd.f32 %v6143_v37, %v10028_v15 }
 0x639   : > { %v6145_v35 = vpop.f32.mrf.mxu0 }
 0x63a   : > { %v3237_v9 = vmax.f32 %v3167_v53, 0.0 }
 0x63b   : > { %v6147_v48 = vpop.f32.mrf.mxu0 }
 0x63c   : > { %v9089_v12 = vpack.c.bf16 %v3237_v9, %v3236_v60  ;;  %v10034_v60 = vld [vmem:[#allocation87_spill] sm:$0xff] }
 0x63d   : > { %v6148_v51 = vpop.f32.mrf.mxu0 }
 0x63f   : > { %v6150_v40 = vpop.f32.mrf.mxu0 }
 0x641   : > { %v6151_v13 = vpop.f32.mrf.mxu0 }
 0x643   : > { %v6153_v62 = vpop.f32.mrf.mxu0 }
 0x645   : > { %v6154_v20 = vpop.f32.mrf.mxu0 }
 0x647   : > { %v6156_v24 = vpop.f32.mrf.mxu0 }
 0x649   : > { %v6157_v33 = vpop.f32.mrf.mxu0 }
 0x64a   : > { %v6158_v53 = vadd.f32 %v6157_v33, %v6156_v24 }
 0x64b   : > { %v6159_v11 = vpop.f32.mrf.mxu0 }
 0x64d   : > { %v6160_v4 = vpop.f32.mrf.mxu0 }
 0x64e   : > { %v6161_v61 = vadd.f32 %v6160_v4, %v6159_v11  ;;  %v10036_v11 = vld [vmem:[#allocation91_spill] sm:$0xff] }
 0x64f   : > { %v6162_v46 = vpop.f32.mrf.mxu0  ;;  %v3188_v4 = vadd.f32 %v6158_v53, %v10036_v11  ;;  %v6895_v53 = vld [vmem:[%s9768_s11 + $0xc4] ss:$8 sps:$4 sm:$0xff]  }
 0x651   : > { %v6163_v30 = vpop.f32.mrf.mxu0 }
 0x652   : > { %v6164_v7 = vadd.f32 %v6163_v30, %v6162_v46  ;;  %v6152_v30 = vadd.f32 %v6151_v13, %v6150_v40  ;;  %v10040_v13 = vld [vmem:[#allocation99_spill] sm:$0xff] }
 0x653   : > { %v6165_v54 = vpop.f32.mrf.mxu0 }
 0x654   : > { %v3196_v9 = vadd.f32 %v6164_v7, %v10034_v60  ;;  %v6875_v7 = vld [vmem:[%s9768_s11 + $0x60] ss:$8 sps:$4 sm:$0xff]  }
 0x655   : > { %v6166_v16 = vpop.f32.mrf.mxu0  ;;  %v6893_v60 = vld [vmem:[%s9768_s11 + $0xc0] ss:$8 sps:$4 sm:$0xff]  }
 0x656   : > { %v6167_v50 = vadd.f32 %v6166_v16, %v6165_v54 }
 0x657   : > { %v6168_v27 = vpop.f32.mrf.mxu0 }
 0x658   : > { %v3199_v44 = vadd.f32 %v6167_v50, %v10033_v47  ;;  %v6884_v47 = vld [vmem:[%s9768_s11 + $0x90] ss:$8 sps:$4 sm:$0xff]  }
 0x659   : > { %v6169_v36 = vpop.f32.mrf.mxu0 }
 0x65a   : > { %v6170_v31 = vadd.f32 %v6169_v36, %v6168_v27  ;;  %v6155_v27 = vadd.f32 %v6154_v20, %v6153_v62  ;;  %v10035_v36 = vld [vmem:[#allocation92_spill] sm:$0xff]  ;;  %v6146_v62 = vadd.f32 %v6145_v35, %v6144_v21  ;;  %v10038_v20 = vld [vmem:[#allocation95_spill] sm:$0xff]  ;;  %v6871_v35 = vld [vmem:[%s9768_s11 + $0x44] ss:$8 sps:$4 sm:$0xff]  }
 0x65b   : > { %v6171_v18 = vpop.f32.mrf.mxu0 }
 0x65c   : > { %v3204_v0 = vadd.f32 %v6170_v31, %v10031_v52  ;;  %v3242_v31 = vmax.f32 %v3188_v4, 0.0  ;;  %v6880_v52 = vld [vmem:[%s9768_s11 + $0x74] ss:$8 sps:$4 sm:$0xff]  }
 0x65d   : > { %v6172_v34 = vpop.f32.mrf.mxu0 }
 0x65e   : > { %v6173_v63 = vadd.f32 %v6172_v34, %v6171_v18  ;;  %v3246_v54 = vmax.f32 %v3204_v0, 0.0  ;;  %v3191_v18 = vadd.f32 %v6161_v61, %v10035_v36  ;;  %v3245_v34 = vmax.f32 %v3199_v44, 0.0  ;;  %v6878_v0 = vld [vmem:[%s9768_s11 + $0x70] ss:$8 sps:$4 sm:$0xff]   ;;  %v6886_v61 = vld [vmem:[%s9768_s11 + $0x94] ss:$8 sps:$4 sm:$0xff]  }
 0x65f   : > { %v6174_v59 = vpop.f32.mrf.mxu0  ;;  %v6889_v44 = vld [vmem:[%s9768_s11 + $0xa4] ss:$8 sps:$4 sm:$0xff]   ;;  %v6904_v36 = vld [vmem:[%s9768_s11 + $0xf4] ss:$8 sps:$4 sm:$0xff]  }
 0x660   : > { %v3207_v56 = vadd.f32 %v6173_v63, %v10029_v8  ;;  %v10037_v63 = vld [vmem:[#allocation96_spill] sm:$0xff]  ;;  %v3243_v33 = vmax.f32 %v3191_v18, 0.0  ;;  %v3172_v8 = vadd.f32 %v6146_v62, %v10040_v13 }
 0x661   : > { %v6175_v42 = vpop.f32.mrf.mxu0  ;;  %v3183_v24 = vadd.f32 %v6155_v27, %v10037_v63  ;;  %v6899_v27 = vld [vmem:[%s9768_s11 + $0xe0] ss:$8 sps:$4 sm:$0xff]   ;;  %v6902_v18 = vld [vmem:[%s9768_s11 + $0xf0] ss:$8 sps:$4 sm:$0xff]   ;;  %v3338_v63 = vpop.permute.xlu1 %3337 }
 0x662   : > { %v6176_v38 = vadd.f32 %v6175_v42, %v6174_v59  ;;  %v3247_v58 = vmax.f32 %v3207_v56, 0.0  ;;  %v3244_v59 = vmax.f32 %v3196_v9, 0.0  ;;  %v6149_v42 = vadd.f32 %v6148_v51, %v6147_v48  ;;  %v6898_v9 = vld [vmem:[%s9768_s11 + $0xd4] ss:$8 sps:$4 sm:$0xff]  }
 0x663   : > { %v6177_v28 = vpop.f32.mrf.mxu0  ;;  %v3326_v40 = vpack.c.bf16 %v3243_v33, %v3242_v31 }
 0x664   : > { %v3212_v14 = vadd.f32 %v6176_v38, %v10030_v5  ;;  %v3328_v46 = vpack.c.bf16 %v3247_v58, %v3246_v54  ;;  %v3327_v38 = vpack.c.bf16 %v3245_v34, %v3244_v59  ;;  %v6874_v5 = vld [vmem:[%s9768_s11 + $0x54] ss:$8 sps:$4 sm:$0xff]   ;;  %v6887_v58 = vld [vmem:[%s9768_s11 + $0xa0] ss:$8 sps:$4 sm:$0xff]   ;;  %v6896_v54 = vld [vmem:[%s9768_s11 + $0xd0] ss:$8 sps:$4 sm:$0xff]  }
 0x665   : > { %v6178_v26 = vpop.f32.mrf.mxu0 }
 0x666   : > { %v6179_v25 = vadd.f32 %v6178_v26, %v6177_v28  ;;  %v3248_v37 = vmax.f32 %v3212_v14, 0.0  ;;  %v3180_v28 = vadd.f32 %v6152_v30, %v10038_v20  ;;  %v10039_v26 = vld [vmem:[#allocation100_spill] sm:$0xff] }
 0x667   : > { %v3175_v50 = vadd.f32 %v6149_v42, %v10039_v26  ;;  %v6872_v14 = vld [vmem:[%s9768_s11 + $0x50] ss:$8 sps:$4 sm:$0xff]  }
 0x668   : > { %v3215_v49 = vadd.f32 %v6179_v25, %v10032_v10  ;;  %v3240_v48 = vmax.f32 %v3180_v28, 0.0  ;;  %v6877_v25 = vld [vmem:[%s9768_s11 + $0x64] ss:$8 sps:$4 sm:$0xff]  }
 0x669   : > { %v3239_v51 = vmax.f32 %v3175_v50, 0.0  ;;  %v6883_v10 = vld [vmem:[%s9768_s11 + $0x84] ss:$8 sps:$4 sm:$0xff]  }
 0x66a   : > { %v3249_v15 = vmax.f32 %v3215_v49, 0.0  ;;  %v6881_v49 = vld [vmem:[%s9768_s11 + $0x80] ss:$8 sps:$4 sm:$0xff]  }
 0x66c   : > { %v3329_v16 = vpack.c.bf16 %v3249_v15, %v3248_v37  ;;  %v6892_v37 = vld [vmem:[%s9768_s11 + $0xb4] ss:$8 sps:$4 sm:$0xff]   ;;  %v6890_v15 = vld [vmem:[%s9768_s11 + $0xb0] ss:$8 sps:$4 sm:$0xff]  }
 0x66e   : > { %6180 = vmatprep.subr.bf16.mxu1 %v3329_v16  ;;  %v6901_v16 = vld [vmem:[%s9768_s11 + $0xe4] ss:$8 sps:$4 sm:$0xff]  }
 0x66f   : > { %6181 = vmatpush3.bf16.msra.mxu1 %v9081_v6  ;;  %v3241_v6 = vmax.f32 %v3183_v24, 0.0 }
 0x670   : > { %6182 = vmatprep.subr.bf16.mxu1 %v3328_v46 }
 0x671   : > { %v3325_v56 = vpack.c.bf16 %v3241_v6, %v3240_v48 }
 0x673   : > { %6183 = vmatpush3.bf16.msra.mxu1 %v9077_v43  ;;  %v3238_v43 = vmax.f32 %v3172_v8, 0.0 }
 0x674   : > { %6184 = vmatprep.subr.bf16.mxu1 %v3327_v38 }
 0x675   : > { %v3324_v21 = vpack.c.bf16 %v3239_v51, %v3238_v43 }
 0x677   : > { %6185 = vmatpush3.bf16.msra.mxu1 %v9073_v39  ;;  %v6857_v39 = vld [vmem:[%s9768_s11] ss:$8 sps:$4 sm:$0xff]  }
 0x678   : > { %6186 = vmatprep.subr.bf16.mxu1 %v3326_v40 }
 0x67b   : > { %6187 = vmatpush3.bf16.msra.mxu1 %v9069_v57  ;;  %v6860_v57 = vld [vmem:[%s9768_s11 + $0x14] ss:$8 sps:$4 sm:$0xff]  }
 0x67c   : > { %6188 = vmatprep.subr.bf16.mxu1 %v3325_v56 }
 0x67f   : > { %6189 = vmatpush3.bf16.msra.mxu1 %v9065_v45  ;;  %v6866_v45 = vld [vmem:[%s9768_s11 + $0x34] ss:$8 sps:$4 sm:$0xff]  }
 0x680   : > { %6190 = vmatprep.subr.bf16.mxu1 %v3324_v21 }
 0x683   : > { %6191 = vmatpush3.bf16.msra.mxu1 %v9058_v32  ;;  %v6862_v32 = vld [vmem:[%s9768_s11 + $0x10] ss:$8 sps:$4 sm:$0xff]  }
 0x684   : > { %6192 = vmatprep.subr.bf16.mxu1 %v9089_v12  ;;  %v6869_v12 = vld [vmem:[%s9768_s11 + $0x40] ss:$8 sps:$4 sm:$0xff]  }
 0x687   : > { %6193 = vmatpush3.bf16.msra.mxu1 %v9054_v1  ;;  %v6863_v1 = vld [vmem:[%s9768_s11 + $0x24] ss:$8 sps:$4 sm:$0xff]  }
 0x688   : > { %6194 = vmatprep.subr.bf16.mxu1 %v9085_v29  ;;  %v6868_v29 = vld [vmem:[%s9768_s11 + $0x30] ss:$8 sps:$4 sm:$0xff]  }
 0x68b   : > { %6195 = vmatpush3.bf16.msra.mxu1 %v9050_v41  ;;  %v6865_v41 = vld [vmem:[%s9768_s11 + $0x20] ss:$8 sps:$4 sm:$0xff]  }
 0x68e   : > { %3683 = vmatmul.mubr.bf16.vlgmr.msra.gmra.mxu1 %v6857_v39 }
 0x68f   : > { %3690 = vmatprep.mubr.bf16.mxu1 %v6860_v57  ;;  %v10041_v57 = vld [vmem:[#allocation133_spill] sm:$0xff] }
 0x696   : > { %3691 = vmatmul.mubr.bf16.gmra.mxu1 %v6862_v32 }
 0x697   : > { %3698 = vmatprep.mubr.bf16.mxu1 %v6863_v1 }
 0x69e   : > { %3699 = vmatmul.mubr.bf16.gmra.mxu1 %v6865_v41 }
 0x69f   : > { %3706 = vmatprep.mubr.bf16.mxu1 %v6866_v45  ;;  %v10042_v45 = vld [vmem:[#allocation134_spill] sm:$0xff] }
 0x6a6   : > { %3707 = vmatmul.mubr.bf16.gmra.mxu1 %v6868_v29 }
 0x6a7   : > { %3714 = vmatprep.mubr.bf16.mxu1 %v6871_v35 }
 0x6ae   : > { %3715 = vmatmul.mubr.bf16.gmra.mxu1 %v6869_v12 }
 0x6af   : > { %3722 = vmatprep.mubr.bf16.mxu1 %v6874_v5 }
 0x6b6   : > { %3723 = vmatmul.mubr.bf16.gmra.mxu1 %v6872_v14 }
 0x6b7   : > { %3730 = vmatprep.mubr.bf16.mxu1 %v6877_v25 }
 0x6be   : > { %3731 = vmatmul.mubr.bf16.gmra.mxu1 %v6875_v7  ;;  %v10043_v7 = vld [vmem:[#allocation129_spill] sm:$0xff] }
 0x6bf   : > { %3738 = vmatprep.mubr.bf16.mxu1 %v6880_v52 }
 0x6c6   : > { %3739 = vmatmul.mubr.bf16.gmra.mxu1 %v6878_v0 }
 0x6c7   : > { %3746 = vmatprep.mubr.bf16.mxu1 %v6883_v10 }
 0x6ce   : > { %3747 = vmatmul.mubr.bf16.gmra.mxu1 %v6881_v49  ;;  %v10044_v49 = vld [vmem:[#allocation130_spill] sm:$0xff] }
 0x6cf   : > { %3754 = vmatprep.mubr.bf16.mxu1 %v6886_v61 }
 0x6d6   : > { %3755 = vmatmul.mubr.bf16.gmra.mxu1 %v6884_v47 }
 0x6d7   : > { %3762 = vmatprep.mubr.bf16.mxu1 %v6889_v44 }
 0x6de   : > { %3763 = vmatmul.mubr.bf16.gmra.mxu1 %v6887_v58 }
 0x6df   : > { %3770 = vmatprep.mubr.bf16.mxu1 %v6892_v37 }
 0x6e6   : > { %3771 = vmatmul.mubr.bf16.gmra.mxu1 %v6890_v15 }
 0x6e7   : > { %3778 = vmatprep.mubr.bf16.mxu1 %v6895_v53  ;;  %v6907_v53 = vld [vmem:[%s9770_s13 + $0x4] ss:$8 sps:$4 sm:$0xff]  }
 0x6e8   : > { %4275 = vmatprep.mubr.bf16.mxu0 %v6907_v53 }
 0x6ee   : > { %3779 = vmatmul.mubr.bf16.gmra.mxu1 %v6893_v60 }
 0x6ef   : > { %3786 = vmatprep.mubr.bf16.mxu1 %v6898_v9 }
 0x6f6   : > { %3787 = vmatmul.mubr.bf16.gmra.mxu1 %v6896_v54  ;;  %v10045_v54 = vld [vmem:[#allocation125_spill] sm:$0xff] }
 0x6f7   : > { %3794 = vmatprep.mubr.bf16.mxu1 %v6901_v16 }
 0x6fe   : > { %3795 = vmatmul.mubr.bf16.gmra.mxu1 %v6899_v27 }
 0x6ff   : > { %3802 = vmatprep.mubr.bf16.mxu1 %v6904_v36 }
 0x706   : > { %3803 = vmatmul.mubr.bf16.gmra.mxu1 %v6902_v18  ;;  %v10046_v18 = vld [vmem:[#allocation126_spill] sm:$0xff] }
 0x74e   : > { %v6196_v34 = vpop.f32.mrf.mxu1 }
 0x750   : > { %v6197_v46 = vpop.f32.mrf.mxu1 }
 0x751   : > { %v6198_v30 = vadd.f32 %v6197_v46, %v6196_v34 }
 0x752   : > { %v6199_v11 = vpop.f32.mrf.mxu1 }
 0x753   : > { %v3685_v59 = vadd.f32 %v6198_v30, %v8627_v2 }
 0x754   : > { %v6200_v4 = vpop.f32.mrf.mxu1 }
 0x755   : > { %v6201_v42 = vadd.f32 %v6200_v4, %v6199_v11  ;;  %v3811_v62 = vmax.f32 %v3685_v59, 0.0 }
 0x756   : > { %v6202_v24 = vpop.f32.mrf.mxu1 }
 0x757   : > { %v3688_v33 = vadd.f32 %v6201_v42, %v3338_v63 }
 0x758   : > { %v6203_v38 = vpop.f32.mrf.mxu1 }
 0x759   : > { %v3812_v20 = vmax.f32 %v3688_v33, 0.0  ;;  %v6204_v28 = vadd.f32 %v6203_v38, %v6202_v24  ;;  %v10047_v24 = vld [vmem:[#allocation121_spill] sm:$0xff] }
 0x75a   : > { %v6205_v31 = vpop.f32.mrf.mxu1 }
 0x75b   : > { %v9207_v26 = vpack.c.bf16 %v3812_v20, %v3811_v62  ;;  %v3693_v6 = vadd.f32 %v6204_v28, %v8587_v23  ;;  %v10048_v20 = vld [vmem:[#allocation122_spill] sm:$0xff] }
 0x75c   : > { %v6206_v50 = vpop.f32.mrf.mxu1 }
 0x75d   : > { %v6207_v40 = vadd.f32 %v6206_v50, %v6205_v31  ;;  %v3813_v2 = vmax.f32 %v3693_v6, 0.0 }
 0x75e   : > { %v6208_v13 = vpop.f32.mrf.mxu1 }
 0x75f   : > { %v3696_v8 = vadd.f32 %v6207_v40, %v8594_v3 }
 0x760   : > { %v6209_v48 = vpop.f32.mrf.mxu1 }
 0x761   : > { %v3814_v51 = vmax.f32 %v3696_v8, 0.0  ;;  %v6210_v56 = vadd.f32 %v6209_v48, %v6208_v13 }
 0x762   : > { %v6211_v43 = vpop.f32.mrf.mxu1 }
 0x763   : > { %v9211_v21 = vpack.c.bf16 %v3814_v51, %v3813_v2  ;;  %v3701_v32 = vadd.f32 %v6210_v56, %v10041_v57  ;;  %v10049_v2 = vld [vmem:[#allocation117_spill] sm:$0xff] }
 0x764   : > { %v6212_v39 = vpop.f32.mrf.mxu1 }
 0x765   : > { %v6213_v1 = vadd.f32 %v6212_v39, %v6211_v43  ;;  %v3815_v23 = vmax.f32 %v3701_v32, 0.0  ;;  %v10050_v39 = vld [vmem:[#allocation118_spill] sm:$0xff] }
 0x766   : > { %v6214_v41 = vpop.f32.mrf.mxu1 }
 0x767   : > { %v3704_v29 = vadd.f32 %v6213_v1, %v10042_v45 }
 0x768   : > { %v6215_v35 = vpop.f32.mrf.mxu1 }
 0x769   : > { %v3816_v12 = vmax.f32 %v3704_v29, 0.0  ;;  %v6216_v5 = vadd.f32 %v6215_v35, %v6214_v41 }
 0x76a   : > { %v6217_v14 = vpop.f32.mrf.mxu1 }
 0x76b   : > { %v9215_v3 = vpack.c.bf16 %v3816_v12, %v3815_v23  ;;  %v3709_v52 = vadd.f32 %v6216_v5, %v10043_v7  ;;  %v10051_v12 = vld [vmem:[#allocation113_spill] sm:$0xff]  ;;  %v10052_v7 = vld [vmem:[#allocation114_spill] sm:$0xff] }
 0x76c   : > { %v6218_v25 = vpop.f32.mrf.mxu1 }
 0x76d   : > { %v6219_v0 = vadd.f32 %v6218_v25, %v6217_v14  ;;  %v3817_v44 = vmax.f32 %v3709_v52, 0.0 }
 0x76e   : > { %v6220_v10 = vpop.f32.mrf.mxu1 }
 0x76f   : > { %v3712_v61 = vadd.f32 %v6219_v0, %v10044_v49 }
 0x770   : > { %v6221_v47 = vpop.f32.mrf.mxu1 }
 0x771   : > { %v3818_v58 = vmax.f32 %v3712_v61, 0.0  ;;  %v6222_v37 = vadd.f32 %v6221_v47, %v6220_v10 }
 0x772   : > { %v6223_v15 = vpop.f32.mrf.mxu1 }
 0x773   : > { %v9222_v60 = vpack.c.bf16 %v3818_v58, %v3817_v44  ;;  %v3717_v16 = vadd.f32 %v6222_v37, %v10045_v54 }
 0x774   : > { %v6224_v9 = vpop.f32.mrf.mxu1 }
 0x775   : > { %v6225_v27 = vadd.f32 %v6224_v9, %v6223_v15  ;;  %v3819_v30 = vmax.f32 %v3717_v16, 0.0 }
 0x776   : > { %v6226_v36 = vpop.f32.mrf.mxu1 }
 0x777   : > { %v3720_v34 = vadd.f32 %v6225_v27, %v10046_v18 }
 0x778   : > { %v6227_v46 = vpop.f32.mrf.mxu1 }
 0x779   : > { %v3820_v11 = vmax.f32 %v3720_v34, 0.0  ;;  %v6228_v4 = vadd.f32 %v6227_v46, %v6226_v36 }
 0x77a   : > { %v6229_v59 = vpop.f32.mrf.mxu1 }
 0x77b   : > { %v9226_v42 = vpack.c.bf16 %v3820_v11, %v3819_v30  ;;  %v3725_v33 = vadd.f32 %v6228_v4, %v10047_v24 }
 0x77c   : > { %v6230_v63 = vpop.f32.mrf.mxu1 }
 0x77d   : > { %v6231_v38 = vadd.f32 %v6230_v63, %v6229_v59  ;;  %v3821_v50 = vmax.f32 %v3725_v33, 0.0 }
 0x77e   : > { %v6232_v62 = vpop.f32.mrf.mxu1 }
 0x77f   : > { %v3728_v28 = vadd.f32 %v6231_v38, %v10048_v20 }
 0x780   : > { %v6233_v31 = vpop.f32.mrf.mxu1 }
 0x781   : > { %v3822_v6 = vmax.f32 %v3728_v28, 0.0  ;;  %v6234_v40 = vadd.f32 %v6233_v31, %v6232_v62 }
 0x782   : > { %v6235_v13 = vpop.f32.mrf.mxu1 }
 0x783   : > { %v9230_v8 = vpack.c.bf16 %v3822_v6, %v3821_v50  ;;  %v3733_v51 = vadd.f32 %v6234_v40, %v10049_v2 }
 0x784   : > { %v6236_v48 = vpop.f32.mrf.mxu1 }
 0x785   : > { %v6237_v56 = vadd.f32 %v6236_v48, %v6235_v13  ;;  %v3823_v1 = vmax.f32 %v3733_v51, 0.0 }
 0x786   : > { %v6238_v43 = vpop.f32.mrf.mxu1 }
 0x787   : > { %v3736_v57 = vadd.f32 %v6237_v56, %v10050_v39 }
 0x788   : > { %v6239_v32 = vpop.f32.mrf.mxu1 }
 0x789   : > { %v3824_v41 = vmax.f32 %v3736_v57, 0.0  ;;  %v6240_v45 = vadd.f32 %v6239_v32, %v6238_v43 }
 0x78a   : > { %v6241_v29 = vpop.f32.mrf.mxu1 }
 0x78b   : > { %v9234_v35 = vpack.c.bf16 %v3824_v41, %v3823_v1  ;;  %v3741_v5 = vadd.f32 %v6240_v45, %v10051_v12 }
 0x78c   : > { %v6242_v23 = vpop.f32.mrf.mxu1 }
 0x78d   : > { %v6243_v14 = vadd.f32 %v6242_v23, %v6241_v29  ;;  %v3825_v10 = vmax.f32 %v3741_v5, 0.0  ;;  %v10053_v5 = vld [vmem:[#allocation116_spill] sm:$0xff] }
 0x78e   : > { %v6244_v25 = vpop.f32.mrf.mxu1 }
 0x78f   : > { %v3744_v52 = vadd.f32 %v6243_v14, %v10052_v7 }
 0x790   : > { %v6245_v0 = vpop.f32.mrf.mxu1 }
 0x791   : > { %v3826_v49 = vmax.f32 %v3744_v52, 0.0  ;;  %v6246_v61 = vadd.f32 %v6245_v0, %v6244_v25  ;;  %v10054_v25 = vld [vmem:[#allocation111_spill] sm:$0xff] }
 0x792   : > { %v6247_v47 = vpop.f32.mrf.mxu1 }
 0x793   : > { %v9238_v44 = vpack.c.bf16 %v3826_v49, %v3825_v10  ;;  %v3749_v37 = vadd.f32 %v6246_v61, %v8613_v19  ;;  %v10055_v10 = vld [vmem:[#allocation115_spill] sm:$0xff]  ;;  %v10056_v61 = vld [vmem:[#allocation112_spill] sm:$0xff] }
 0x794   : > { %v6248_v58 = vpop.f32.mrf.mxu1 }
 0x795   : > { %v6249_v15 = vadd.f32 %v6248_v58, %v6247_v47  ;;  %v3827_v16 = vmax.f32 %v3749_v37, 0.0  ;;  %v10057_v37 = vld [vmem:[#allocation120_spill] sm:$0xff] }
 0x796   : > { %v6250_v53 = vpop.f32.mrf.mxu1 }
 0x797   : > { %v3752_v9 = vadd.f32 %v6249_v15, %v8615_v17 }
 0x798   : > { %v6251_v54 = vpop.f32.mrf.mxu1 }
 0x799   : > { %v3828_v27 = vmax.f32 %v3752_v9, 0.0  ;;  %v6252_v36 = vadd.f32 %v6251_v54, %v6250_v53 }
 0x79a   : > { %v6253_v18 = vpop.f32.mrf.mxu1 }
 0x79b   : > { %v9242_v34 = vpack.c.bf16 %v3828_v27, %v3827_v16  ;;  %v3757_v30 = vadd.f32 %v6252_v36, %v8568_v55  ;;  %v10058_v27 = vld [vmem:[#allocation119_spill] sm:$0xff] }
 0x79c   : > { %v6254_v46 = vpop.f32.mrf.mxu1 }
 0x79d   : > { %v6255_v11 = vadd.f32 %v6254_v46, %v6253_v18  ;;  %v3829_v19 = vmax.f32 %v3757_v30, 0.0 }
 0x79e   : > { %v6256_v4 = vpop.f32.mrf.mxu1 }
 0x79f   : > { %v3760_v59 = vadd.f32 %v6255_v11, %v8572_v22  ;;  %v10059_v11 = vld [vmem:[#allocation124_spill] sm:$0xff] }
 0x7a0   : > { %v6257_v63 = vpop.f32.mrf.mxu1 }
 0x7a1   : > { %v3830_v24 = vmax.f32 %v3760_v59, 0.0 }
 0x7a2   : > { %v6259_v33 = vpop.f32.mrf.mxu1 }
 0x7a3   : > { %v9246_v38 = vpack.c.bf16 %v3830_v24, %v3829_v19 }
 0x7a4   : > { %v6260_v17 = vpop.f32.mrf.mxu1 }
 0x7a6   : > { %v6262_v62 = vpop.f32.mrf.mxu1 }
 0x7a8   : > { %v6263_v20 = vpop.f32.mrf.mxu1 }
 0x7aa   : > { %v6265_v28 = vpop.f32.mrf.mxu1 }
 0x7ac   : > { %v6266_v31 = vpop.f32.mrf.mxu1 }
 0x7ad   : > { %v6267_v30 = vadd.f32 %v6266_v31, %v6265_v28  ;;  %v6258_v28 = vadd.f32 %v6257_v63, %v6256_v4  ;;  %v10062_v31 = vld [vmem:[#allocation127_spill] sm:$0xff]  ;;  %v6919_v63 = vld [vmem:[%s9770_s13 + $0x44] ss:$8 sps:$4 sm:$0xff]  }
 0x7ae   : > { %v6268_v50 = vpop.f32.mrf.mxu1 }
 0x7b0   : > { %v6269_v6 = vpop.f32.mrf.mxu1 }
 0x7b1   : > { %v6270_v16 = vadd.f32 %v6269_v6, %v6268_v50 }
 0x7b2   : > { %v6271_v40 = vpop.f32.mrf.mxu1 }
 0x7b4   : > { %v6272_v13 = vpop.f32.mrf.mxu1 }
 0x7b5   : > { %v6273_v58 = vadd.f32 %v6272_v13, %v6271_v40  ;;  %v10060_v40 = vld [vmem:[#allocation123_spill] sm:$0xff] }
 0x7b6   : > { %v6274_v55 = vpop.f32.mrf.mxu1  ;;  %v3781_v13 = vadd.f32 %v6270_v16, %v10060_v40  ;;  %v6952_v16 = vld [vmem:[%s9770_s13 + $0xf4] ss:$8 sps:$4 sm:$0xff]  }
 0x7b7   : > { %v3784_v59 = vadd.f32 %v6273_v58, %v10059_v11  ;;  %v6941_v58 = vld [vmem:[%s9770_s13 + $0xc0] ss:$8 sps:$4 sm:$0xff]  }
 0x7b8   : > { %v6275_v48 = vpop.f32.mrf.mxu1 }
 0x7b9   : > { %v6276_v0 = vadd.f32 %v6275_v48, %v6274_v55  ;;  %v6264_v55 = vadd.f32 %v6263_v20, %v6262_v62  ;;  %v3836_v6 = vmax.f32 %v3784_v59, 0.0  ;;  %v10064_v20 = vld [vmem:[#allocation131_spill] sm:$0xff] }
 0x7ba   : > { %v6277_v2 = vpop.f32.mrf.mxu1 }
 0x7bb   : > { %v3789_v36 = vadd.f32 %v6276_v0, %v10058_v27  ;;  %v6937_v0 = vld [vmem:[%s9770_s13 + $0xa4] ss:$8 sps:$4 sm:$0xff]   ;;  %v9362_v27 = vpop.permute.xlu1 %4080 }
 0x7bc   : > { %v6278_v51 = vpop.f32.mrf.mxu1 }
 0x7bd   : > { %v6279_v12 = vadd.f32 %v6278_v51, %v6277_v2  ;;  %v3837_v48 = vmax.f32 %v3789_v36, 0.0  ;;  %v6261_v2 = vadd.f32 %v6260_v17, %v6259_v33  ;;  %v10061_v51 = vld [vmem:[#allocation128_spill] sm:$0xff] }
 0x7be   : > { %v6280_v22 = vpop.f32.mrf.mxu1  ;;  %v3776_v50 = vadd.f32 %v6267_v30, %v10061_v51 }
 0x7bf   : > { %v3792_v15 = vadd.f32 %v6279_v12, %v10057_v37  ;;  %v6928_v12 = vld [vmem:[%s9770_s13 + $0x74] ss:$8 sps:$4 sm:$0xff]  }
 0x7c0   : > { %v6281_v56 = vpop.f32.mrf.mxu1  ;;  %v6946_v37 = vld [vmem:[%s9770_s13 + $0xd4] ss:$8 sps:$4 sm:$0xff]  }
 0x7c1   : > { %v6282_v29 = vadd.f32 %v6281_v56, %v6280_v22  ;;  %v3838_v19 = vmax.f32 %v3792_v15, 0.0  ;;  %v3773_v56 = vadd.f32 %v6264_v55, %v10062_v31  ;;  %v6944_v15 = vld [vmem:[%s9770_s13 + $0xd0] ss:$8 sps:$4 sm:$0xff]  }
 0x7c2   : > { %v6283_v43 = vpop.f32.mrf.mxu1 }
 0x7c3   : > { %v3797_v49 = vadd.f32 %v6282_v29, %v10055_v10  ;;  %v3920_v22 = vpack.c.bf16 %v3838_v19, %v3837_v48  ;;  %v3833_v33 = vmax.f32 %v3773_v56, 0.0  ;;  %v6925_v29 = vld [vmem:[%s9770_s13 + $0x64] ss:$8 sps:$4 sm:$0xff]   ;;  %v6935_v10 = vld [vmem:[%s9770_s13 + $0xa0] ss:$8 sps:$4 sm:$0xff]  }
 0x7c4   : > { %v6284_v39 = vpop.f32.mrf.mxu1 }
 0x7c5   : > { %v6285_v1 = vadd.f32 %v6284_v39, %v6283_v43  ;;  %v3839_v18 = vmax.f32 %v3797_v49, 0.0  ;;  %v3835_v43 = vmax.f32 %v3781_v13, 0.0  ;;  %v10063_v39 = vld [vmem:[#allocation132_spill] sm:$0xff] }
 0x7c6   : > { %v6286_v57 = vpop.f32.mrf.mxu1  ;;  %v6940_v49 = vld [vmem:[%s9770_s13 + $0xb4] ss:$8 sps:$4 sm:$0xff]  }
 0x7c7   : > { %v3800_v14 = vadd.f32 %v6285_v1, %v10053_v5  ;;  %v3919_v62 = vpack.c.bf16 %v3836_v6, %v3835_v43  ;;  %v6926_v5 = vld [vmem:[%s9770_s13 + $0x70] ss:$8 sps:$4 sm:$0xff]  }
 0x7c8   : > { %v6287_v32 = vpop.f32.mrf.mxu1 }
 0x7c9   : > { %v6288_v41 = vadd.f32 %v6287_v32, %v6286_v57  ;;  %v3840_v53 = vmax.f32 %v3800_v14, 0.0  ;;  %v3768_v57 = vadd.f32 %v6261_v2, %v10063_v39  ;;  %v3765_v32 = vadd.f32 %v6258_v28, %v10064_v20  ;;  %v6931_v14 = vld [vmem:[%s9770_s13 + $0x84] ss:$8 sps:$4 sm:$0xff]  }
 0x7ca   : > { %v6289_v45 = vpop.f32.mrf.mxu1 }
 0x7cb   : > { %v3805_v7 = vadd.f32 %v6288_v41, %v10054_v25  ;;  %v3921_v24 = vpack.c.bf16 %v3840_v53, %v3839_v18  ;;  %v3832_v17 = vmax.f32 %v3768_v57, 0.0  ;;  %v6922_v41 = vld [vmem:[%s9770_s13 + $0x54] ss:$8 sps:$4 sm:$0xff]   ;;  %v6929_v25 = vld [vmem:[%s9770_s13 + $0x80] ss:$8 sps:$4 sm:$0xff]   ;;  %v9366_v18 = vpop.permute.xlu1 %4000 }
 0x7cc   : > { %v6290_v23 = vpop.f32.mrf.mxu1  ;;  %v6949_v53 = vld [vmem:[%s9770_s13 + $0xe4] ss:$8 sps:$4 sm:$0xff]  }
 0x7cd   : > { %v6291_v52 = vadd.f32 %v6290_v23, %v6289_v45  ;;  %v3841_v9 = vmax.f32 %v3805_v7, 0.0  ;;  %v6920_v45 = vld [vmem:[%s9770_s13 + $0x50] ss:$8 sps:$4 sm:$0xff]   ;;  %v6923_v23 = vld [vmem:[%s9770_s13 + $0x60] ss:$8 sps:$4 sm:$0xff]  }
 0x7ce   : > { %v6934_v7 = vld [vmem:[%s9770_s13 + $0x94] ss:$8 sps:$4 sm:$0xff]  }
 0x7cf   : > { %v3808_v47 = vadd.f32 %v6291_v52, %v10056_v61  ;;  %v6932_v52 = vld [vmem:[%s9770_s13 + $0x90] ss:$8 sps:$4 sm:$0xff]   ;;  %v9373_v11 = vpop.permute.xlu1 %4070 }
 0x7d0   : > { %v6938_v61 = vld [vmem:[%s9770_s13 + $0xb0] ss:$8 sps:$4 sm:$0xff]  }
 0x7d1   : > { %v3842_v54 = vmax.f32 %v3808_v47, 0.0  ;;  %v6943_v47 = vld [vmem:[%s9770_s13 + $0xc4] ss:$8 sps:$4 sm:$0xff]  }
 0x7d3   : > { %v3922_v46 = vpack.c.bf16 %v3842_v54, %v3841_v9  ;;  %v9354_v9 = vpop.permute.xlu0 %4075  ;;  %v6947_v54 = vld [vmem:[%s9770_s13 + $0xe0] ss:$8 sps:$4 sm:$0xff]   ;;  %v9377_v19 = vpop.permute.xlu1 %3990 }
 0x7d5   : > { %6292 = vmatprep.subr.bf16.mxu0 %v3922_v46  ;;  %v6950_v46 = vld [vmem:[%s9770_s13 + $0xf0] ss:$8 sps:$4 sm:$0xff]  }
 0x7d6   : > { %6293 = vmatpush3.bf16.msra.mxu0 %v9238_v44  ;;  %v3834_v44 = vmax.f32 %v3776_v50, 0.0 }
 0x7d7   : > { %6294 = vmatprep.subr.bf16.mxu0 %v3921_v24  ;;  %v9364_v36 = vpop.permute.xlu0 %3995  ;;  %v9381_v55 = vpop.permute.xlu1 %4060 }
 0x7d8   : > { %v3918_v1 = vpack.c.bf16 %v3834_v44, %v3833_v33 }
 0x7da   : > { %6295 = vmatpush3.bf16.msra.mxu0 %v9234_v35  ;;  %v3831_v35 = vmax.f32 %v3765_v32, 0.0 }
 0x7db   : > { %6296 = vmatprep.subr.bf16.mxu0 %v3920_v22  ;;  %v9371_v30 = vpop.permute.xlu0 %4065  ;;  %v9385_v13 = vpop.permute.xlu1 %3980 }
 0x7dc   : > { %v3917_v4 = vpack.c.bf16 %v3832_v17, %v3831_v35 }
 0x7de   : > { %6297 = vmatpush3.bf16.msra.mxu0 %v9230_v8  ;;  %v6905_v8 = vld [vmem:[%s9770_s13] ss:$8 sps:$4 sm:$0xff]  }
 0x7df   : > { %6298 = vmatprep.subr.bf16.mxu0 %v3919_v62  ;;  %v9375_v59 = vpop.permute.xlu0 %3985  ;;  %v9389_v2 = vpop.permute.xlu1 %4050 }
 0x7e2   : > { %6299 = vmatpush3.bf16.msra.mxu0 %v9226_v42  ;;  %v6910_v42 = vld [vmem:[%s9770_s13 + $0x14] ss:$8 sps:$4 sm:$0xff]  }
 0x7e3   : > { %6300 = vmatprep.subr.bf16.mxu0 %v3918_v1  ;;  %v9379_v24 = vpop.permute.xlu0 %4055  ;;  %v9393_v50 = vpop.permute.xlu1 %3970 }
 0x7e6   : > { %6301 = vmatpush3.bf16.msra.mxu0 %v9222_v60  ;;  %v6916_v60 = vld [vmem:[%s9770_s13 + $0x34] ss:$8 sps:$4 sm:$0xff]  }
 0x7e7   : > { %6302 = vmatprep.subr.bf16.mxu0 %v3917_v4  ;;  %v9383_v40 = vpop.permute.xlu0 %3975  ;;  %v9397_v22 = vpop.permute.xlu1 %4040 }
 0x7ea   : > { %6303 = vmatpush3.bf16.msra.mxu0 %v9215_v3  ;;  %v6908_v3 = vld [vmem:[%s9770_s13 + $0x10] ss:$8 sps:$4 sm:$0xff]  }
 0x7eb   : > { %6304 = vmatprep.subr.bf16.mxu0 %v9246_v38  ;;  %v6917_v38 = vld [vmem:[%s9770_s13 + $0x40] ss:$8 sps:$4 sm:$0xff]   ;;  %v9387_v48 = vpop.permute.xlu0 %4045  ;;  %v3961_v31 = vpop.permute.xlu1 %3960 }
 0x7ee   : > { %6305 = vmatpush3.bf16.msra.mxu0 %v9211_v21  ;;  %v6913_v21 = vld [vmem:[%s9770_s13 + $0x24] ss:$8 sps:$4 sm:$0xff]  }
 0x7ef   : > { %6306 = vmatprep.subr.bf16.mxu0 %v9242_v34  ;;  %v6914_v34 = vld [vmem:[%s9770_s13 + $0x30] ss:$8 sps:$4 sm:$0xff]   ;;  %v9391_v51 = vpop.permute.xlu0 %3965  ;;  %v9401_v43 = vpop.permute.xlu1 %4030 }
 0x7f2   : > { %6307 = vmatpush3.bf16.msra.mxu0 %v9207_v26  ;;  %v6911_v26 = vld [vmem:[%s9770_s13 + $0x20] ss:$8 sps:$4 sm:$0xff]  }
 0x7f3   : > { %v9395_v6 = vpop.permute.xlu0 %4035  ;;  %v3951_v57 = vpop.permute.xlu1 %3950 }
 0x7f5   : > { %4276 = vmatmul.mubr.bf16.vlgmr.msra.gmra.mxu0 %v6905_v8 }
 0x7f6   : > { %4283 = vmatprep.mubr.bf16.mxu0 %v6910_v42 }
 0x7f7   : > { %v3956_v28 = vpop.permute.xlu0 %3955  ;;  %v9405_v62 = vpop.permute.xlu1 %4020 }
 0x7fb   : > { %v9399_v56 = vpop.permute.xlu0 %4025  ;;  %v3941_v32 = vpop.permute.xlu1 %3940 }
 0x7fd   : > { %4284 = vmatmul.mubr.bf16.gmra.mxu0 %v6908_v3 }
 0x7fe   : > { %4291 = vmatprep.mubr.bf16.mxu0 %v6913_v21 }
 0x7ff   : > { %v3946_v39 = vpop.permute.xlu0 %3945  ;;  %v9409_v1 = vpop.permute.xlu1 %4010 }
 0x803   : > { %v9403_v44 = vpop.permute.xlu0 %4015 }
 0x805   : > { %4292 = vmatmul.mubr.bf16.gmra.mxu0 %v6911_v26 }
 0x806   : > { %4299 = vmatprep.mubr.bf16.mxu0 %v6916_v60  ;;  %v3931_v60 = vpop.permute.xlu1 %3930 }
 0x807   : > { %v3936_v20 = vpop.permute.xlu0 %3935 }
 0x80b   : > { %v9407_v33 = vpop.permute.xlu0 %4005 }
 0x80d   : > { %4300 = vmatmul.mubr.bf16.gmra.mxu0 %v6914_v34 }
 0x80e   : > { %4307 = vmatprep.mubr.bf16.mxu0 %v6919_v63 }
 0x80f   : > { %v3926_v42 = vpop.permute.xlu0 %3925 }
 0x815   : > { %4308 = vmatmul.mubr.bf16.gmra.mxu0 %v6917_v38 }
 0x816   : > { %4315 = vmatprep.mubr.bf16.mxu0 %v6922_v41 }
 0x81d   : > { %4316 = vmatmul.mubr.bf16.gmra.mxu0 %v6920_v45 }
 0x81e   : > { %4323 = vmatprep.mubr.bf16.mxu0 %v6925_v29 }
 0x825   : > { %4324 = vmatmul.mubr.bf16.gmra.mxu0 %v6923_v23 }
 0x826   : > { %4331 = vmatprep.mubr.bf16.mxu0 %v6928_v12 }
 0x82d   : > { %4332 = vmatmul.mubr.bf16.gmra.mxu0 %v6926_v5 }
 0x82e   : > { %4339 = vmatprep.mubr.bf16.mxu0 %v6931_v14 }
 0x835   : > { %4340 = vmatmul.mubr.bf16.gmra.mxu0 %v6929_v25 }
 0x836   : > { %4347 = vmatprep.mubr.bf16.mxu0 %v6934_v7 }
 0x83d   : > { %4348 = vmatmul.mubr.bf16.gmra.mxu0 %v6932_v52 }
 0x83e   : > { %4355 = vmatprep.mubr.bf16.mxu0 %v6937_v0 }
 0x845   : > { %4356 = vmatmul.mubr.bf16.gmra.mxu0 %v6935_v10 }
 0x846   : > { %4363 = vmatprep.mubr.bf16.mxu0 %v6940_v49 }
 0x84d   : > { %4364 = vmatmul.mubr.bf16.gmra.mxu0 %v6938_v61 }
 0x84e   : > { %4371 = vmatprep.mubr.bf16.mxu0 %v6943_v47 }
 0x855   : > { %4372 = vmatmul.mubr.bf16.gmra.mxu0 %v6941_v58 }
 0x856   : > { %4379 = vmatprep.mubr.bf16.mxu0 %v6946_v37 }
 0x85d   : > { %4380 = vmatmul.mubr.bf16.gmra.mxu0 %v6944_v15 }
 0x85e   : > { %4387 = vmatprep.mubr.bf16.mxu0 %v6949_v53 }
 0x865   : > { %4388 = vmatmul.mubr.bf16.gmra.mxu0 %v6947_v54 }
 0x866   : > { %4395 = vmatprep.mubr.bf16.mxu0 %v6952_v16 }
 0x86d   : > { %4396 = vmatmul.mubr.bf16.gmra.mxu0 %v6950_v46 }
 0x8b5   : > { %v6308_v17 = vpop.f32.mrf.mxu0 }
 0x8b7   : > { %v6309_v35 = vpop.f32.mrf.mxu0 }
 0x8b8   : > { %v6310_v4 = vadd.f32 %v6309_v35, %v6308_v17 }
 0x8b9   : > { %v6311_v8 = vpop.f32.mrf.mxu0 }
 0x8ba   : > { %v4278_v21 = vadd.f32 %v6310_v4, %v3926_v42 }
 0x8bb   : > { %v6312_v3 = vpop.f32.mrf.mxu0 }
 0x8bc   : > { %v6313_v26 = vadd.f32 %v6312_v3, %v6311_v8  ;;  %v4404_v41 = vmax.f32 %v4278_v21, 0.0 }
 0x8bd   : > { %v6314_v34 = vpop.f32.mrf.mxu0 }
 0x8be   : > { %v4281_v63 = vadd.f32 %v6313_v26, %v3931_v60 }
 0x8bf   : > { %v6315_v38 = vpop.f32.mrf.mxu0 }
 0x8c0   : > { %v4405_v45 = vmax.f32 %v4281_v63, 0.0  ;;  %v6316_v29 = vadd.f32 %v6315_v38, %v6314_v34 }
 0x8c1   : > { %v6317_v23 = vpop.f32.mrf.mxu0 }
 0x8c2   : > { %v9411_v12 = vpack.c.bf16 %v4405_v45, %v4404_v41  ;;  %v4286_v14 = vadd.f32 %v6316_v29, %v3936_v20 }
 0x8c3   : > { %v6318_v5 = vpop.f32.mrf.mxu0 }
 0x8c4   : > { %v6319_v25 = vadd.f32 %v6318_v5, %v6317_v23  ;;  %v4406_v10 = vmax.f32 %v4286_v14, 0.0 }
 0x8c5   : > { %v6320_v7 = vpop.f32.mrf.mxu0 }
 0x8c6   : > { %v4289_v52 = vadd.f32 %v6319_v25, %v3941_v32 }
 0x8c7   : > { %v6321_v0 = vpop.f32.mrf.mxu0 }
 0x8c8   : > { %v4407_v49 = vmax.f32 %v4289_v52, 0.0  ;;  %v6322_v61 = vadd.f32 %v6321_v0, %v6320_v7 }
 0x8c9   : > { %v6323_v47 = vpop.f32.mrf.mxu0 }
 0x8ca   : > { %v9413_v58 = vpack.c.bf16 %v4407_v49, %v4406_v10  ;;  %v4294_v15 = vadd.f32 %v6322_v61, %v3946_v39 }
 0x8cb   : > { %v6324_v37 = vpop.f32.mrf.mxu0 }
 0x8cc   : > { %v6325_v53 = vadd.f32 %v6324_v37, %v6323_v47  ;;  %v4408_v17 = vmax.f32 %v4294_v15, 0.0 }
 0x8cd   : > { %v6326_v54 = vpop.f32.mrf.mxu0 }
 0x8ce   : > { %v4297_v16 = vadd.f32 %v6325_v53, %v3951_v57  ;;  %v6955_v57 = vld [vmem:[%s9772_s15 + $0x4] ss:$8 sps:$4 sm:$0xff]  }
 0x8cf   : > { %v6327_v46 = vpop.f32.mrf.mxu0  ;;  %4868 = vmatprep.mubr.bf16.mxu1 %v6955_v57 }
 0x8d0   : > { %v4409_v35 = vmax.f32 %v4297_v16, 0.0  ;;  %v6328_v4 = vadd.f32 %v6327_v46, %v6326_v54 }
 0x8d1   : > { %v6329_v20 = vpop.f32.mrf.mxu0 }
 0x8d2   : > { %v9415_v8 = vpack.c.bf16 %v4409_v35, %v4408_v17  ;;  %v4302_v42 = vadd.f32 %v6328_v4, %v3956_v28 }
 0x8d3   : > { %v6330_v32 = vpop.f32.mrf.mxu0 }
 0x8d4   : > { %v6331_v3 = vadd.f32 %v6330_v32, %v6329_v20  ;;  %v4410_v34 = vmax.f32 %v4302_v42, 0.0 }
 0x8d5   : > { %v6332_v21 = vpop.f32.mrf.mxu0 }
 0x8d6   : > { %v4305_v26 = vadd.f32 %v6331_v3, %v3961_v31 }
 0x8d7   : > { %v6333_v60 = vpop.f32.mrf.mxu0 }
 0x8d8   : > { %v4411_v63 = vmax.f32 %v4305_v26, 0.0  ;;  %v6334_v38 = vadd.f32 %v6333_v60, %v6332_v21 }
 0x8d9   : > { %v6335_v39 = vpop.f32.mrf.mxu0 }
 0x8da   : > { %v9420_v41 = vpack.c.bf16 %v4411_v63, %v4410_v34  ;;  %v4310_v29 = vadd.f32 %v6334_v38, %v9391_v51 }
 0x8db   : > { %v6336_v45 = vpop.f32.mrf.mxu0 }
 0x8dc   : > { %v6337_v23 = vadd.f32 %v6336_v45, %v6335_v39  ;;  %v4412_v14 = vmax.f32 %v4310_v29, 0.0 }
 0x8dd   : > { %v6338_v28 = vpop.f32.mrf.mxu0 }
 0x8de   : > { %v4313_v5 = vadd.f32 %v6337_v23, %v9393_v50 }
 0x8df   : > { %v6339_v31 = vpop.f32.mrf.mxu0 }
 0x8e0   : > { %v4413_v25 = vmax.f32 %v4313_v5, 0.0  ;;  %v6340_v7 = vadd.f32 %v6339_v31, %v6338_v28 }
 0x8e1   : > { %v6341_v52 = vpop.f32.mrf.mxu0 }
 0x8e2   : > { %v9424_v0 = vpack.c.bf16 %v4413_v25, %v4412_v14  ;;  %v4318_v49 = vadd.f32 %v6340_v7, %v9383_v40 }
 0x8e3   : > { %v6342_v10 = vpop.f32.mrf.mxu0 }
 0x8e4   : > { %v6343_v61 = vadd.f32 %v6342_v10, %v6341_v52  ;;  %v4414_v51 = vmax.f32 %v4318_v49, 0.0 }
 0x8e5   : > { %v6344_v47 = vpop.f32.mrf.mxu0 }
 0x8e6   : > { %v4321_v37 = vadd.f32 %v6343_v61, %v9385_v13 }
 0x8e7   : > { %v6345_v15 = vpop.f32.mrf.mxu0 }
 0x8e8   : > { %v4415_v53 = vmax.f32 %v4321_v37, 0.0  ;;  %v6346_v54 = vadd.f32 %v6345_v15, %v6344_v47 }
 0x8e9   : > { %v6347_v16 = vpop.f32.mrf.mxu0 }
 0x8ea   : > { %v9428_v50 = vpack.c.bf16 %v4415_v53, %v4414_v51  ;;  %v4326_v17 = vadd.f32 %v6346_v54, %v9375_v59 }
 0x8eb   : > { %v6348_v46 = vpop.f32.mrf.mxu0 }
 0x8ec   : > { %v6349_v35 = vadd.f32 %v6348_v46, %v6347_v16  ;;  %v4416_v40 = vmax.f32 %v4326_v17, 0.0 }
 0x8ed   : > { %v6350_v4 = vpop.f32.mrf.mxu0 }
 0x8ee   : > { %v4329_v20 = vadd.f32 %v6349_v35, %v9377_v19 }
 0x8ef   : > { %v6351_v32 = vpop.f32.mrf.mxu0 }
 0x8f0   : > { %v4417_v42 = vmax.f32 %v4329_v20, 0.0  ;;  %v6352_v3 = vadd.f32 %v6351_v32, %v6350_v4 }
 0x8f1   : > { %v6353_v21 = vpop.f32.mrf.mxu0 }
 0x8f2   : > { %v9432_v13 = vpack.c.bf16 %v4417_v42, %v4416_v40  ;;  %v4334_v60 = vadd.f32 %v6352_v3, %v9364_v36 }
 0x8f3   : > { %v6354_v26 = vpop.f32.mrf.mxu0 }
 0x8f4   : > { %v6355_v34 = vadd.f32 %v6354_v26, %v6353_v21  ;;  %v4418_v59 = vmax.f32 %v4334_v60, 0.0 }
 0x8f5   : > { %v6356_v63 = vpop.f32.mrf.mxu0 }
 0x8f6   : > { %v4337_v38 = vadd.f32 %v6355_v34, %v9366_v18 }
 0x8f7   : > { %v6357_v39 = vpop.f32.mrf.mxu0 }
 0x8f8   : > { %v4419_v57 = vmax.f32 %v4337_v38, 0.0  ;;  %v6358_v45 = vadd.f32 %v6357_v39, %v6356_v63 }
 0x8f9   : > { %v6359_v29 = vpop.f32.mrf.mxu0 }
 0x8fa   : > { %v9436_v19 = vpack.c.bf16 %v4419_v57, %v4418_v59  ;;  %v4342_v28 = vadd.f32 %v6358_v45, %v9407_v33 }
 0x8fb   : > { %v6360_v23 = vpop.f32.mrf.mxu0 }
 0x8fc   : > { %v6361_v5 = vadd.f32 %v6360_v23, %v6359_v29  ;;  %v4420_v36 = vmax.f32 %v4342_v28, 0.0 }
 0x8fd   : > { %v6362_v31 = vpop.f32.mrf.mxu0 }
 0x8fe   : > { %v4345_v14 = vadd.f32 %v6361_v5, %v9409_v1 }
 0x8ff   : > { %v6363_v25 = vpop.f32.mrf.mxu0 }
 0x900   : > { %v4421_v7 = vmax.f32 %v4345_v14, 0.0  ;;  %v6364_v52 = vadd.f32 %v6363_v25, %v6362_v31 }
 0x901   : > { %v6365_v10 = vpop.f32.mrf.mxu0 }
 0x902   : > { %v9440_v18 = vpack.c.bf16 %v4421_v7, %v4420_v36  ;;  %v4350_v61 = vadd.f32 %v6364_v52, %v9403_v44 }
 0x903   : > { %v6366_v49 = vpop.f32.mrf.mxu0 }
 0x904   : > { %v6367_v47 = vadd.f32 %v6366_v49, %v6365_v10  ;;  %v4422_v33 = vmax.f32 %v4350_v61, 0.0 }
 0x905   : > { %v6368_v37 = vpop.f32.mrf.mxu0 }
 0x906   : > { %v4353_v15 = vadd.f32 %v6367_v47, %v9405_v62 }
 0x907   : > { %v6369_v51 = vpop.f32.mrf.mxu0 }
 0x908   : > { %v4423_v53 = vmax.f32 %v4353_v15, 0.0 }
 0x909   : > { %v6371_v54 = vpop.f32.mrf.mxu0 }
 0x90a   : > { %v9444_v16 = vpack.c.bf16 %v4423_v53, %v4422_v33 }
 0x90b   : > { %v6372_v1 = vpop.f32.mrf.mxu0 }
 0x90d   : > { %v6374_v46 = vpop.f32.mrf.mxu0 }
 0x90f   : > { %v6375_v17 = vpop.f32.mrf.mxu0 }
 0x911   : > { %v6377_v35 = vpop.f32.mrf.mxu0 }
 0x913   : > { %v6378_v4 = vpop.f32.mrf.mxu0 }
 0x915   : > { %v6380_v20 = vpop.f32.mrf.mxu0 }
 0x917   : > { %v6381_v32 = vpop.f32.mrf.mxu0 }
 0x918   : > { %v6382_v15 = vadd.f32 %v6381_v32, %v6380_v20 }
 0x919   : > { %v6383_v40 = vpop.f32.mrf.mxu0 }
 0x91b   : > { %v6384_v42 = vpop.f32.mrf.mxu0 }
 0x91c   : > { %v6385_v52 = vadd.f32 %v6384_v42, %v6383_v40  ;;  %v6373_v40 = vadd.f32 %v6372_v1, %v6371_v54 }
 0x91d   : > { %v6386_v44 = vpop.f32.mrf.mxu0 }
 0x91e   : > { %v4361_v42 = vadd.f32 %v6373_v40, %v9401_v43  ;;  %v6956_v43 = vld [vmem:[%s9772_s15 + $0x10] ss:$8 sps:$4 sm:$0xff]  }
 0x91f   : > { %v6387_v3 = vpop.f32.mrf.mxu0 }
 0x920   : > { %v6388_v25 = vadd.f32 %v6387_v3, %v6386_v44  ;;  %v6976_v3 = vld [vmem:[%s9772_s15 + $0x74] ss:$8 sps:$4 sm:$0xff]  }
 0x921   : > { %v6389_v21 = vpop.f32.mrf.mxu0 }
 0x922   : > { %v4382_v33 = vadd.f32 %v6388_v25, %v9379_v24  ;;  %v6995_v25 = vld [vmem:[%s9772_s15 + $0xe0] ss:$8 sps:$4 sm:$0xff]  }
 0x923   : > { %v6390_v26 = vpop.f32.mrf.mxu0 }
 0x924   : > { %v6391_v28 = vadd.f32 %v6390_v26, %v6389_v21 }
 0x925   : > { %v6392_v62 = vpop.f32.mrf.mxu0 }
 0x926   : > { %v4385_v10 = vadd.f32 %v6391_v28, %v9381_v55  ;;  %v4430_v55 = vmax.f32 %v4382_v33, 0.0  ;;  %v6994_v28 = vld [vmem:[%s9772_s15 + $0xd4] ss:$8 sps:$4 sm:$0xff]  }
 0x927   : > { %v6393_v60 = vpop.f32.mrf.mxu0 }
 0x928   : > { %v6394_v29 = vadd.f32 %v6393_v60, %v6392_v62  ;;  %v4431_v26 = vmax.f32 %v4385_v10, 0.0  ;;  %v6974_v62 = vld [vmem:[%s9772_s15 + $0x70] ss:$8 sps:$4 sm:$0xff]   ;;  %v6979_v60 = vld [vmem:[%s9772_s15 + $0x84] ss:$8 sps:$4 sm:$0xff]  }
 0x929   : > { %v6395_v34 = vpop.f32.mrf.mxu0 }
 0x92a   : > { %v4390_v36 = vadd.f32 %v6394_v29, %v9371_v30  ;;  %v4374_v30 = vadd.f32 %v6382_v15, %v9387_v48  ;;  %v4513_v24 = vpack.c.bf16 %v4431_v26, %v4430_v55  ;;  %v6991_v29 = vld [vmem:[%s9772_s15 + $0xc4] ss:$8 sps:$4 sm:$0xff]  }
 0x92b   : > { %v6396_v63 = vpop.f32.mrf.mxu0 }
 0x92c   : > { %v6397_v59 = vadd.f32 %v6396_v63, %v6395_v34  ;;  %v4432_v53 = vmax.f32 %v4390_v36, 0.0  ;;  %v6977_v34 = vld [vmem:[%s9772_s15 + $0x80] ss:$8 sps:$4 sm:$0xff]   ;;  %v6982_v63 = vld [vmem:[%s9772_s15 + $0x94] ss:$8 sps:$4 sm:$0xff]  }
 0x92d   : > { %v6398_v38 = vpop.f32.mrf.mxu0  ;;  %v7000_v36 = vld [vmem:[%s9772_s15 + $0xf4] ss:$8 sps:$4 sm:$0xff]  }
 0x92e   : > { %v4393_v5 = vadd.f32 %v6397_v59, %v9373_v11  ;;  %v6379_v11 = vadd.f32 %v6378_v4, %v6377_v35  ;;  %v6370_v35 = vadd.f32 %v6369_v51, %v6368_v37  ;;  %v4428_v4 = vmax.f32 %v4374_v30, 0.0  ;;  %v6968_v51 = vld [vmem:[%s9772_s15 + $0x50] ss:$8 sps:$4 sm:$0xff]   ;;  %v6983_v59 = vld [vmem:[%s9772_s15 + $0xa0] ss:$8 sps:$4 sm:$0xff]  }
 0x92f   : > { %v6399_v39 = vpop.f32.mrf.mxu0 }
 0x930   : > { %v6400_v57 = vadd.f32 %v6399_v39, %v6398_v38  ;;  %v4433_v49 = vmax.f32 %v4393_v5, 0.0  ;;  %v4369_v20 = vadd.f32 %v6379_v11, %v9397_v22  ;;  %v4358_v48 = vadd.f32 %v6370_v35, %v9399_v56  ;;  %v6958_v56 = vld [vmem:[%s9772_s15 + $0x14] ss:$8 sps:$4 sm:$0xff]   ;;  %v6980_v38 = vld [vmem:[%s9772_s15 + $0x90] ss:$8 sps:$4 sm:$0xff]  }
 0x931   : > { %v6401_v45 = vpop.f32.mrf.mxu0  ;;  %v4425_v22 = vmax.f32 %v4361_v42, 0.0  ;;  %v6985_v39 = vld [vmem:[%s9772_s15 + $0xa4] ss:$8 sps:$4 sm:$0xff]   ;;  %v6992_v5 = vld [vmem:[%s9772_s15 + $0xd0] ss:$8 sps:$4 sm:$0xff]  }
 0x932   : > { %v4398_v31 = vadd.f32 %v6400_v57, %v9354_v9  ;;  %v4377_v9 = vadd.f32 %v6385_v52, %v9389_v2  ;;  %v4514_v44 = vpack.c.bf16 %v4433_v49, %v4432_v53  ;;  %v6988_v57 = vld [vmem:[%s9772_s15 + $0xb4] ss:$8 sps:$4 sm:$0xff]   ;;  %v6998_v49 = vld [vmem:[%s9772_s15 + $0xf0] ss:$8 sps:$4 sm:$0xff]  }
 0x933   : > { %v6402_v23 = vpop.f32.mrf.mxu0 }
 0x934   : > { %v6403_v14 = vadd.f32 %v6402_v23, %v6401_v45  ;;  %v4434_v61 = vmax.f32 %v4398_v31, 0.0  ;;  %v4429_v32 = vmax.f32 %v4377_v9, 0.0  ;;  %v6986_v45 = vld [vmem:[%s9772_s15 + $0xb0] ss:$8 sps:$4 sm:$0xff]   ;;  %v6989_v23 = vld [vmem:[%s9772_s15 + $0xc0] ss:$8 sps:$4 sm:$0xff]  }
 0x935   : > { %v6997_v31 = vld [vmem:[%s9772_s15 + $0xe4] ss:$8 sps:$4 sm:$0xff]  }
 0x936   : > { %v4401_v7 = vadd.f32 %v6403_v14, %v9362_v27  ;;  %v6376_v27 = vadd.f32 %v6375_v17, %v6374_v46  ;;  %v4512_v46 = vpack.c.bf16 %v4429_v32, %v4428_v4  ;;  %v6971_v17 = vld [vmem:[%s9772_s15 + $0x60] ss:$8 sps:$4 sm:$0xff]   ;;  %v9552_v14 = vpop.permute.xlu0 %4668 }
 0x938   : > { %v4435_v47 = vmax.f32 %v4401_v7, 0.0  ;;  %v4366_v2 = vadd.f32 %v6376_v27, %v9395_v6  ;;  %v6953_v6 = vld [vmem:[%s9772_s15] ss:$8 sps:$4 sm:$0xff]   ;;  %v9560_v7 = vpop.permute.xlu1 %4673 }
 0x93a   : > { %v4515_v21 = vpack.c.bf16 %v4435_v47, %v4434_v61  ;;  %v4426_v54 = vmax.f32 %v4366_v2, 0.0  ;;  %v9562_v52 = vpop.permute.xlu0 %4588 }
 0x93c   : > { %6404 = vmatprep.subr.bf16.mxu1 %v4515_v21  ;;  %v9564_v10 = vpop.permute.xlu1 %4593 }
 0x93d   : > { %6405 = vmatpush3.bf16.msra.mxu1 %v9436_v19  ;;  %v4427_v19 = vmax.f32 %v4369_v20, 0.0 }
 0x93e   : > { %6406 = vmatprep.subr.bf16.mxu1 %v4514_v44  ;;  %v9569_v61 = vpop.permute.xlu0 %4658 }
 0x93f   : > { %v4511_v1 = vpack.c.bf16 %v4427_v19, %v4426_v54 }
 0x940   : > { %v9571_v47 = vpop.permute.xlu1 %4663 }
 0x941   : > { %6407 = vmatpush3.bf16.msra.mxu1 %v9432_v13  ;;  %v4424_v13 = vmax.f32 %v4358_v48, 0.0 }
 0x942   : > { %6408 = vmatprep.subr.bf16.mxu1 %v4513_v24  ;;  %v9573_v15 = vpop.permute.xlu0 %4578 }
 0x943   : > { %v4510_v37 = vpack.c.bf16 %v4425_v22, %v4424_v13 }
 0x944   : > { %v9575_v33 = vpop.permute.xlu1 %4583 }
 0x945   : > { %6409 = vmatpush3.bf16.msra.mxu1 %v9428_v50  ;;  %v6965_v50 = vld [vmem:[%s9772_s15 + $0x40] ss:$8 sps:$4 sm:$0xff]  }
 0x946   : > { %6410 = vmatprep.subr.bf16.mxu1 %v4512_v46  ;;  %v9577_v53 = vpop.permute.xlu0 %4648 }
 0x948   : > { %v9579_v21 = vpop.permute.xlu1 %4653 }
 0x949   : > { %6411 = vmatpush3.bf16.msra.mxu1 %v9424_v0  ;;  %v6967_v0 = vld [vmem:[%s9772_s15 + $0x44] ss:$8 sps:$4 sm:$0xff]  }
 0x94a   : > { %6412 = vmatprep.subr.bf16.mxu1 %v4511_v1  ;;  %v9581_v11 = vpop.permute.xlu0 %4568 }
 0x94c   : > { %v9583_v9 = vpop.permute.xlu1 %4573 }
 0x94d   : > { %6413 = vmatpush3.bf16.msra.mxu1 %v9420_v41  ;;  %v6962_v41 = vld [vmem:[%s9772_s15 + $0x30] ss:$8 sps:$4 sm:$0xff]  }
 0x94e   : > { %6414 = vmatprep.subr.bf16.mxu1 %v4510_v37  ;;  %v9585_v26 = vpop.permute.xlu0 %4638 }
 0x950   : > { %v9587_v44 = vpop.permute.xlu1 %4643 }
 0x951   : > { %6415 = vmatpush3.bf16.msra.mxu1 %v9415_v8  ;;  %v6964_v8 = vld [vmem:[%s9772_s15 + $0x34] ss:$8 sps:$4 sm:$0xff]  }
 0x952   : > { %6416 = vmatprep.subr.bf16.mxu1 %v9444_v16  ;;  %v6973_v16 = vld [vmem:[%s9772_s15 + $0x64] ss:$8 sps:$4 sm:$0xff]   ;;  %v9589_v27 = vpop.permute.xlu0 %4558 }
 0x954   : > { %v9591_v30 = vpop.permute.xlu1 %4563 }
 0x955   : > { %6417 = vmatpush3.bf16.msra.mxu1 %v9413_v58  ;;  %v6961_v58 = vld [vmem:[%s9772_s15 + $0x24] ss:$8 sps:$4 sm:$0xff]  }
 0x956   : > { %6418 = vmatprep.subr.bf16.mxu1 %v9440_v18  ;;  %v6970_v18 = vld [vmem:[%s9772_s15 + $0x54] ss:$8 sps:$4 sm:$0xff]   ;;  %v9593_v55 = vpop.permute.xlu0 %4628 }
 0x958   : > { %v9595_v40 = vpop.permute.xlu1 %4633 }
 0x959   : > { %6419 = vmatpush3.bf16.msra.mxu1 %v9411_v12  ;;  %v6959_v12 = vld [vmem:[%s9772_s15 + $0x20] ss:$8 sps:$4 sm:$0xff]  }
 0x95a   : > { %v4549_v20 = vpop.permute.xlu0 %4548 }
 0x95c   : > { %4869 = vmatmul.mubr.bf16.vlgmr.msra.gmra.mxu1 %v6953_v6  ;;  %v4554_v32 = vpop.permute.xlu1 %4553 }
 0x95d   : > { %4876 = vmatprep.mubr.bf16.mxu1 %v6958_v56 }
 0x95e   : > { %v9597_v24 = vpop.permute.xlu0 %4618 }
 0x960   : > { %v9599_v35 = vpop.permute.xlu1 %4623 }
 0x962   : > { %v4539_v2 = vpop.permute.xlu0 %4538 }
 0x964   : > { %4877 = vmatmul.mubr.bf16.gmra.mxu1 %v6956_v43  ;;  %v4544_v4 = vpop.permute.xlu1 %4543 }
 0x965   : > { %4884 = vmatprep.mubr.bf16.mxu1 %v6961_v58 }
 0x966   : > { %v9601_v42 = vpop.permute.xlu0 %4608 }
 0x968   : > { %v9603_v19 = vpop.permute.xlu1 %4613 }
 0x96a   : > { %v4529_v46 = vpop.permute.xlu0 %4528 }
 0x96c   : > { %4885 = vmatmul.mubr.bf16.gmra.mxu1 %v6959_v12  ;;  %v4534_v48 = vpop.permute.xlu1 %4533 }
 0x96d   : > { %4892 = vmatprep.mubr.bf16.mxu1 %v6964_v8 }
 0x96e   : > { %v9605_v54 = vpop.permute.xlu0 %4598 }
 0x970   : > { %v9607_v1 = vpop.permute.xlu1 %4603 }
 0x972   : > { %v4519_v56 = vpop.permute.xlu0 %4518 }
 0x974   : > { %4893 = vmatmul.mubr.bf16.gmra.mxu1 %v6962_v41  ;;  %v4524_v8 = vpop.permute.xlu1 %4523 }
 0x975   : > { %4900 = vmatprep.mubr.bf16.mxu1 %v6967_v0 }
 0x97c   : > { %4901 = vmatmul.mubr.bf16.gmra.mxu1 %v6965_v50 }
 0x97d   : > { %4908 = vmatprep.mubr.bf16.mxu1 %v6970_v18 }
 0x984   : > { %4909 = vmatmul.mubr.bf16.gmra.mxu1 %v6968_v51 }
 0x985   : > { %4916 = vmatprep.mubr.bf16.mxu1 %v6973_v16 }
 0x98c   : > { %4917 = vmatmul.mubr.bf16.gmra.mxu1 %v6971_v17 }
 0x98d   : > { %4924 = vmatprep.mubr.bf16.mxu1 %v6976_v3 }
 0x994   : > { %4925 = vmatmul.mubr.bf16.gmra.mxu1 %v6974_v62 }
 0x995   : > { %4932 = vmatprep.mubr.bf16.mxu1 %v6979_v60 }
 0x99c   : > { %4933 = vmatmul.mubr.bf16.gmra.mxu1 %v6977_v34 }
 0x99d   : > { %4940 = vmatprep.mubr.bf16.mxu1 %v6982_v63 }
 0x9a4   : > { %4941 = vmatmul.mubr.bf16.gmra.mxu1 %v6980_v38 }
 0x9a5   : > { %4948 = vmatprep.mubr.bf16.mxu1 %v6985_v39 }
 0x9ac   : > { %4949 = vmatmul.mubr.bf16.gmra.mxu1 %v6983_v59 }
 0x9ad   : > { %4956 = vmatprep.mubr.bf16.mxu1 %v6988_v57 }
 0x9b4   : > { %4957 = vmatmul.mubr.bf16.gmra.mxu1 %v6986_v45 }
 0x9b5   : > { %4964 = vmatprep.mubr.bf16.mxu1 %v6991_v29 }
 0x9bc   : > { %4965 = vmatmul.mubr.bf16.gmra.mxu1 %v6989_v23 }
 0x9bd   : > { %4972 = vmatprep.mubr.bf16.mxu1 %v6994_v28 }
 0x9c4   : > { %4973 = vmatmul.mubr.bf16.gmra.mxu1 %v6992_v5 }
 0x9c5   : > { %4980 = vmatprep.mubr.bf16.mxu1 %v6997_v31 }
 0x9cc   : > { %4981 = vmatmul.mubr.bf16.gmra.mxu1 %v6995_v25 }
 0x9cd   : > { %4988 = vmatprep.mubr.bf16.mxu1 %v7000_v36 }
 0x9d4   : > { %4989 = vmatmul.mubr.bf16.gmra.mxu1 %v6998_v49 }
 0xa1c   : > { %v6420_v22 = vpop.f32.mrf.mxu1 }
 0xa1e   : > { %v6421_v13 = vpop.f32.mrf.mxu1 }
 0xa1f   : > { %v6422_v37 = vadd.f32 %v6421_v13, %v6420_v22 }
 0xa20   : > { %v6423_v6 = vpop.f32.mrf.mxu1 }
 0xa21   : > { %v4871_v58 = vadd.f32 %v6422_v37, %v4519_v56 }
 0xa22   : > { %v6424_v43 = vpop.f32.mrf.mxu1 }
 0xa23   : > { %v6425_v12 = vadd.f32 %v6424_v43, %v6423_v6  ;;  %v4997_v18 = vmax.f32 %v4871_v58, 0.0 }
 0xa24   : > { %v6426_v41 = vpop.f32.mrf.mxu1 }
 0xa25   : > { %v4874_v0 = vadd.f32 %v6425_v12, %v4524_v8 }
 0xa26   : > { %v6427_v50 = vpop.f32.mrf.mxu1 }
 0xa27   : > { %v4998_v51 = vmax.f32 %v4874_v0, 0.0  ;;  %v6428_v16 = vadd.f32 %v6427_v50, %v6426_v41 }
 0xa28   : > { %v6429_v17 = vpop.f32.mrf.mxu1 }
 0xa29   : > { %v9609_v3 = vpack.c.bf16 %v4998_v51, %v4997_v18  ;;  %v4879_v60 = vadd.f32 %v6428_v16, %v4529_v46 }
 0xa2a   : > { %v6430_v62 = vpop.f32.mrf.mxu1 }
 0xa2b   : > { %v6431_v34 = vadd.f32 %v6430_v62, %v6429_v17  ;;  %v4999_v59 = vmax.f32 %v4879_v60, 0.0 }
 0xa2c   : > { %v6432_v63 = vpop.f32.mrf.mxu1 }
 0xa2d   : > { %v4882_v38 = vadd.f32 %v6431_v34, %v4534_v48 }
 0xa2e   : > { %v6433_v39 = vpop.f32.mrf.mxu1 }
 0xa2f   : > { %v5000_v57 = vmax.f32 %v4882_v38, 0.0  ;;  %v6434_v45 = vadd.f32 %v6433_v39, %v6432_v63 }
 0xa30   : > { %v6435_v29 = vpop.f32.mrf.mxu1 }
 0xa31   : > { %v9611_v23 = vpack.c.bf16 %v5000_v57, %v4999_v59  ;;  %v4887_v5 = vadd.f32 %v6434_v45, %v4539_v2 }
 0xa32   : > { %v6436_v28 = vpop.f32.mrf.mxu1 }
 0xa33   : > { %v6437_v31 = vadd.f32 %v6436_v28, %v6435_v29  ;;  %v5001_v22 = vmax.f32 %v4887_v5, 0.0 }
 0xa34   : > { %v6438_v25 = vpop.f32.mrf.mxu1 }
 0xa35   : > { %v4890_v36 = vadd.f32 %v6437_v31, %v4544_v4  ;;  %v7003_v4 = vld [vmem:[%s9774_s17 + $0x4] ss:$8 sps:$4 sm:$0xff]  }
 0xa36   : > { %v6439_v49 = vpop.f32.mrf.mxu1  ;;  %5269 = vmatprep.mubr.bf16.mxu0 %v7003_v4 }
 0xa37   : > { %v5002_v13 = vmax.f32 %v4890_v36, 0.0  ;;  %v6440_v37 = vadd.f32 %v6439_v49, %v6438_v25 }
 0xa38   : > { %v6441_v46 = vpop.f32.mrf.mxu1 }
 0xa39   : > { %v9613_v6 = vpack.c.bf16 %v5002_v13, %v5001_v22  ;;  %v4895_v56 = vadd.f32 %v6440_v37, %v4549_v20 }
 0xa3a   : > { %v6442_v48 = vpop.f32.mrf.mxu1 }
 0xa3b   : > { %v6443_v43 = vadd.f32 %v6442_v48, %v6441_v46  ;;  %v5003_v41 = vmax.f32 %v4895_v56, 0.0 }
 0xa3c   : > { %v6444_v58 = vpop.f32.mrf.mxu1 }
 0xa3d   : > { %v4898_v12 = vadd.f32 %v6443_v43, %v4554_v32 }
 0xa3e   : > { %v6445_v8 = vpop.f32.mrf.mxu1 }
 0xa3f   : > { %v5004_v0 = vmax.f32 %v4898_v12, 0.0  ;;  %v6446_v50 = vadd.f32 %v6445_v8, %v6444_v58 }
 0xa40   : > { %v6447_v2 = vpop.f32.mrf.mxu1 }
 0xa41   : > { %v9618_v18 = vpack.c.bf16 %v5004_v0, %v5003_v41  ;;  %v4903_v16 = vadd.f32 %v6446_v50, %v9589_v27 }
 0xa42   : > { %v6448_v51 = vpop.f32.mrf.mxu1 }
 0xa43   : > { %v6449_v17 = vadd.f32 %v6448_v51, %v6447_v2  ;;  %v5005_v60 = vmax.f32 %v4903_v16, 0.0 }
 0xa44   : > { %v6450_v20 = vpop.f32.mrf.mxu1 }
 0xa45   : > { %v4906_v62 = vadd.f32 %v6449_v17, %v9591_v30 }
 0xa46   : > { %v6451_v32 = vpop.f32.mrf.mxu1 }
 0xa47   : > { %v5006_v34 = vmax.f32 %v4906_v62, 0.0  ;;  %v6452_v63 = vadd.f32 %v6451_v32, %v6450_v20 }
 0xa48   : > { %v6453_v38 = vpop.f32.mrf.mxu1 }
 0xa49   : > { %v9622_v39 = vpack.c.bf16 %v5006_v34, %v5005_v60  ;;  %v4911_v57 = vadd.f32 %v6452_v63, %v9581_v11 }
 0xa4a   : > { %v6454_v59 = vpop.f32.mrf.mxu1 }
 0xa4b   : > { %v6455_v45 = vadd.f32 %v6454_v59, %v6453_v38  ;;  %v5007_v27 = vmax.f32 %v4911_v57, 0.0 }
 0xa4c   : > { %v6456_v29 = vpop.f32.mrf.mxu1 }
 0xa4d   : > { %v4914_v28 = vadd.f32 %v6455_v45, %v9583_v9 }
 0xa4e   : > { %v6457_v5 = vpop.f32.mrf.mxu1 }
 0xa4f   : > { %v5008_v31 = vmax.f32 %v4914_v28, 0.0  ;;  %v6458_v25 = vadd.f32 %v6457_v5, %v6456_v29 }
 0xa50   : > { %v6459_v36 = vpop.f32.mrf.mxu1 }
 0xa51   : > { %v9626_v30 = vpack.c.bf16 %v5008_v31, %v5007_v27  ;;  %v4919_v22 = vadd.f32 %v6458_v25, %v9573_v15 }
 0xa52   : > { %v6460_v49 = vpop.f32.mrf.mxu1 }
 0xa53   : > { %v6461_v13 = vadd.f32 %v6460_v49, %v6459_v36  ;;  %v5009_v11 = vmax.f32 %v4919_v22, 0.0 }
 0xa54   : > { %v6462_v37 = vpop.f32.mrf.mxu1 }
 0xa55   : > { %v4922_v46 = vadd.f32 %v6461_v13, %v9575_v33 }
 0xa56   : > { %v6463_v48 = vpop.f32.mrf.mxu1 }
 0xa57   : > { %v5010_v56 = vmax.f32 %v4922_v46, 0.0  ;;  %v6464_v43 = vadd.f32 %v6463_v48, %v6462_v37 }
 0xa58   : > { %v6465_v58 = vpop.f32.mrf.mxu1 }
 0xa59   : > { %v9630_v9 = vpack.c.bf16 %v5010_v56, %v5009_v11  ;;  %v4927_v8 = vadd.f32 %v6464_v43, %v9562_v52 }
 0xa5a   : > { %v6466_v12 = vpop.f32.mrf.mxu1 }
 0xa5b   : > { %v6467_v41 = vadd.f32 %v6466_v12, %v6465_v58  ;;  %v5011_v15 = vmax.f32 %v4927_v8, 0.0 }
 0xa5c   : > { %v6468_v0 = vpop.f32.mrf.mxu1 }
 0xa5d   : > { %v4930_v50 = vadd.f32 %v6467_v41, %v9564_v10 }
 0xa5e   : > { %v6469_v2 = vpop.f32.mrf.mxu1 }
 0xa5f   : > { %v5012_v4 = vmax.f32 %v4930_v50, 0.0  ;;  %v6470_v51 = vadd.f32 %v6469_v2, %v6468_v0 }
 0xa60   : > { %v6471_v16 = vpop.f32.mrf.mxu1 }
 0xa61   : > { %v9634_v33 = vpack.c.bf16 %v5012_v4, %v5011_v15  ;;  %v4935_v20 = vadd.f32 %v6470_v51, %v9605_v54 }
 0xa62   : > { %v6472_v17 = vpop.f32.mrf.mxu1 }
 0xa63   : > { %v6473_v62 = vadd.f32 %v6472_v17, %v6471_v16  ;;  %v5013_v52 = vmax.f32 %v4935_v20, 0.0 }
 0xa64   : > { %v6474_v32 = vpop.f32.mrf.mxu1 }
 0xa65   : > { %v4938_v60 = vadd.f32 %v6473_v62, %v9607_v1 }
 0xa66   : > { %v6475_v34 = vpop.f32.mrf.mxu1 }
 0xa67   : > { %v5014_v63 = vmax.f32 %v4938_v60, 0.0  ;;  %v6476_v38 = vadd.f32 %v6475_v34, %v6474_v32 }
 0xa68   : > { %v6477_v59 = vpop.f32.mrf.mxu1 }
 0xa69   : > { %v9638_v10 = vpack.c.bf16 %v5014_v63, %v5013_v52  ;;  %v4943_v45 = vadd.f32 %v6476_v38, %v9601_v42 }
 0xa6a   : > { %v6478_v57 = vpop.f32.mrf.mxu1 }
 0xa6b   : > { %v6479_v29 = vadd.f32 %v6478_v57, %v6477_v59  ;;  %v5015_v54 = vmax.f32 %v4943_v45, 0.0 }
 0xa6c   : > { %v6480_v28 = vpop.f32.mrf.mxu1 }
 0xa6d   : > { %v4946_v5 = vadd.f32 %v6479_v29, %v9603_v19 }
 0xa6e   : > { %v6481_v27 = vpop.f32.mrf.mxu1 }
 0xa6f   : > { %v5016_v31 = vmax.f32 %v4946_v5, 0.0 }
 0xa70   : > { %v6483_v25 = vpop.f32.mrf.mxu1 }
 0xa71   : > { %v9642_v36 = vpack.c.bf16 %v5016_v31, %v5015_v54 }
 0xa72   : > { %v6484_v1 = vpop.f32.mrf.mxu1 }
 0xa74   : > { %v6486_v49 = vpop.f32.mrf.mxu1 }
 0xa76   : > { %v6487_v22 = vpop.f32.mrf.mxu1 }
 0xa78   : > { %v6489_v13 = vpop.f32.mrf.mxu1 }
 0xa7a   : > { %v6490_v37 = vpop.f32.mrf.mxu1 }
 0xa7c   : > { %v6492_v46 = vpop.f32.mrf.mxu1 }
 0xa7e   : > { %v6493_v48 = vpop.f32.mrf.mxu1 }
 0xa7f   : > { %v6494_v5 = vadd.f32 %v6493_v48, %v6492_v46 }
 0xa80   : > { %v6495_v11 = vpop.f32.mrf.mxu1 }
 0xa82   : > { %v6496_v56 = vpop.f32.mrf.mxu1 }
 0xa83   : > { %v6497_v38 = vadd.f32 %v6496_v56, %v6495_v11  ;;  %v6485_v11 = vadd.f32 %v6484_v1, %v6483_v25 }
 0xa84   : > { %v6498_v42 = vpop.f32.mrf.mxu1 }
 0xa85   : > { %v4954_v56 = vadd.f32 %v6485_v11, %v9599_v35  ;;  %v7004_v35 = vld [vmem:[%s9774_s17 + $0x10] ss:$8 sps:$4 sm:$0xff]  }
 0xa86   : > { %v6499_v43 = vpop.f32.mrf.mxu1 }
 0xa87   : > { %v6500_v34 = vadd.f32 %v6499_v43, %v6498_v42  ;;  %v7024_v43 = vld [vmem:[%s9774_s17 + $0x74] ss:$8 sps:$4 sm:$0xff]  }
 0xa88   : > { %v6501_v58 = vpop.f32.mrf.mxu1 }
 0xa89   : > { %v4975_v54 = vadd.f32 %v6500_v34, %v9577_v53 }
 0xa8a   : > { %v6502_v12 = vpop.f32.mrf.mxu1 }
 0xa8b   : > { %v6503_v20 = vadd.f32 %v6502_v12, %v6501_v58 }
 0xa8c   : > { %v6504_v19 = vpop.f32.mrf.mxu1 }
 0xa8d   : > { %v4978_v59 = vadd.f32 %v6503_v20, %v9579_v21  ;;  %v5023_v21 = vmax.f32 %v4975_v54, 0.0 }
 0xa8e   : > { %v6505_v8 = vpop.f32.mrf.mxu1 }
 0xa8f   : > { %v6506_v16 = vadd.f32 %v6505_v8, %v6504_v19  ;;  %v5024_v12 = vmax.f32 %v4978_v59, 0.0  ;;  %v7022_v19 = vld [vmem:[%s9774_s17 + $0x70] ss:$8 sps:$4 sm:$0xff]   ;;  %v5080_v8 = vpop.permute.xlu0 %5079 }
 0xa90   : > { %v6507_v41 = vpop.f32.mrf.mxu1 }
 0xa91   : > { %v4983_v52 = vadd.f32 %v6506_v16, %v9569_v61  ;;  %v4967_v61 = vadd.f32 %v6494_v5, %v9585_v26  ;;  %v5074_v53 = vpack.c.bf16 %v5024_v12, %v5023_v21 }
 0xa92   : > { %v6508_v0 = vpop.f32.mrf.mxu1 }
 0xa93   : > { %v6509_v15 = vadd.f32 %v6508_v0, %v6507_v41  ;;  %v5025_v31 = vmax.f32 %v4983_v52, 0.0  ;;  %v5085_v41 = vpop.permute.xlu1 %5084  ;;  %v5090_v0 = vpop.permute.xlu0 %5089 }
 0xa94   : > { %v6510_v50 = vpop.f32.mrf.mxu1 }
 0xa95   : > { %v4986_v62 = vadd.f32 %v6509_v15, %v9571_v47  ;;  %v6491_v47 = vadd.f32 %v6490_v37, %v6489_v13  ;;  %v6482_v13 = vadd.f32 %v6481_v27, %v6480_v28  ;;  %v5021_v37 = vmax.f32 %v4967_v61, 0.0  ;;  %v7016_v27 = vld [vmem:[%s9774_s17 + $0x50] ss:$8 sps:$4 sm:$0xff]  }
 0xa96   : > { %v6511_v2 = vpop.f32.mrf.mxu1 }
 0xa97   : > { %v6512_v4 = vadd.f32 %v6511_v2, %v6510_v50  ;;  %v5026_v57 = vmax.f32 %v4986_v62, 0.0  ;;  %v4962_v46 = vadd.f32 %v6491_v47, %v9595_v40  ;;  %v4951_v26 = vadd.f32 %v6482_v13, %v9597_v24  ;;  %v7006_v24 = vld [vmem:[%s9774_s17 + $0x14] ss:$8 sps:$4 sm:$0xff]   ;;  %v5095_v50 = vpop.permute.xlu1 %5094  ;;  %v5100_v2 = vpop.permute.xlu0 %5099 }
 0xa98   : > { %v6513_v51 = vpop.f32.mrf.mxu1  ;;  %v5018_v40 = vmax.f32 %v4954_v56, 0.0 }
 0xa99   : > { %v4991_v32 = vadd.f32 %v6512_v4, %v9552_v14  ;;  %v4970_v14 = vadd.f32 %v6497_v38, %v9587_v44  ;;  %v5075_v42 = vpack.c.bf16 %v5026_v57, %v5025_v31 }
 0xa9a   : > { %v6514_v17 = vpop.f32.mrf.mxu1 }
 0xa9b   : > { %v6515_v60 = vadd.f32 %v6514_v17, %v6513_v51  ;;  %v5027_v45 = vmax.f32 %v4991_v32, 0.0  ;;  %v5022_v48 = vmax.f32 %v4970_v14, 0.0  ;;  %v5105_v15 = vpop.permute.xlu1 %5104  ;;  %v5369_v4 = vpop.permute.xlu0 %5368 }
 0xa9d   : > { %v4994_v63 = vadd.f32 %v6515_v60, %v9560_v7  ;;  %v6488_v7 = vadd.f32 %v6487_v22, %v6486_v49  ;;  %v5073_v49 = vpack.c.bf16 %v5022_v48, %v5021_v37  ;;  %v7019_v22 = vld [vmem:[%s9774_s17 + $0x60] ss:$8 sps:$4 sm:$0xff]  }
 0xa9f   : > { %v5028_v29 = vmax.f32 %v4994_v63, 0.0  ;;  %v4959_v44 = vadd.f32 %v6488_v7, %v9593_v55  ;;  %v7001_v55 = vld [vmem:[%s9774_s17] ss:$8 sps:$4 sm:$0xff]   ;;  %v5374_v51 = vpop.permute.xlu1 %5373  ;;  %v5379_v16 = vpop.permute.xlu0 %5378 }
 0xaa1   : > { %v5076_v58 = vpack.c.bf16 %v5028_v29, %v5027_v45  ;;  %v5019_v25 = vmax.f32 %v4959_v44, 0.0 }
 0xaa3   : > { %6516 = vmatprep.subr.bf16.mxu0 %v5076_v58  ;;  %v5384_v20 = vpop.permute.xlu1 %5383  ;;  %v5110_v32 = vpop.permute.xlu0 %5109 }
 0xaa4   : > { %6517 = vmatpush3.bf16.msra.mxu0 %v9634_v33  ;;  %v5020_v33 = vmax.f32 %v4962_v46, 0.0 }
 0xaa5   : > { %6518 = vmatprep.subr.bf16.mxu0 %v5075_v42 }
 0xaa6   : > { %v5072_v1 = vpack.c.bf16 %v5020_v33, %v5019_v25 }
 0xaa7   : > { %v5389_v52 = vpop.permute.xlu1 %5388  ;;  %v5115_v38 = vpop.permute.xlu0 %5114 }
 0xaa8   : > { %6519 = vmatpush3.bf16.msra.mxu0 %v9630_v9  ;;  %v5017_v9 = vmax.f32 %v4951_v26, 0.0 }
 0xaa9   : > { %6520 = vmatprep.subr.bf16.mxu0 %v5074_v53 }
 0xaaa   : > { %v5071_v28 = vpack.c.bf16 %v5018_v40, %v5017_v9 }
 0xaab   : > { %v9711_v45 = vpop.permute.xlu1 %5393  ;;  %v5120_v5 = vpop.permute.xlu0 %5119 }
 0xaac   : > { %6521 = vmatpush3.bf16.msra.mxu0 %v9626_v30  ;;  %v7013_v30 = vld [vmem:[%s9774_s17 + $0x40] ss:$8 sps:$4 sm:$0xff]  }
 0xaad   : > { %6522 = vmatprep.subr.bf16.mxu0 %v5073_v49 }
 0xaaf   : > { %v9713_v58 = vpop.permute.xlu1 %5398  ;;  %v5125_v14 = vpop.permute.xlu0 %5124 }
 0xab0   : > { %6523 = vmatpush3.bf16.msra.mxu0 %v9622_v39  ;;  %v7015_v39 = vld [vmem:[%s9774_s17 + $0x44] ss:$8 sps:$4 sm:$0xff]  }
 0xab1   : > { %6524 = vmatprep.subr.bf16.mxu0 %v5072_v1 }
 0xab3   : > { %v9715_v7 = vpop.permute.xlu1 %5403  ;;  %v5130_v11 = vpop.permute.xlu0 %5129 }
 0xab4   : > { %6525 = vmatpush3.bf16.msra.mxu0 %v9618_v18  ;;  %v7010_v18 = vld [vmem:[%s9774_s17 + $0x30] ss:$8 sps:$4 sm:$0xff]  }
 0xab5   : > { %6526 = vmatprep.subr.bf16.mxu0 %v5071_v28 }
 0xab7   : > { %v9717_v56 = vpop.permute.xlu1 %5408  ;;  %v5135_v40 = vpop.permute.xlu0 %5134 }
 0xab8   : > { %6527 = vmatpush3.bf16.msra.mxu0 %v9613_v6  ;;  %v7012_v6 = vld [vmem:[%s9774_s17 + $0x34] ss:$8 sps:$4 sm:$0xff]  }
 0xab9   : > { %6528 = vmatprep.subr.bf16.mxu0 %v9642_v36  ;;  %v7021_v36 = vld [vmem:[%s9774_s17 + $0x64] ss:$8 sps:$4 sm:$0xff]  }
 0xabc   : > { %6529 = vmatpush3.bf16.msra.mxu0 %v9611_v23  ;;  %v7009_v23 = vld [vmem:[%s9774_s17 + $0x24] ss:$8 sps:$4 sm:$0xff]  }
 0xabd   : > { %6530 = vmatprep.subr.bf16.mxu0 %v9638_v10  ;;  %v7018_v10 = vld [vmem:[%s9774_s17 + $0x54] ss:$8 sps:$4 sm:$0xff]  }
 0xac0   : > { %6531 = vmatpush3.bf16.msra.mxu0 %v9609_v3  ;;  %v7007_v3 = vld [vmem:[%s9774_s17 + $0x20] ss:$8 sps:$4 sm:$0xff]  }
 0xac3   : > { %5270 = vmatmul.mubr.bf16.vlgmr.msra.gmra.mxu0 %v7001_v55 }
 0xac4   : > { %5277 = vmatprep.mubr.bf16.mxu0 %v7006_v24 }
 0xacb   : > { %5278 = vmatmul.mubr.bf16.gmra.mxu0 %v7004_v35 }
 0xacc   : > { %5285 = vmatprep.mubr.bf16.mxu0 %v7009_v23 }
 0xad3   : > { %5286 = vmatmul.mubr.bf16.gmra.mxu0 %v7007_v3 }
 0xad4   : > { %5293 = vmatprep.mubr.bf16.mxu0 %v7012_v6 }
 0xadb   : > { %5294 = vmatmul.mubr.bf16.gmra.mxu0 %v7010_v18  ;;  %v5414_v18 = vpop.permute.xlu1 %5413 }
 0xadc   : > { %5301 = vmatprep.mubr.bf16.mxu0 %v7015_v39 }
 0xae3   : > { %5302 = vmatmul.mubr.bf16.gmra.mxu0 %v7013_v30 }
 0xae4   : > { %5309 = vmatprep.mubr.bf16.mxu0 %v7018_v10 }
 0xaeb   : > { %5310 = vmatmul.mubr.bf16.gmra.mxu0 %v7016_v27 }
 0xaec   : > { %5317 = vmatprep.mubr.bf16.mxu0 %v7021_v36 }
 0xaf3   : > { %5318 = vmatmul.mubr.bf16.gmra.mxu0 %v7019_v22  ;;  %v5140_v22 = vpop.permute.xlu0 %5139 }
 0xaf4   : > { %5325 = vmatprep.mubr.bf16.mxu0 %v7024_v43 }
 0xafb   : > { %5326 = vmatmul.mubr.bf16.gmra.mxu0 %v7022_v19 }
 0xb83   : > { %v6532_v17 = vpop.f32.mrf.mxu0 }
 0xb85   : > { %v6533_v62 = vpop.f32.mrf.mxu0 }
 0xb86   : > { %v6534_v46 = vadd.f32 %v6533_v62, %v6532_v17 }
 0xb87   : > { %v6535_v60 = vpop.f32.mrf.mxu0 }
 0xb88   : > { %v5272_v33 = vadd.f32 %v6534_v46, %v5080_v8 }
 0xb89   : > { %v6536_v34 = vpop.f32.mrf.mxu0 }
 0xb8a   : > { %v6537_v61 = vadd.f32 %v6536_v34, %v6535_v60  ;;  %v5334_v24 = vmax.f32 %v5272_v33, 0.0 }
 0xb8b   : > { %v6538_v63 = vpop.f32.mrf.mxu0 }
 0xb8c   : > { %v5275_v13 = vadd.f32 %v6537_v61, %v5085_v41  ;;  %v5446_v43 = vmul.f32 %v5369_v4, %v5334_v24 }
 0xb8d   : > { %v6539_v59 = vpop.f32.mrf.mxu0 }
 0xb8e   : > { %v6540_v48 = vadd.f32 %v6539_v59, %v6538_v63  ;;  %v5335_v1 = vmax.f32 %v5275_v13, 0.0  ;;  %v5419_v59 = vpop.permute.xlu1 %5418 }
 0xb8f   : > { %v6541_v57 = vpop.f32.mrf.mxu0 }
 0xb90   : > { %v5280_v49 = vadd.f32 %v6540_v48, %v5090_v0  ;;  %v5447_v39 = vmul.f32 %v5374_v51, %v5335_v1 }
 0xb91   : > { %v6542_v29 = vpop.f32.mrf.mxu0 }
 0xb92   : > { %v6543_v44 = vadd.f32 %v6542_v29, %v6541_v57  ;;  %v5336_v35 = vmax.f32 %v5280_v49, 0.0  ;;  %v5462_v17 = vadd.f32 %v5447_v39, %v5446_v43 }
 0xb93   : > { %v6544_v54 = vpop.f32.mrf.mxu0 }
 0xb94   : > { %v5283_v9 = vadd.f32 %v6543_v44, %v5095_v50  ;;  %v5448_v19 = vmul.f32 %v5379_v16, %v5336_v35 }
 0xb95   : > { %v6545_v31 = vpop.f32.mrf.mxu0 }
 0xb96   : > { %v6546_v26 = vadd.f32 %v6545_v31, %v6544_v54  ;;  %v5337_v30 = vmax.f32 %v5283_v9, 0.0  ;;  %v5463_v57 = vadd.f32 %v5462_v17, %v5448_v19 }
 0xb97   : > { %v6547_v47 = vpop.f32.mrf.mxu0 }
 0xb98   : > { %v5288_v23 = vadd.f32 %v6546_v26, %v5100_v2  ;;  %v5449_v62 = vmul.f32 %v5384_v20, %v5337_v30 }
 0xb99   : > { %v6548_v12 = vpop.f32.mrf.mxu0 }
 0xb9a   : > { %v6549_v28 = vadd.f32 %v6548_v12, %v6547_v47  ;;  %v5338_v8 = vmax.f32 %v5288_v23, 0.0  ;;  %v5145_v47 = vpop.permute.xlu0 %5144  ;;  %v5464_v4 = vadd.f32 %v5463_v57, %v5449_v62 }
 0xb9b   : > { %v6550_v42 = vpop.f32.mrf.mxu0 }
 0xb9c   : > { %v5291_v10 = vadd.f32 %v6549_v28, %v5105_v15  ;;  %v5450_v51 = vmul.f32 %v5389_v52, %v5338_v8 }
 0xb9d   : > { %v6551_v21 = vpop.f32.mrf.mxu0 }
 0xb9e   : > { %v6552_v6 = vadd.f32 %v6551_v21, %v6550_v42  ;;  %v5339_v60 = vmax.f32 %v5291_v10, 0.0  ;;  %v5465_v20 = vadd.f32 %v5464_v4, %v5450_v51  ;;  %v5150_v49 = vpop.permute.xlu0 %5149 }
 0xb9f   : > { %v6553_v53 = vpop.f32.mrf.mxu0 }
 0xba0   : > { %v5296_v0 = vadd.f32 %v6552_v6, %v5110_v32  ;;  %v5451_v16 = vmul.f32 %v9711_v45, %v5339_v60 }
 0xba1   : > { %v6554_v37 = vpop.f32.mrf.mxu0 }
 0xba2   : > { %v6555_v36 = vadd.f32 %v6554_v37, %v6553_v53  ;;  %v5340_v15 = vmax.f32 %v5296_v0, 0.0  ;;  %v5424_v53 = vpop.permute.xlu1 %5423  ;;  %v5466_v52 = vadd.f32 %v5465_v20, %v5451_v16 }
 0xba3   : > { %v6556_v25 = vpop.f32.mrf.mxu0 }
 0xba4   : > { %v5299_v2 = vadd.f32 %v6555_v36, %v5115_v38  ;;  %v5452_v38 = vmul.f32 %v9713_v58, %v5340_v15  ;;  %v5489_v15 = vlaneseq }
 0xba5   : > { %v6557_v55 = vpop.f32.mrf.mxu0 }
 0xba6   : > { %v6558_v50 = vadd.f32 %v6557_v55, %v6556_v25  ;;  %v5341_v32 = vmax.f32 %v5299_v2, 0.0  ;;  %v5467_v26 = vadd.f32 %v5466_v52, %v5452_v38  ;;  %v5429_v24 = vpop.permute.xlu1 %5428 }
 0xba7   : > { %v6559_v3 = vpop.f32.mrf.mxu0 }
 0xba8   : > { %v5304_v54 = vadd.f32 %v6558_v50, %v5120_v5  ;;  %v5453_v5 = vmul.f32 %v9715_v7, %v5341_v32 }
 0xba9   : > { %v6560_v27 = vpop.f32.mrf.mxu0 }
 0xbaa   : > { %v6561_v63 = vadd.f32 %v6560_v27, %v6559_v3  ;;  %v5342_v46 = vmax.f32 %v5304_v54, 0.0  ;;  %v5468_v28 = vadd.f32 %v5467_v26, %v5453_v5  ;;  %v5434_v8 = vpop.permute.xlu1 %5433 }
 0xbab   : > { %v6562_v41 = vpop.f32.mrf.mxu0 }
 0xbac   : > { %v5307_v42 = vadd.f32 %v6561_v63, %v5125_v14  ;;  %v5454_v14 = vmul.f32 %v9717_v56, %v5342_v46 }
 0xbad   : > { %v6563_v34 = vpop.f32.mrf.mxu0 }
 0xbae   : > { %v6564_v31 = vadd.f32 %v6563_v34, %v6562_v41  ;;  %v5343_v44 = vmax.f32 %v5307_v42, 0.0  ;;  %v5469_v23 = vadd.f32 %v5468_v28, %v5454_v14  ;;  %v5444_v57 = vpop.permute.xlu1 %5443 }
 0xbaf   : > { %v6565_v29 = vpop.f32.mrf.mxu0 }
 0xbb0   : > { %v5312_v48 = vadd.f32 %v6564_v31, %v5130_v11  ;;  %v5455_v58 = vmul.f32 %v5414_v18, %v5343_v44 }
 0xbb1   : > { %v6566_v12 = vpop.f32.mrf.mxu0 }
 0xbb2   : > { %v6567_v61 = vadd.f32 %v6566_v12, %v6565_v29  ;;  %v5344_v25 = vmax.f32 %v5312_v48, 0.0  ;;  %v5470_v30 = vadd.f32 %v5469_v23, %v5455_v58 }
 0xbb3   : > { %v6568_v21 = vpop.f32.mrf.mxu0 }
 0xbb4   : > { %v5315_v37 = vadd.f32 %v6567_v61, %v5135_v40  ;;  %v5456_v3 = vmul.f32 %v5419_v59, %v5344_v25  ;;  %v5155_v40 = vpop.permute.xlu0 %5154 }
 0xbb5   : > { %v6569_v13 = vpop.f32.mrf.mxu0 }
 0xbb6   : > { %v6570_v33 = vadd.f32 %v6569_v13, %v6568_v21  ;;  %v5345_v55 = vmax.f32 %v5315_v37, 0.0  ;;  %v5471_v43 = vadd.f32 %v5470_v30, %v5456_v3 }
 0xbb7   : > { %v6571_v45 = vpop.f32.mrf.mxu0 }
 0xbb8   : > { %v5320_v1 = vadd.f32 %v6570_v33, %v5140_v22  ;;  %v5457_v10 = vmul.f32 %v5424_v53, %v5345_v55  ;;  %v5439_v62 = vpop.permute.xlu0 %5438 }
 0xbb9   : > { %v6572_v9 = vpop.f32.mrf.mxu0 }
 0xbba   : > { %v6573_v11 = vadd.f32 %v6572_v9, %v6571_v45  ;;  %v5346_v7 = vmax.f32 %v5320_v1, 0.0  ;;  %v5472_v41 = vadd.f32 %v5471_v43, %v5457_v10 }
 0xbbb   : > { %v6574_v35 = vpop.f32.mrf.mxu0 }
 0xbbc   : > { %v5323_v6 = vadd.f32 %v6573_v11, %v5145_v47  ;;  %v5458_v22 = vmul.f32 %v5429_v24, %v5346_v7  ;;  %v5490_v47 = vshrl.u32 %v5489_v15, 7  ;;  %v5487_v42 = vpop.permute.xlu0 %5486 }
 0xbbd   : > { %v6575_v39 = vpop.f32.mrf.mxu0 }
 0xbbe   : > { %v5347_v27 = vmax.f32 %v5323_v6, 0.0  ;;  %v6576_v36 = vadd.f32 %v6575_v39, %v6574_v35  ;;  %v5473_v60 = vadd.f32 %v5472_v41, %v5458_v22  ;;  %v5491_v12 = vsub.s32 0, %v5490_v47 }
 0xbbf   : > { %v6577_v56 = vpop.f32.mrf.mxu0 }
 0xbc0   : > { %v5328_v19 = vadd.f32 %v6576_v36, %v5150_v49  ;;  %v5459_v0 = vmul.f32 %v5434_v8, %v5347_v27  ;;  %v5492_v20 = vrot.slane %v5487_v42, %v5491_v12 }
 0xbc1   : > { %v6578_v18 = vpop.f32.mrf.mxu0 }
 0xbc2   : > { %v5348_v50 = vmax.f32 %v5328_v19, 0.0  ;;  %v6579_v17 = vadd.f32 %v6578_v18, %v6577_v56  ;;  %v5474_v63 = vadd.f32 %v5473_v60, %v5459_v0 }
 0xbc4   : > { %v5460_v34 = vmul.f32 %v5439_v62, %v5348_v50  ;;  %v5331_v2 = vadd.f32 %v6579_v17, %v5155_v40 }
 0xbc6   : > { %v5349_v59 = vmax.f32 %v5331_v2, 0.0  ;;  %v5475_v51 = vadd.f32 %v5474_v63, %v5460_v34 }
 0xbc8   : > { %v5461_v29 = vmul.f32 %v5444_v57, %v5349_v59 }
 0xbca   : > { %v5476_v54 = vadd.f32 %v5475_v51, %v5461_v29 }
 0xbcc   : > { %v5477_v31 = vrot.slane %v5476_v54, 4 }
 0xbce   : > { %v5478_v4 = vadd.f32 %v5477_v31, %v5476_v54 }
 0xbd0   : > { %v5479_v16 = vrot.slane %v5478_v4, 2 }
 0xbd2   : > { %v5480_v32 = vadd.f32 %v5479_v16, %v5478_v4 }
 0xbd4   : > { %v5481_v61 = vrot.slane %v5480_v32, 1 }
 0xbd6   : > { %v5482_v21 = vadd.f32 %v5481_v61, %v5480_v32 }
 0xbd8   : > { %v5493_v38 = vadd.f32 %v5492_v20, %v5482_v21 }
 0xbda   : > { %5494 = vst [vmem:[%s648_s5] sm:$0x1] %v5493_v38 }
 0xbdb   : > { %7038 = shalt.err (!%p7035_p3)
}
 0xbdc   : > { %s7039_s6 = scalar_lea.hbm %s5506_s30, 16  ;;  %s7043_s5 = scalar_lea.hbm %s10066_s25, 48 }
 0xbdd   : > { %p7040_p4 = scmp.ne.s32.totalorder %s5506_s30, %s7039_s6  ;;  %p7044_p9 = scmp.lt.s32.totalorder %s5506_s30, %s10066_s25 }
 0xbde   : > { %p7045_p10 = scmp.lt.s32.totalorder %s7043_s5, %s7039_s6 }
 0xbdf   : > { %p7041_p7 = pnand %p7040_p4, %p7240_p5 }
 0xbe0   : > { %p7046_p11 = por %p7045_p10, %p7044_p9 }
 0xbe1   : > { %p7042_p8 = pneg %p7041_p7 }
 0xbe3   : > { %p7047_p12 = pnand %p7046_p11, %p7042_p8 }
 0xbe5   : > { %7050 = shalt.err (!%p7047_p12)
}
 0xbe6   : > { %6647 = dma.vmem_to_hbm [thread:$0]  (%p7240_p5), %s5509_s23, 16, %s5506_s30, %s5496_s3  }
 0xbe7 PF: > { %s10067_s0 = sld [smem:[#allocation8_spill]] }
 0xbe8   : > { %s10068_s2 = sld [smem:[#allocation6_spill]] }
 0xbed   : > { %p6653_p13 = scmp.ge.s32.totalorder %s10067_s0, 2 }
 0xbee   : > { %s5520_s20 = sand.u32 1, %s10068_s2  }
 0xbef   : > { %p6650_p0 = pnand %p6653_p13, %p7244_p6  ;;  %s5521_s1 = scalar_lea.sflag [#allocation4], %s5520_s20 }
 0xbf1   : > { %p6651_p1 = pneg %p6650_p0 }
 0xbf3   : > { %7068 = dma.done.wait (%p6651_p1), %s5521_s1, 16  }
 0xbf4   : > { %7070 = vsyncadd (%p6651_p1), %s5521_s1, 4294967280  ;;  %s10070_s28 = sld [smem:[#allocation9_spill]]  ;;  %s10073_s26 = smov %s7077_s27 }
 0xbf5   : > { %s10071_s6 = sld [smem:[#allocation7_spill]] }
 0xbf6   : > { %s10072_s3 = sld [smem:[#allocation10_spill]] }
 0xbfa   : > { %p33_p2 = scmp.ge.s32.totalorder %s10070_s28, 5  }
 0xbfb   : > { %s10074_s27 = smov %s10071_s6 }
 0xbfc   :  { %35 = sbr.rel (!%p33_p2) target bundleno = 12 (0xc), region = 139 }
 0xc01   :  { %5525 = vsyncpa [#allocation4], 1 }
 0xc02   :  { %5527 = vsyncpa [#allocation4 + $0x1], 1 }

</bundles_post_ra>
